<compile_context>
chip_gen: v5e
topology: v5e:2x2
jax: 0.10.0
libtpu: 0.0.40
codegen_flags: <defaults>
</compile_context>

<pallas_src>
import functools

import jax
import jax.numpy as jnp
from jax.experimental import pallas as pl
from jax.experimental.pallas import tpu as pltpu

# ---- bert-tiny config (hidden=128 is pinned by self.fnn = nn.Linear(128, 1)) ----
VOCAB = 512          # synthetic vocab (real bert-tiny: 30522) — weights are random anyway
TYPE_VOCAB = 2
MAX_POS = 64
HIDDEN = 128
LAYERS = 2
HEADS = 2
HEAD_DIM = HIDDEN // HEADS
INTER = 512
LN_EPS = 1e-12
SCALE = 1.0 / float(HEAD_DIM) ** 0.5


def _ln(x, g, b):
    """LayerNorm over the lane (hidden) axis, f32 math."""
    mean = jnp.mean(x, axis=-1, keepdims=True)
    var = jnp.mean(jnp.square(x - mean), axis=-1, keepdims=True)
    return (x - mean) * jax.lax.rsqrt(var + LN_EPS) * g + b


# ------------------- fused embeddings-LN + encoder + pooler + head kernel -------------------
def _bert_kernel(x_emb_ref, mask_ref, misc_ref, wqkv_ref, wo_ref, w1_ref, w2_ref,
                 lp_ref, pool_w_ref, o_ref, x_sc, *, bt, s):
    misc = misc_ref[...]                                   # (8, H) f32 packed small params
    # embedding LayerNorm fused here (dropout after it is identity at eval time)
    x = _ln(x_emb_ref[...], misc[0:1, :], misc[1:2, :])    # (bt*s, H) f32
    mask = mask_ref[...]                                   # (bt, 1, s) additive bias

    for l in range(LAYERS):                                # static unroll, weights resident
        wqkv = wqkv_ref[l]                                 # (H, 3H)   bf16
        wo = wo_ref[l]                                     # (H, H)    bf16
        w1 = w1_ref[l]                                     # (H, INTER) bf16
        w2 = w2_ref[l]                                     # (INTER, H) bf16
        lp = lp_ref[l]                                     # (8, INTER) f32 packed per-layer
        bqkv = lp[0:1, :3 * HIDDEN]
        bo = lp[1:2, :HIDDEN]
        b1 = lp[2:3, :]
        b2 = lp[3:4, :HIDDEN]
        ln1g, ln1b = lp[4:5, :HIDDEN], lp[5:6, :HIDDEN]
        ln2g, ln2b = lp[6:7, :HIDDEN], lp[7:8, :HIDDEN]

        # fused QKV projection on the stacked batch: one (bt*s,128)x(128,384) matmul
        qkv = jnp.dot(x.astype(jnp.bfloat16), wqkv,
                      preferred_element_type=jnp.float32) + bqkv          # (bt*s, 3H)

        attn = jnp.zeros((bt * s, HIDDEN), jnp.float32)
        for h in range(HEADS):                             # static unroll over 2 heads
            q = qkv[:, h * HEAD_DIM:(h + 1) * HEAD_DIM].reshape(bt, s, HEAD_DIM)
            k = qkv[:, HIDDEN + h * HEAD_DIM:
                       HIDDEN + (h + 1) * HEAD_DIM].reshape(bt, s, HEAD_DIM)
            v = qkv[:, 2 * HIDDEN + h * HEAD_DIM:
                       2 * HIDDEN + (h + 1) * HEAD_DIM].reshape(bt, s, HEAD_DIM)
            # 1/sqrt(head_dim) is folded into the Q columns of wqkv at init time
            sc = jnp.einsum('bqd,bkd->bqk', q.astype(jnp.bfloat16),
                            k.astype(jnp.bfloat16),
                            preferred_element_type=jnp.float32) + mask    # (bt, s, s)
            sc = sc - jnp.max(sc, axis=-1, keepdims=True)
            p = jnp.exp(sc)
            p = p / jnp.sum(p, axis=-1, keepdims=True)
            ctx = jnp.einsum('bqk,bkd->bqd', p.astype(jnp.bfloat16),
                             v.astype(jnp.bfloat16),
                             preferred_element_type=jnp.float32)          # (bt, s, d)
            # per-head output projection accumulated in f32 — no lane-dim head concat
            attn = attn + jnp.dot(
                ctx.reshape(bt * s, HEAD_DIM).astype(jnp.bfloat16),
                wo[h * HEAD_DIM:(h + 1) * HEAD_DIM, :],
                preferred_element_type=jnp.float32)

        x = _ln(attn + bo + x, ln1g, ln1b)                 # add & norm 1 (fused epilogue)

        # TODO(synk): HF BERT uses exact erf GELU; tanh approximation used (small drift).
        hmid = jax.nn.gelu(
            jnp.dot(x.astype(jnp.bfloat16), w1, preferred_element_type=jnp.float32) + b1,
            approximate=True)
        ffn = jnp.dot(hmid.astype(jnp.bfloat16), w2,
                      preferred_element_type=jnp.float32) + b2
        x = _ln(ffn + x, ln2g, ln2b)                       # add & norm 2 (fused epilogue)

    # ---- fused pooler + head epilogue: only the CLS row per sequence is consumed ----
    x_sc[...] = x
    cls = x_sc[pl.ds(0, bt, stride=s), :]                  # rows 0, s, 2s, ... -> (bt, H)
    pooled = jnp.tanh(jnp.dot(cls.astype(jnp.bfloat16), pool_w_ref[...],
                              preferred_element_type=jnp.float32) + misc[2:3, :])
    # self.bert_drop = Dropout(0.3): identity at inference time.
    # TODO(synk): training-mode dropout (random mask via pltpu.prng_*) not implemented.
    # 128 -> 1 head as VPU multiply + lane reduce (avoids a degenerate (128,1) MXU pass)
    o_ref[...] = (jnp.sum(pooled * misc[3:4, :], axis=-1, keepdims=True)
                  + misc[4:5, 0:1])


def _pick_bt(batch, seq):
    """Sequences per grid step. Small problems run as a single block; large batches are
    tiled so BT*S stays modest (safe for v7x's 64 MiB VMEM) and BT is 8-aligned."""
    max_rows = 1024
    if batch * seq <= max_rows:
        return batch
    bt = max(8, (max_rows // seq) // 8 * 8)
    while bt > 8 and batch % bt != 0:
        bt -= 8
    return bt if batch % bt == 0 else batch


def bert_fused(x_emb, mask_bias, p):
    """x_emb: (B*S, 128) f32 summed embeddings; mask_bias: (B, 1, S) additive bias."""
    b_sz, _, s = mask_bias.shape
    bt = _pick_bt(b_sz, s)
    nblk = b_sz // bt

    const2 = lambda i: (0, 0)
    const3 = lambda i: (0, 0, 0)        # weights: same block every step -> DMA'd once

    kernel = functools.partial(_bert_kernel, bt=bt, s=s)
    return pl.pallas_call(
        kernel,
        out_shape=jax.ShapeDtypeStruct((b_sz, 1), jnp.float32),
        grid=(nblk,),
        in_specs=[
            pl.BlockSpec((bt * s, HIDDEN), lambda i: (i, 0)),          # embeddings
            pl.BlockSpec((bt, 1, s), lambda i: (i, 0, 0)),             # mask bias
            pl.BlockSpec((8, HIDDEN), const2),                         # packed misc params
            pl.BlockSpec((LAYERS, HIDDEN, 3 * HIDDEN), const3),        # wqkv (bf16)
            pl.BlockSpec((LAYERS, HIDDEN, HIDDEN), const3),            # wo   (bf16)
            pl.BlockSpec((LAYERS, HIDDEN, INTER), const3),             # w1   (bf16)
            pl.BlockSpec((LAYERS, INTER, HIDDEN), const3),             # w2   (bf16)
            pl.BlockSpec((LAYERS, 8, INTER), const3),                  # packed layer params
            pl.BlockSpec((HIDDEN, HIDDEN), const2),                    # pooler weight (bf16)
        ],
        out_specs=pl.BlockSpec((bt, 1), lambda i: (i, 0)),
        scratch_shapes=[pltpu.VMEM((bt * s, HIDDEN), jnp.float32)],    # for CLS strided read
        compiler_params=pltpu.CompilerParams(
            # batch-block axis parallel (feeds both v7x TensorCores once B is tiled)
            dimension_semantics=("parallel",)),
    )(x_emb, mask_bias, p["misc"], p["wqkv"], p["wo"], p["w1"], p["w2"],
      p["lp"], p["pool_w"])


# ----------------------------- parameters -----------------------------
def init_params(key):
    def nrm(k, shape, dtype=jnp.float32):
        return (0.02 * jax.random.normal(k, shape, jnp.float32)).astype(dtype)

    keys = iter(jax.random.split(key, 12))

    # fused QKV weight; fold 1/sqrt(head_dim) into the Q columns (bias is zero, so no
    # corresponding bias fold is needed; 0.125 is a power of two -> exact in bf16)
    wqkv = 0.02 * jax.random.normal(next(keys), (LAYERS, HIDDEN, 3 * HIDDEN), jnp.float32)
    wqkv = wqkv.at[:, :, :HIDDEN].multiply(SCALE)

    # packed per-layer small params: (LAYERS, 8, INTER) f32
    #   row 0: bqkv (first 3H cols)  row 1: bo   row 2: b1   row 3: b2
    #   row 4: ln1 gamma  row 5: ln1 beta  row 6: ln2 gamma  row 7: ln2 beta
    lp = jnp.zeros((LAYERS, 8, INTER), jnp.float32)
    lp = lp.at[:, 4, :HIDDEN].set(1.0)      # ln1 gamma
    lp = lp.at[:, 6, :HIDDEN].set(1.0)      # ln2 gamma

    # packed misc params: (8, HIDDEN) f32
    #   row 0: emb LN gamma  row 1: emb LN beta  row 2: pooler bias
    #   row 3: fnn weight (128->1)  row 4 col 0: fnn bias
    misc = jnp.zeros((8, HIDDEN), jnp.float32)
    misc = misc.at[0].set(1.0)                                   # emb LN gamma
    misc = misc.at[3].set(nrm(next(keys), (HIDDEN,)))            # fnn_w

    return {
        "word_emb": nrm(next(keys), (VOCAB, HIDDEN)),
        "pos_emb": nrm(next(keys), (MAX_POS, HIDDEN)),
        "type_emb": nrm(next(keys), (TYPE_VOCAB, HIDDEN)),
        "misc": misc,
        # matmul weights stored bf16 (f32 accumulation at the dot)
        "wqkv": wqkv.astype(jnp.bfloat16),
        "wo": nrm(next(keys), (LAYERS, HIDDEN, HIDDEN), jnp.bfloat16),
        "w1": nrm(next(keys), (LAYERS, HIDDEN, INTER), jnp.bfloat16),
        "w2": nrm(next(keys), (LAYERS, INTER, HIDDEN), jnp.bfloat16),
        "lp": lp,
        "pool_w": nrm(next(keys), (HIDDEN, HIDDEN), jnp.bfloat16),
    }


# ----------------------------- forward pass -----------------------------
def sts_bert_forward(params, input_ids, attention_mask, token_type_ids):
    B, S = input_ids.shape

    # embedding-table gathers stay in XLA glue; everything else runs in ONE Pallas call
    x = (params["word_emb"][input_ids]
         + params["pos_emb"][jnp.arange(S)][None, :, :]
         + params["type_emb"][token_type_ids]).astype(jnp.float32)
    x = x.reshape(B * S, HIDDEN)

    # BERT extended attention mask: (1 - mask) * -10000, broadcast over heads/queries
    mask_bias = ((1.0 - attention_mask.astype(jnp.float32)) * -10000.0).reshape(B, 1, S)

    # fused: embedding LN + 2 transformer layers + pooler(tanh) + Dropout(id) + Linear(128,1)
    return bert_fused(x, mask_bias, params)                       # (B, 1)


if __name__ == "__main__":
    key = jax.random.PRNGKey(0)
    pkey, ikey, tkey = jax.random.split(key, 3)

    params = init_params(pkey)

    B, S = 2, 8
    input_ids = jax.random.randint(ikey, (B, S), 0, VOCAB, dtype=jnp.int32)
    token_type_ids = jax.random.randint(tkey, (B, S), 0, TYPE_VOCAB, dtype=jnp.int32)
    attention_mask = jnp.ones((B, S), dtype=jnp.int32).at[1, 6:].set(0)  # pad tail of ex. 1

    out = jax.jit(sts_bert_forward)(params, input_ids, attention_mask, token_type_ids)
    out = jax.block_until_ready(out)

    assert out.shape == (B, 1) and out.dtype == jnp.float32
    print("KERNEL_OK")
</pallas_src>

<mosaic_0001>
module attributes {stable_mosaic.version = 11 : i64} {
  func.func @_bert_kernel(%arg0: i32, %arg1: memref<16x128xf32, #tpu.memory_space<vmem>>, %arg2: memref<2x1x8xf32, #tpu.memory_space<vmem>>, %arg3: memref<8x128xf32, #tpu.memory_space<vmem>>, %arg4: memref<2x128x384xbf16, #tpu.memory_space<vmem>>, %arg5: memref<2x128x128xbf16, #tpu.memory_space<vmem>>, %arg6: memref<2x128x512xbf16, #tpu.memory_space<vmem>>, %arg7: memref<2x512x128xbf16, #tpu.memory_space<vmem>>, %arg8: memref<2x8x512xf32, #tpu.memory_space<vmem>>, %arg9: memref<128x128xbf16, #tpu.memory_space<vmem>>, %arg10: memref<2x1xf32, #tpu.memory_space<vmem>>, %arg11: memref<16x128xf32, #tpu.memory_space<vmem>>) attributes {dimension_semantics = [#tpu.dimension_semantics<parallel>], iteration_bounds = array<i64: 1>, scalar_prefetch = 0 : i64, scratch_operands = 1 : i64, tpu.core_type = #tpu.core_type<tc>, window_params = [{transform_indices = @transform_0, window_bounds = array<i64: 16, 128>}, {transform_indices = @transform_1, window_bounds = array<i64: 2, 1, 8>}, {pipeline_mode = #tpu.pipeline_mode<synchronous>, transform_indices = @transform_2, window_bounds = array<i64: 8, 128>}, {pipeline_mode = #tpu.pipeline_mode<synchronous>, transform_indices = @transform_3, window_bounds = array<i64: 2, 128, 384>}, {pipeline_mode = #tpu.pipeline_mode<synchronous>, transform_indices = @transform_4, window_bounds = array<i64: 2, 128, 128>}, {pipeline_mode = #tpu.pipeline_mode<synchronous>, transform_indices = @transform_5, window_bounds = array<i64: 2, 128, 512>}, {pipeline_mode = #tpu.pipeline_mode<synchronous>, transform_indices = @transform_6, window_bounds = array<i64: 2, 512, 128>}, {pipeline_mode = #tpu.pipeline_mode<synchronous>, transform_indices = @transform_7, window_bounds = array<i64: 2, 8, 512>}, {pipeline_mode = #tpu.pipeline_mode<synchronous>, transform_indices = @transform_8, window_bounds = array<i64: 128, 128>}, {transform_indices = @transform_9, window_bounds = array<i64: 2, 1>}]} {
    %c0 = arith.constant 0 : index
    %c0_0 = arith.constant 0 : index
    %0 = vector.load %arg3[%c0, %c0_0] : memref<8x128xf32, #tpu.memory_space<vmem>>, vector<8x128xf32>
    %c0_1 = arith.constant 0 : index
    %c0_2 = arith.constant 0 : index
    %1 = vector.load %arg1[%c0_1, %c0_2] : memref<16x128xf32, #tpu.memory_space<vmem>>, vector<16x128xf32>
    %2 = vector.extract_strided_slice %0 {offsets = [0, 0], sizes = [1, 128], strides = [1, 1]} : vector<8x128xf32> to vector<1x128xf32>
    %3 = vector.extract_strided_slice %0 {offsets = [1, 0], sizes = [1, 128], strides = [1, 1]} : vector<8x128xf32> to vector<1x128xf32>
    %cst = arith.constant dense<0.000000e+00> : vector<16xf32>
    %4 = vector.multi_reduction <add>, %1, %cst [1] : vector<16x128xf32> to vector<16xf32>
    %5 = vector.shape_cast %4 : vector<16xf32> to vector<16x1xf32>
    %cst_3 = arith.constant 1.280000e+02 : f32
    %6 = vector.broadcast %cst_3 : f32 to vector<16x1xf32>
    %7 = arith.divf %5, %6 : vector<16x1xf32>
    %8 = vector.broadcast %7 : vector<16x1xf32> to vector<16x128xf32>
    %9 = arith.subf %1, %8 : vector<16x128xf32>
    %10 = arith.mulf %9, %9 : vector<16x128xf32>
    %cst_4 = arith.constant dense<0.000000e+00> : vector<16xf32>
    %11 = vector.multi_reduction <add>, %10, %cst_4 [1] : vector<16x128xf32> to vector<16xf32>
    %12 = vector.shape_cast %11 : vector<16xf32> to vector<16x1xf32>
    %cst_5 = arith.constant 1.280000e+02 : f32
    %13 = vector.broadcast %cst_5 : f32 to vector<16x1xf32>
    %14 = arith.divf %12, %13 : vector<16x1xf32>
    %15 = vector.broadcast %7 : vector<16x1xf32> to vector<16x128xf32>
    %16 = arith.subf %1, %15 : vector<16x128xf32>
    %cst_6 = arith.constant 9.99999996E-13 : f32
    %17 = vector.broadcast %cst_6 : f32 to vector<16x1xf32>
    %18 = arith.addf %14, %17 : vector<16x1xf32>
    %19 = math.rsqrt %18 : vector<16x1xf32>
    %20 = vector.broadcast %19 : vector<16x1xf32> to vector<16x128xf32>
    %21 = arith.mulf %16, %20 : vector<16x128xf32>
    %22 = vector.broadcast %2 : vector<1x128xf32> to vector<16x128xf32>
    %23 = arith.mulf %21, %22 : vector<16x128xf32>
    %24 = vector.broadcast %3 : vector<1x128xf32> to vector<16x128xf32>
    %25 = arith.addf %23, %24 : vector<16x128xf32>
    %c0_7 = arith.constant 0 : index
    %c0_8 = arith.constant 0 : index
    %c0_9 = arith.constant 0 : index
    %26 = vector.load %arg2[%c0_7, %c0_8, %c0_9] : memref<2x1x8xf32, #tpu.memory_space<vmem>>, vector<2x1x8xf32>
    %c0_10 = arith.constant 0 : index
    %c0_11 = arith.constant 0 : index
    %c0_12 = arith.constant 0 : index
    %27 = vector.load %arg4[%c0_10, %c0_11, %c0_12] : memref<2x128x384xbf16, #tpu.memory_space<vmem>>, vector<1x128x384xbf16>
    %28 = vector.shape_cast %27 : vector<1x128x384xbf16> to vector<128x384xbf16>
    %c0_13 = arith.constant 0 : index
    %c0_14 = arith.constant 0 : index
    %c0_15 = arith.constant 0 : index
    %29 = vector.load %arg5[%c0_13, %c0_14, %c0_15] : memref<2x128x128xbf16, #tpu.memory_space<vmem>>, vector<1x128x128xbf16>
    %30 = vector.shape_cast %29 : vector<1x128x128xbf16> to vector<128x128xbf16>
    %c0_16 = arith.constant 0 : index
    %c0_17 = arith.constant 0 : index
    %c0_18 = arith.constant 0 : index
    %31 = vector.load %arg6[%c0_16, %c0_17, %c0_18] : memref<2x128x512xbf16, #tpu.memory_space<vmem>>, vector<1x128x512xbf16>
    %32 = vector.shape_cast %31 : vector<1x128x512xbf16> to vector<128x512xbf16>
    %c0_19 = arith.constant 0 : index
    %c0_20 = arith.constant 0 : index
    %c0_21 = arith.constant 0 : index
    %33 = vector.load %arg7[%c0_19, %c0_20, %c0_21] : memref<2x512x128xbf16, #tpu.memory_space<vmem>>, vector<1x512x128xbf16>
    %34 = vector.shape_cast %33 : vector<1x512x128xbf16> to vector<512x128xbf16>
    %c0_22 = arith.constant 0 : index
    %c0_23 = arith.constant 0 : index
    %c0_24 = arith.constant 0 : index
    %35 = vector.load %arg8[%c0_22, %c0_23, %c0_24] : memref<2x8x512xf32, #tpu.memory_space<vmem>>, vector<1x8x512xf32>
    %36 = vector.shape_cast %35 : vector<1x8x512xf32> to vector<8x512xf32>
    %37 = vector.extract_strided_slice %36 {offsets = [0, 0], sizes = [1, 384], strides = [1, 1]} : vector<8x512xf32> to vector<1x384xf32>
    %38 = vector.extract_strided_slice %36 {offsets = [1, 0], sizes = [1, 128], strides = [1, 1]} : vector<8x512xf32> to vector<1x128xf32>
    %39 = vector.extract_strided_slice %36 {offsets = [2, 0], sizes = [1, 512], strides = [1, 1]} : vector<8x512xf32> to vector<1x512xf32>
    %40 = vector.extract_strided_slice %36 {offsets = [3, 0], sizes = [1, 128], strides = [1, 1]} : vector<8x512xf32> to vector<1x128xf32>
    %41 = vector.extract_strided_slice %36 {offsets = [4, 0], sizes = [1, 128], strides = [1, 1]} : vector<8x512xf32> to vector<1x128xf32>
    %42 = vector.extract_strided_slice %36 {offsets = [5, 0], sizes = [1, 128], strides = [1, 1]} : vector<8x512xf32> to vector<1x128xf32>
    %43 = vector.extract_strided_slice %36 {offsets = [6, 0], sizes = [1, 128], strides = [1, 1]} : vector<8x512xf32> to vector<1x128xf32>
    %44 = vector.extract_strided_slice %36 {offsets = [7, 0], sizes = [1, 128], strides = [1, 1]} : vector<8x512xf32> to vector<1x128xf32>
    %45 = arith.truncf %25 : vector<16x128xf32> to vector<16x128xbf16>
    %cst_25 = arith.constant dense<0.000000e+00> : vector<16x384xf32>
    %46 = tpu.matmul %45, %28, %cst_25 {dimension_numbers = #tpu.dot_dimension_numbers<[1], [0], [0], [1], [0, 0, 1, 1], [], []>} : vector<16x128xbf16>, vector<128x384xbf16>, vector<16x384xf32> -> vector<16x384xf32>
    %47 = vector.broadcast %37 : vector<1x384xf32> to vector<16x384xf32>
    %48 = arith.addf %46, %47 : vector<16x384xf32>
    %cst_26 = arith.constant 0.000000e+00 : f32
    %49 = vector.broadcast %cst_26 : f32 to vector<16x128xf32>
    %50 = vector.extract_strided_slice %48 {offsets = [0, 0], sizes = [16, 64], strides = [1, 1]} : vector<16x384xf32> to vector<16x64xf32>
    %51 = vector.shape_cast %50 : vector<16x64xf32> to vector<2x8x64xf32>
    %52 = vector.extract_strided_slice %48 {offsets = [0, 128], sizes = [16, 64], strides = [1, 1]} : vector<16x384xf32> to vector<16x64xf32>
    %53 = vector.shape_cast %52 : vector<16x64xf32> to vector<2x8x64xf32>
    %54 = vector.extract_strided_slice %48 {offsets = [0, 256], sizes = [16, 64], strides = [1, 1]} : vector<16x384xf32> to vector<16x64xf32>
    %55 = vector.shape_cast %54 : vector<16x64xf32> to vector<2x8x64xf32>
    %56 = arith.truncf %51 : vector<2x8x64xf32> to vector<2x8x64xbf16>
    %57 = arith.truncf %53 : vector<2x8x64xf32> to vector<2x8x64xbf16>
    "tpu.trace_start"() <{level = 10 : i32, message = "bqd,bkd->bqk"}> : () -> ()
    %cst_27 = arith.constant dense<0.000000e+00> : vector<2x8x8xf32>
    %58 = tpu.matmul %56, %57, %cst_27 {dimension_numbers = #tpu.dot_dimension_numbers<[2], [2], [1], [1], [0, 0, 0, 1, 1, 1], [0], [0]>} : vector<2x8x64xbf16>, vector<2x8x64xbf16>, vector<2x8x8xf32> -> vector<2x8x8xf32>
    "tpu.trace_stop"() : () -> ()
    %59 = vector.broadcast %26 : vector<2x1x8xf32> to vector<2x8x8xf32>
    %60 = arith.addf %58, %59 : vector<2x8x8xf32>
    %cst_28 = arith.constant dense<0xFF800000> : vector<2x8xf32>
    %61 = vector.multi_reduction <maximumf>, %60, %cst_28 [2] : vector<2x8x8xf32> to vector<2x8xf32>
    %62 = vector.shape_cast %61 : vector<2x8xf32> to vector<2x8x1xf32>
    %63 = vector.broadcast %62 : vector<2x8x1xf32> to vector<2x8x8xf32>
    %64 = arith.subf %60, %63 : vector<2x8x8xf32>
    %65 = math.exp %64 : vector<2x8x8xf32>
    %cst_29 = arith.constant dense<0.000000e+00> : vector<2x8xf32>
    %66 = vector.multi_reduction <add>, %65, %cst_29 [2] : vector<2x8x8xf32> to vector<2x8xf32>
    %67 = vector.shape_cast %66 : vector<2x8xf32> to vector<2x8x1xf32>
    %68 = vector.broadcast %67 : vector<2x8x1xf32> to vector<2x8x8xf32>
    %69 = arith.divf %65, %68 : vector<2x8x8xf32>
    %70 = arith.truncf %69 : vector<2x8x8xf32> to vector<2x8x8xbf16>
    %71 = arith.truncf %55 : vector<2x8x64xf32> to vector<2x8x64xbf16>
    "tpu.trace_start"() <{level = 10 : i32, message = "bqk,bkd->bqd"}> : () -> ()
    %cst_30 = arith.constant dense<0.000000e+00> : vector<2x8x64xf32>
    %72 = tpu.matmul %70, %71, %cst_30 {dimension_numbers = #tpu.dot_dimension_numbers<[2], [1], [1], [2], [0, 0, 0, 1, 1, 2], [0], [0]>} : vector<2x8x8xbf16>, vector<2x8x64xbf16>, vector<2x8x64xf32> -> vector<2x8x64xf32>
    "tpu.trace_stop"() : () -> ()
    %73 = vector.shape_cast %72 : vector<2x8x64xf32> to vector<16x64xf32>
    %74 = arith.truncf %73 : vector<16x64xf32> to vector<16x64xbf16>
    %75 = vector.extract_strided_slice %30 {offsets = [0, 0], sizes = [64, 128], strides = [1, 1]} : vector<128x128xbf16> to vector<64x128xbf16>
    %cst_31 = arith.constant dense<0.000000e+00> : vector<16x128xf32>
    %76 = tpu.matmul %74, %75, %cst_31 {dimension_numbers = #tpu.dot_dimension_numbers<[1], [0], [0], [1], [0, 0, 1, 1], [], []>} : vector<16x64xbf16>, vector<64x128xbf16>, vector<16x128xf32> -> vector<16x128xf32>
    %77 = arith.addf %49, %76 : vector<16x128xf32>
    %78 = vector.extract_strided_slice %48 {offsets = [0, 64], sizes = [16, 64], strides = [1, 1]} : vector<16x384xf32> to vector<16x64xf32>
    %79 = vector.shape_cast %78 : vector<16x64xf32> to vector<2x8x64xf32>
    %80 = vector.extract_strided_slice %48 {offsets = [0, 192], sizes = [16, 64], strides = [1, 1]} : vector<16x384xf32> to vector<16x64xf32>
    %81 = vector.shape_cast %80 : vector<16x64xf32> to vector<2x8x64xf32>
    %82 = vector.extract_strided_slice %48 {offsets = [0, 320], sizes = [16, 64], strides = [1, 1]} : vector<16x384xf32> to vector<16x64xf32>
    %83 = vector.shape_cast %82 : vector<16x64xf32> to vector<2x8x64xf32>
    %84 = arith.truncf %79 : vector<2x8x64xf32> to vector<2x8x64xbf16>
    %85 = arith.truncf %81 : vector<2x8x64xf32> to vector<2x8x64xbf16>
    "tpu.trace_start"() <{level = 10 : i32, message = "bqd,bkd->bqk"}> : () -> ()
    %cst_32 = arith.constant dense<0.000000e+00> : vector<2x8x8xf32>
    %86 = tpu.matmul %84, %85, %cst_32 {dimension_numbers = #tpu.dot_dimension_numbers<[2], [2], [1], [1], [0, 0, 0, 1, 1, 1], [0], [0]>} : vector<2x8x64xbf16>, vector<2x8x64xbf16>, vector<2x8x8xf32> -> vector<2x8x8xf32>
    "tpu.trace_stop"() : () -> ()
    %87 = vector.broadcast %26 : vector<2x1x8xf32> to vector<2x8x8xf32>
    %88 = arith.addf %86, %87 : vector<2x8x8xf32>
    %cst_33 = arith.constant dense<0xFF800000> : vector<2x8xf32>
    %89 = vector.multi_reduction <maximumf>, %88, %cst_33 [2] : vector<2x8x8xf32> to vector<2x8xf32>
    %90 = vector.shape_cast %89 : vector<2x8xf32> to vector<2x8x1xf32>
    %91 = vector.broadcast %90 : vector<2x8x1xf32> to vector<2x8x8xf32>
    %92 = arith.subf %88, %91 : vector<2x8x8xf32>
    %93 = math.exp %92 : vector<2x8x8xf32>
    %cst_34 = arith.constant dense<0.000000e+00> : vector<2x8xf32>
    %94 = vector.multi_reduction <add>, %93, %cst_34 [2] : vector<2x8x8xf32> to vector<2x8xf32>
    %95 = vector.shape_cast %94 : vector<2x8xf32> to vector<2x8x1xf32>
    %96 = vector.broadcast %95 : vector<2x8x1xf32> to vector<2x8x8xf32>
    %97 = arith.divf %93, %96 : vector<2x8x8xf32>
    %98 = arith.truncf %97 : vector<2x8x8xf32> to vector<2x8x8xbf16>
    %99 = arith.truncf %83 : vector<2x8x64xf32> to vector<2x8x64xbf16>
    "tpu.trace_start"() <{level = 10 : i32, message = "bqk,bkd->bqd"}> : () -> ()
    %cst_35 = arith.constant dense<0.000000e+00> : vector<2x8x64xf32>
    %100 = tpu.matmul %98, %99, %cst_35 {dimension_numbers = #tpu.dot_dimension_numbers<[2], [1], [1], [2], [0, 0, 0, 1, 1, 2], [0], [0]>} : vector<2x8x8xbf16>, vector<2x8x64xbf16>, vector<2x8x64xf32> -> vector<2x8x64xf32>
    "tpu.trace_stop"() : () -> ()
    %101 = vector.shape_cast %100 : vector<2x8x64xf32> to vector<16x64xf32>
    %102 = arith.truncf %101 : vector<16x64xf32> to vector<16x64xbf16>
    %103 = vector.extract_strided_slice %30 {offsets = [64, 0], sizes = [64, 128], strides = [1, 1]} : vector<128x128xbf16> to vector<64x128xbf16>
    %cst_36 = arith.constant dense<0.000000e+00> : vector<16x128xf32>
    %104 = tpu.matmul %102, %103, %cst_36 {dimension_numbers = #tpu.dot_dimension_numbers<[1], [0], [0], [1], [0, 0, 1, 1], [], []>} : vector<16x64xbf16>, vector<64x128xbf16>, vector<16x128xf32> -> vector<16x128xf32>
    %105 = arith.addf %77, %104 : vector<16x128xf32>
    %106 = vector.broadcast %38 : vector<1x128xf32> to vector<16x128xf32>
    %107 = arith.addf %105, %106 : vector<16x128xf32>
    %108 = arith.addf %107, %25 : vector<16x128xf32>
    %cst_37 = arith.constant dense<0.000000e+00> : vector<16xf32>
    %109 = vector.multi_reduction <add>, %108, %cst_37 [1] : vector<16x128xf32> to vector<16xf32>
    %110 = vector.shape_cast %109 : vector<16xf32> to vector<16x1xf32>
    %cst_38 = arith.constant 1.280000e+02 : f32
    %111 = vector.broadcast %cst_38 : f32 to vector<16x1xf32>
    %112 = arith.divf %110, %111 : vector<16x1xf32>
    %113 = vector.broadcast %112 : vector<16x1xf32> to vector<16x128xf32>
    %114 = arith.subf %108, %113 : vector<16x128xf32>
    %115 = arith.mulf %114, %114 : vector<16x128xf32>
    %cst_39 = arith.constant dense<0.000000e+00> : vector<16xf32>
    %116 = vector.multi_reduction <add>, %115, %cst_39 [1] : vector<16x128xf32> to vector<16xf32>
    %117 = vector.shape_cast %116 : vector<16xf32> to vector<16x1xf32>
    %cst_40 = arith.constant 1.280000e+02 : f32
    %118 = vector.broadcast %cst_40 : f32 to vector<16x1xf32>
    %119 = arith.divf %117, %118 : vector<16x1xf32>
    %120 = vector.broadcast %112 : vector<16x1xf32> to vector<16x128xf32>
    %121 = arith.subf %108, %120 : vector<16x128xf32>
    %cst_41 = arith.constant 9.99999996E-13 : f32
    %122 = vector.broadcast %cst_41 : f32 to vector<16x1xf32>
    %123 = arith.addf %119, %122 : vector<16x1xf32>
    %124 = math.rsqrt %123 : vector<16x1xf32>
    %125 = vector.broadcast %124 : vector<16x1xf32> to vector<16x128xf32>
    %126 = arith.mulf %121, %125 : vector<16x128xf32>
    %127 = vector.broadcast %41 : vector<1x128xf32> to vector<16x128xf32>
    %128 = arith.mulf %126, %127 : vector<16x128xf32>
    %129 = vector.broadcast %42 : vector<1x128xf32> to vector<16x128xf32>
    %130 = arith.addf %128, %129 : vector<16x128xf32>
    %131 = arith.truncf %130 : vector<16x128xf32> to vector<16x128xbf16>
    %cst_42 = arith.constant dense<0.000000e+00> : vector<16x512xf32>
    %132 = tpu.matmul %131, %32, %cst_42 {dimension_numbers = #tpu.dot_dimension_numbers<[1], [0], [0], [1], [0, 0, 1, 1], [], []>} : vector<16x128xbf16>, vector<128x512xbf16>, vector<16x512xf32> -> vector<16x512xf32>
    %133 = vector.broadcast %39 : vector<1x512xf32> to vector<16x512xf32>
    %134 = arith.addf %132, %133 : vector<16x512xf32>
    %135 = arith.mulf %134, %134 : vector<16x512xf32>
    %136 = arith.mulf %134, %135 : vector<16x512xf32>
    %cst_43 = arith.constant 4.471500e-02 : f32
    %137 = vector.broadcast %cst_43 : f32 to vector<16x512xf32>
    %138 = arith.mulf %137, %136 : vector<16x512xf32>
    %139 = arith.addf %134, %138 : vector<16x512xf32>
    %cst_44 = arith.constant 0.797884583 : f32
    %140 = vector.broadcast %cst_44 : f32 to vector<16x512xf32>
    %141 = arith.mulf %140, %139 : vector<16x512xf32>
    %142 = math.tanh %141 : vector<16x512xf32>
    %cst_45 = arith.constant 1.000000e+00 : f32
    %143 = vector.broadcast %cst_45 : f32 to vector<16x512xf32>
    %144 = arith.addf %143, %142 : vector<16x512xf32>
    %cst_46 = arith.constant 5.000000e-01 : f32
    %145 = vector.broadcast %cst_46 : f32 to vector<16x512xf32>
    %146 = arith.mulf %145, %144 : vector<16x512xf32>
    %147 = arith.mulf %134, %146 : vector<16x512xf32>
    %148 = arith.truncf %147 : vector<16x512xf32> to vector<16x512xbf16>
    %cst_47 = arith.constant dense<0.000000e+00> : vector<16x128xf32>
    %149 = tpu.matmul %148, %34, %cst_47 {dimension_numbers = #tpu.dot_dimension_numbers<[1], [0], [0], [1], [0, 0, 1, 1], [], []>} : vector<16x512xbf16>, vector<512x128xbf16>, vector<16x128xf32> -> vector<16x128xf32>
    %150 = vector.broadcast %40 : vector<1x128xf32> to vector<16x128xf32>
    %151 = arith.addf %149, %150 : vector<16x128xf32>
    %152 = arith.addf %151, %130 : vector<16x128xf32>
    %cst_48 = arith.constant dense<0.000000e+00> : vector<16xf32>
    %153 = vector.multi_reduction <add>, %152, %cst_48 [1] : vector<16x128xf32> to vector<16xf32>
    %154 = vector.shape_cast %153 : vector<16xf32> to vector<16x1xf32>
    %cst_49 = arith.constant 1.280000e+02 : f32
    %155 = vector.broadcast %cst_49 : f32 to vector<16x1xf32>
    %156 = arith.divf %154, %155 : vector<16x1xf32>
    %157 = vector.broadcast %156 : vector<16x1xf32> to vector<16x128xf32>
    %158 = arith.subf %152, %157 : vector<16x128xf32>
    %159 = arith.mulf %158, %158 : vector<16x128xf32>
    %cst_50 = arith.constant dense<0.000000e+00> : vector<16xf32>
    %160 = vector.multi_reduction <add>, %159, %cst_50 [1] : vector<16x128xf32> to vector<16xf32>
    %161 = vector.shape_cast %160 : vector<16xf32> to vector<16x1xf32>
    %cst_51 = arith.constant 1.280000e+02 : f32
    %162 = vector.broadcast %cst_51 : f32 to vector<16x1xf32>
    %163 = arith.divf %161, %162 : vector<16x1xf32>
    %164 = vector.broadcast %156 : vector<16x1xf32> to vector<16x128xf32>
    %165 = arith.subf %152, %164 : vector<16x128xf32>
    %cst_52 = arith.constant 9.99999996E-13 : f32
    %166 = vector.broadcast %cst_52 : f32 to vector<16x1xf32>
    %167 = arith.addf %163, %166 : vector<16x1xf32>
    %168 = math.rsqrt %167 : vector<16x1xf32>
    %169 = vector.broadcast %168 : vector<16x1xf32> to vector<16x128xf32>
    %170 = arith.mulf %165, %169 : vector<16x128xf32>
    %171 = vector.broadcast %43 : vector<1x128xf32> to vector<16x128xf32>
    %172 = arith.mulf %170, %171 : vector<16x128xf32>
    %173 = vector.broadcast %44 : vector<1x128xf32> to vector<16x128xf32>
    %174 = arith.addf %172, %173 : vector<16x128xf32>
    %c1 = arith.constant 1 : index
    %c0_53 = arith.constant 0 : index
    %c0_54 = arith.constant 0 : index
    %175 = vector.load %arg4[%c1, %c0_53, %c0_54] : memref<2x128x384xbf16, #tpu.memory_space<vmem>>, vector<1x128x384xbf16>
    %176 = vector.shape_cast %175 : vector<1x128x384xbf16> to vector<128x384xbf16>
    %c1_55 = arith.constant 1 : index
    %c0_56 = arith.constant 0 : index
    %c0_57 = arith.constant 0 : index
    %177 = vector.load %arg5[%c1_55, %c0_56, %c0_57] : memref<2x128x128xbf16, #tpu.memory_space<vmem>>, vector<1x128x128xbf16>
    %178 = vector.shape_cast %177 : vector<1x128x128xbf16> to vector<128x128xbf16>
    %c1_58 = arith.constant 1 : index
    %c0_59 = arith.constant 0 : index
    %c0_60 = arith.constant 0 : index
    %179 = vector.load %arg6[%c1_58, %c0_59, %c0_60] : memref<2x128x512xbf16, #tpu.memory_space<vmem>>, vector<1x128x512xbf16>
    %180 = vector.shape_cast %179 : vector<1x128x512xbf16> to vector<128x512xbf16>
    %c1_61 = arith.constant 1 : index
    %c0_62 = arith.constant 0 : index
    %c0_63 = arith.constant 0 : index
    %181 = vector.load %arg7[%c1_61, %c0_62, %c0_63] : memref<2x512x128xbf16, #tpu.memory_space<vmem>>, vector<1x512x128xbf16>
    %182 = vector.shape_cast %181 : vector<1x512x128xbf16> to vector<512x128xbf16>
    %c1_64 = arith.constant 1 : index
    %c0_65 = arith.constant 0 : index
    %c0_66 = arith.constant 0 : index
    %183 = vector.load %arg8[%c1_64, %c0_65, %c0_66] : memref<2x8x512xf32, #tpu.memory_space<vmem>>, vector<1x8x512xf32>
    %184 = vector.shape_cast %183 : vector<1x8x512xf32> to vector<8x512xf32>
    %185 = vector.extract_strided_slice %184 {offsets = [0, 0], sizes = [1, 384], strides = [1, 1]} : vector<8x512xf32> to vector<1x384xf32>
    %186 = vector.extract_strided_slice %184 {offsets = [1, 0], sizes = [1, 128], strides = [1, 1]} : vector<8x512xf32> to vector<1x128xf32>
    %187 = vector.extract_strided_slice %184 {offsets = [2, 0], sizes = [1, 512], strides = [1, 1]} : vector<8x512xf32> to vector<1x512xf32>
    %188 = vector.extract_strided_slice %184 {offsets = [3, 0], sizes = [1, 128], strides = [1, 1]} : vector<8x512xf32> to vector<1x128xf32>
    %189 = vector.extract_strided_slice %184 {offsets = [4, 0], sizes = [1, 128], strides = [1, 1]} : vector<8x512xf32> to vector<1x128xf32>
    %190 = vector.extract_strided_slice %184 {offsets = [5, 0], sizes = [1, 128], strides = [1, 1]} : vector<8x512xf32> to vector<1x128xf32>
    %191 = vector.extract_strided_slice %184 {offsets = [6, 0], sizes = [1, 128], strides = [1, 1]} : vector<8x512xf32> to vector<1x128xf32>
    %192 = vector.extract_strided_slice %184 {offsets = [7, 0], sizes = [1, 128], strides = [1, 1]} : vector<8x512xf32> to vector<1x128xf32>
    %193 = arith.truncf %174 : vector<16x128xf32> to vector<16x128xbf16>
    %cst_67 = arith.constant dense<0.000000e+00> : vector<16x384xf32>
    %194 = tpu.matmul %193, %176, %cst_67 {dimension_numbers = #tpu.dot_dimension_numbers<[1], [0], [0], [1], [0, 0, 1, 1], [], []>} : vector<16x128xbf16>, vector<128x384xbf16>, vector<16x384xf32> -> vector<16x384xf32>
    %195 = vector.broadcast %185 : vector<1x384xf32> to vector<16x384xf32>
    %196 = arith.addf %194, %195 : vector<16x384xf32>
    %cst_68 = arith.constant 0.000000e+00 : f32
    %197 = vector.broadcast %cst_68 : f32 to vector<16x128xf32>
    %198 = vector.extract_strided_slice %196 {offsets = [0, 0], sizes = [16, 64], strides = [1, 1]} : vector<16x384xf32> to vector<16x64xf32>
    %199 = vector.shape_cast %198 : vector<16x64xf32> to vector<2x8x64xf32>
    %200 = vector.extract_strided_slice %196 {offsets = [0, 128], sizes = [16, 64], strides = [1, 1]} : vector<16x384xf32> to vector<16x64xf32>
    %201 = vector.shape_cast %200 : vector<16x64xf32> to vector<2x8x64xf32>
    %202 = vector.extract_strided_slice %196 {offsets = [0, 256], sizes = [16, 64], strides = [1, 1]} : vector<16x384xf32> to vector<16x64xf32>
    %203 = vector.shape_cast %202 : vector<16x64xf32> to vector<2x8x64xf32>
    %204 = arith.truncf %199 : vector<2x8x64xf32> to vector<2x8x64xbf16>
    %205 = arith.truncf %201 : vector<2x8x64xf32> to vector<2x8x64xbf16>
    "tpu.trace_start"() <{level = 10 : i32, message = "bqd,bkd->bqk"}> : () -> ()
    %cst_69 = arith.constant dense<0.000000e+00> : vector<2x8x8xf32>
    %206 = tpu.matmul %204, %205, %cst_69 {dimension_numbers = #tpu.dot_dimension_numbers<[2], [2], [1], [1], [0, 0, 0, 1, 1, 1], [0], [0]>} : vector<2x8x64xbf16>, vector<2x8x64xbf16>, vector<2x8x8xf32> -> vector<2x8x8xf32>
    "tpu.trace_stop"() : () -> ()
    %207 = vector.broadcast %26 : vector<2x1x8xf32> to vector<2x8x8xf32>
    %208 = arith.addf %206, %207 : vector<2x8x8xf32>
    %cst_70 = arith.constant dense<0xFF800000> : vector<2x8xf32>
    %209 = vector.multi_reduction <maximumf>, %208, %cst_70 [2] : vector<2x8x8xf32> to vector<2x8xf32>
    %210 = vector.shape_cast %209 : vector<2x8xf32> to vector<2x8x1xf32>
    %211 = vector.broadcast %210 : vector<2x8x1xf32> to vector<2x8x8xf32>
    %212 = arith.subf %208, %211 : vector<2x8x8xf32>
    %213 = math.exp %212 : vector<2x8x8xf32>
    %cst_71 = arith.constant dense<0.000000e+00> : vector<2x8xf32>
    %214 = vector.multi_reduction <add>, %213, %cst_71 [2] : vector<2x8x8xf32> to vector<2x8xf32>
    %215 = vector.shape_cast %214 : vector<2x8xf32> to vector<2x8x1xf32>
    %216 = vector.broadcast %215 : vector<2x8x1xf32> to vector<2x8x8xf32>
    %217 = arith.divf %213, %216 : vector<2x8x8xf32>
    %218 = arith.truncf %217 : vector<2x8x8xf32> to vector<2x8x8xbf16>
    %219 = arith.truncf %203 : vector<2x8x64xf32> to vector<2x8x64xbf16>
    "tpu.trace_start"() <{level = 10 : i32, message = "bqk,bkd->bqd"}> : () -> ()
    %cst_72 = arith.constant dense<0.000000e+00> : vector<2x8x64xf32>
    %220 = tpu.matmul %218, %219, %cst_72 {dimension_numbers = #tpu.dot_dimension_numbers<[2], [1], [1], [2], [0, 0, 0, 1, 1, 2], [0], [0]>} : vector<2x8x8xbf16>, vector<2x8x64xbf16>, vector<2x8x64xf32> -> vector<2x8x64xf32>
    "tpu.trace_stop"() : () -> ()
    %221 = vector.shape_cast %220 : vector<2x8x64xf32> to vector<16x64xf32>
    %222 = arith.truncf %221 : vector<16x64xf32> to vector<16x64xbf16>
    %223 = vector.extract_strided_slice %178 {offsets = [0, 0], sizes = [64, 128], strides = [1, 1]} : vector<128x128xbf16> to vector<64x128xbf16>
    %cst_73 = arith.constant dense<0.000000e+00> : vector<16x128xf32>
    %224 = tpu.matmul %222, %223, %cst_73 {dimension_numbers = #tpu.dot_dimension_numbers<[1], [0], [0], [1], [0, 0, 1, 1], [], []>} : vector<16x64xbf16>, vector<64x128xbf16>, vector<16x128xf32> -> vector<16x128xf32>
    %225 = arith.addf %197, %224 : vector<16x128xf32>
    %226 = vector.extract_strided_slice %196 {offsets = [0, 64], sizes = [16, 64], strides = [1, 1]} : vector<16x384xf32> to vector<16x64xf32>
    %227 = vector.shape_cast %226 : vector<16x64xf32> to vector<2x8x64xf32>
    %228 = vector.extract_strided_slice %196 {offsets = [0, 192], sizes = [16, 64], strides = [1, 1]} : vector<16x384xf32> to vector<16x64xf32>
    %229 = vector.shape_cast %228 : vector<16x64xf32> to vector<2x8x64xf32>
    %230 = vector.extract_strided_slice %196 {offsets = [0, 320], sizes = [16, 64], strides = [1, 1]} : vector<16x384xf32> to vector<16x64xf32>
    %231 = vector.shape_cast %230 : vector<16x64xf32> to vector<2x8x64xf32>
    %232 = arith.truncf %227 : vector<2x8x64xf32> to vector<2x8x64xbf16>
    %233 = arith.truncf %229 : vector<2x8x64xf32> to vector<2x8x64xbf16>
    "tpu.trace_start"() <{level = 10 : i32, message = "bqd,bkd->bqk"}> : () -> ()
    %cst_74 = arith.constant dense<0.000000e+00> : vector<2x8x8xf32>
    %234 = tpu.matmul %232, %233, %cst_74 {dimension_numbers = #tpu.dot_dimension_numbers<[2], [2], [1], [1], [0, 0, 0, 1, 1, 1], [0], [0]>} : vector<2x8x64xbf16>, vector<2x8x64xbf16>, vector<2x8x8xf32> -> vector<2x8x8xf32>
    "tpu.trace_stop"() : () -> ()
    %235 = vector.broadcast %26 : vector<2x1x8xf32> to vector<2x8x8xf32>
    %236 = arith.addf %234, %235 : vector<2x8x8xf32>
    %cst_75 = arith.constant dense<0xFF800000> : vector<2x8xf32>
    %237 = vector.multi_reduction <maximumf>, %236, %cst_75 [2] : vector<2x8x8xf32> to vector<2x8xf32>
    %238 = vector.shape_cast %237 : vector<2x8xf32> to vector<2x8x1xf32>
    %239 = vector.broadcast %238 : vector<2x8x1xf32> to vector<2x8x8xf32>
    %240 = arith.subf %236, %239 : vector<2x8x8xf32>
    %241 = math.exp %240 : vector<2x8x8xf32>
    %cst_76 = arith.constant dense<0.000000e+00> : vector<2x8xf32>
    %242 = vector.multi_reduction <add>, %241, %cst_76 [2] : vector<2x8x8xf32> to vector<2x8xf32>
    %243 = vector.shape_cast %242 : vector<2x8xf32> to vector<2x8x1xf32>
    %244 = vector.broadcast %243 : vector<2x8x1xf32> to vector<2x8x8xf32>
    %245 = arith.divf %241, %244 : vector<2x8x8xf32>
    %246 = arith.truncf %245 : vector<2x8x8xf32> to vector<2x8x8xbf16>
    %247 = arith.truncf %231 : vector<2x8x64xf32> to vector<2x8x64xbf16>
    "tpu.trace_start"() <{level = 10 : i32, message = "bqk,bkd->bqd"}> : () -> ()
    %cst_77 = arith.constant dense<0.000000e+00> : vector<2x8x64xf32>
    %248 = tpu.matmul %246, %247, %cst_77 {dimension_numbers = #tpu.dot_dimension_numbers<[2], [1], [1], [2], [0, 0, 0, 1, 1, 2], [0], [0]>} : vector<2x8x8xbf16>, vector<2x8x64xbf16>, vector<2x8x64xf32> -> vector<2x8x64xf32>
    "tpu.trace_stop"() : () -> ()
    %249 = vector.shape_cast %248 : vector<2x8x64xf32> to vector<16x64xf32>
    %250 = arith.truncf %249 : vector<16x64xf32> to vector<16x64xbf16>
    %251 = vector.extract_strided_slice %178 {offsets = [64, 0], sizes = [64, 128], strides = [1, 1]} : vector<128x128xbf16> to vector<64x128xbf16>
    %cst_78 = arith.constant dense<0.000000e+00> : vector<16x128xf32>
    %252 = tpu.matmul %250, %251, %cst_78 {dimension_numbers = #tpu.dot_dimension_numbers<[1], [0], [0], [1], [0, 0, 1, 1], [], []>} : vector<16x64xbf16>, vector<64x128xbf16>, vector<16x128xf32> -> vector<16x128xf32>
    %253 = arith.addf %225, %252 : vector<16x128xf32>
    %254 = vector.broadcast %186 : vector<1x128xf32> to vector<16x128xf32>
    %255 = arith.addf %253, %254 : vector<16x128xf32>
    %256 = arith.addf %255, %174 : vector<16x128xf32>
    %cst_79 = arith.constant dense<0.000000e+00> : vector<16xf32>
    %257 = vector.multi_reduction <add>, %256, %cst_79 [1] : vector<16x128xf32> to vector<16xf32>
    %258 = vector.shape_cast %257 : vector<16xf32> to vector<16x1xf32>
    %cst_80 = arith.constant 1.280000e+02 : f32
    %259 = vector.broadcast %cst_80 : f32 to vector<16x1xf32>
    %260 = arith.divf %258, %259 : vector<16x1xf32>
    %261 = vector.broadcast %260 : vector<16x1xf32> to vector<16x128xf32>
    %262 = arith.subf %256, %261 : vector<16x128xf32>
    %263 = arith.mulf %262, %262 : vector<16x128xf32>
    %cst_81 = arith.constant dense<0.000000e+00> : vector<16xf32>
    %264 = vector.multi_reduction <add>, %263, %cst_81 [1] : vector<16x128xf32> to vector<16xf32>
    %265 = vector.shape_cast %264 : vector<16xf32> to vector<16x1xf32>
    %cst_82 = arith.constant 1.280000e+02 : f32
    %266 = vector.broadcast %cst_82 : f32 to vector<16x1xf32>
    %267 = arith.divf %265, %266 : vector<16x1xf32>
    %268 = vector.broadcast %260 : vector<16x1xf32> to vector<16x128xf32>
    %269 = arith.subf %256, %268 : vector<16x128xf32>
    %cst_83 = arith.constant 9.99999996E-13 : f32
    %270 = vector.broadcast %cst_83 : f32 to vector<16x1xf32>
    %271 = arith.addf %267, %270 : vector<16x1xf32>
    %272 = math.rsqrt %271 : vector<16x1xf32>
    %273 = vector.broadcast %272 : vector<16x1xf32> to vector<16x128xf32>
    %274 = arith.mulf %269, %273 : vector<16x128xf32>
    %275 = vector.broadcast %189 : vector<1x128xf32> to vector<16x128xf32>
    %276 = arith.mulf %274, %275 : vector<16x128xf32>
    %277 = vector.broadcast %190 : vector<1x128xf32> to vector<16x128xf32>
    %278 = arith.addf %276, %277 : vector<16x128xf32>
    %279 = arith.truncf %278 : vector<16x128xf32> to vector<16x128xbf16>
    %cst_84 = arith.constant dense<0.000000e+00> : vector<16x512xf32>
    %280 = tpu.matmul %279, %180, %cst_84 {dimension_numbers = #tpu.dot_dimension_numbers<[1], [0], [0], [1], [0, 0, 1, 1], [], []>} : vector<16x128xbf16>, vector<128x512xbf16>, vector<16x512xf32> -> vector<16x512xf32>
    %281 = vector.broadcast %187 : vector<1x512xf32> to vector<16x512xf32>
    %282 = arith.addf %280, %281 : vector<16x512xf32>
    %283 = arith.mulf %282, %282 : vector<16x512xf32>
    %284 = arith.mulf %282, %283 : vector<16x512xf32>
    %cst_85 = arith.constant 4.471500e-02 : f32
    %285 = vector.broadcast %cst_85 : f32 to vector<16x512xf32>
    %286 = arith.mulf %285, %284 : vector<16x512xf32>
    %287 = arith.addf %282, %286 : vector<16x512xf32>
    %cst_86 = arith.constant 0.797884583 : f32
    %288 = vector.broadcast %cst_86 : f32 to vector<16x512xf32>
    %289 = arith.mulf %288, %287 : vector<16x512xf32>
    %290 = math.tanh %289 : vector<16x512xf32>
    %cst_87 = arith.constant 1.000000e+00 : f32
    %291 = vector.broadcast %cst_87 : f32 to vector<16x512xf32>
    %292 = arith.addf %291, %290 : vector<16x512xf32>
    %cst_88 = arith.constant 5.000000e-01 : f32
    %293 = vector.broadcast %cst_88 : f32 to vector<16x512xf32>
    %294 = arith.mulf %293, %292 : vector<16x512xf32>
    %295 = arith.mulf %282, %294 : vector<16x512xf32>
    %296 = arith.truncf %295 : vector<16x512xf32> to vector<16x512xbf16>
    %cst_89 = arith.constant dense<0.000000e+00> : vector<16x128xf32>
    %297 = tpu.matmul %296, %182, %cst_89 {dimension_numbers = #tpu.dot_dimension_numbers<[1], [0], [0], [1], [0, 0, 1, 1], [], []>} : vector<16x512xbf16>, vector<512x128xbf16>, vector<16x128xf32> -> vector<16x128xf32>
    %298 = vector.broadcast %188 : vector<1x128xf32> to vector<16x128xf32>
    %299 = arith.addf %297, %298 : vector<16x128xf32>
    %300 = arith.addf %299, %278 : vector<16x128xf32>
    %cst_90 = arith.constant dense<0.000000e+00> : vector<16xf32>
    %301 = vector.multi_reduction <add>, %300, %cst_90 [1] : vector<16x128xf32> to vector<16xf32>
    %302 = vector.shape_cast %301 : vector<16xf32> to vector<16x1xf32>
    %cst_91 = arith.constant 1.280000e+02 : f32
    %303 = vector.broadcast %cst_91 : f32 to vector<16x1xf32>
    %304 = arith.divf %302, %303 : vector<16x1xf32>
    %305 = vector.broadcast %304 : vector<16x1xf32> to vector<16x128xf32>
    %306 = arith.subf %300, %305 : vector<16x128xf32>
    %307 = arith.mulf %306, %306 : vector<16x128xf32>
    %cst_92 = arith.constant dense<0.000000e+00> : vector<16xf32>
    %308 = vector.multi_reduction <add>, %307, %cst_92 [1] : vector<16x128xf32> to vector<16xf32>
    %309 = vector.shape_cast %308 : vector<16xf32> to vector<16x1xf32>
    %cst_93 = arith.constant 1.280000e+02 : f32
    %310 = vector.broadcast %cst_93 : f32 to vector<16x1xf32>
    %311 = arith.divf %309, %310 : vector<16x1xf32>
    %312 = vector.broadcast %304 : vector<16x1xf32> to vector<16x128xf32>
    %313 = arith.subf %300, %312 : vector<16x128xf32>
    %cst_94 = arith.constant 9.99999996E-13 : f32
    %314 = vector.broadcast %cst_94 : f32 to vector<16x1xf32>
    %315 = arith.addf %311, %314 : vector<16x1xf32>
    %316 = math.rsqrt %315 : vector<16x1xf32>
    %317 = vector.broadcast %316 : vector<16x1xf32> to vector<16x128xf32>
    %318 = arith.mulf %313, %317 : vector<16x128xf32>
    %319 = vector.broadcast %191 : vector<1x128xf32> to vector<16x128xf32>
    %320 = arith.mulf %318, %319 : vector<16x128xf32>
    %321 = vector.broadcast %192 : vector<1x128xf32> to vector<16x128xf32>
    %322 = arith.addf %320, %321 : vector<16x128xf32>
    %c0_95 = arith.constant 0 : index
    %c0_96 = arith.constant 0 : index
    %323 = vector.load %arg11[%c0_95, %c0_96] : memref<16x128xf32, #tpu.memory_space<vmem>>, vector<16x128xf32>
    tpu.vector_store %arg11[%c0_95, %c0_96], %322 {strides = array<i32>} : memref<16x128xf32, #tpu.memory_space<vmem>>, vector<16x128xf32>,
    %c0_97 = arith.constant 0 : index
    %c0_98 = arith.constant 0 : index
    %324 = tpu.strided_load %arg11[%c0_97, %c0_98] {strides = array<i32: 8, 1>} : memref<16x128xf32, #tpu.memory_space<vmem>>, vector<2x128xf32>
    %325 = arith.truncf %324 : vector<2x128xf32> to vector<2x128xbf16>
    %c0_99 = arith.constant 0 : index
    %c0_100 = arith.constant 0 : index
    %326 = vector.load %arg9[%c0_99, %c0_100] : memref<128x128xbf16, #tpu.memory_space<vmem>>, vector<128x128xbf16>
    %cst_101 = arith.constant dense<0.000000e+00> : vector<2x128xf32>
    %327 = tpu.matmul %325, %326, %cst_101 {dimension_numbers = #tpu.dot_dimension_numbers<[1], [0], [0], [1], [0, 0, 1, 1], [], []>} : vector<2x128xbf16>, vector<128x128xbf16>, vector<2x128xf32> -> vector<2x128xf32>
    %328 = vector.extract_strided_slice %0 {offsets = [2, 0], sizes = [1, 128], strides = [1, 1]} : vector<8x128xf32> to vector<1x128xf32>
    %329 = vector.broadcast %328 : vector<1x128xf32> to vector<2x128xf32>
    %330 = arith.addf %327, %329 : vector<2x128xf32>
    %331 = math.tanh %330 : vector<2x128xf32>
    %332 = vector.extract_strided_slice %0 {offsets = [3, 0], sizes = [1, 128], strides = [1, 1]} : vector<8x128xf32> to vector<1x128xf32>
    %333 = vector.broadcast %332 : vector<1x128xf32> to vector<2x128xf32>
    %334 = arith.mulf %331, %333 : vector<2x128xf32>
    %cst_102 = arith.constant dense<0.000000e+00> : vector<2xf32>
    %335 = vector.multi_reduction <add>, %334, %cst_102 [1] : vector<2x128xf32> to vector<2xf32>
    %336 = vector.shape_cast %335 : vector<2xf32> to vector<2x1xf32>
    %337 = vector.extract_strided_slice %0 {offsets = [4, 0], sizes = [1, 1], strides = [1, 1]} : vector<8x128xf32> to vector<1x1xf32>
    %338 = vector.broadcast %337 : vector<1x1xf32> to vector<2x1xf32>
    %339 = arith.addf %336, %338 : vector<2x1xf32>
    %c0_103 = arith.constant 0 : index
    %c0_104 = arith.constant 0 : index
    %340 = vector.load %arg10[%c0_103, %c0_104] : memref<2x1xf32, #tpu.memory_space<vmem>>, vector<2x1xf32>
    tpu.vector_store %arg10[%c0_103, %c0_104], %339 {strides = array<i32>} : memref<2x1xf32, #tpu.memory_space<vmem>>, vector<2x1xf32>,
    return
  }
  func.func @transform_0(%arg0: i32) -> (i32, i32) {
    %c0_i32 = arith.constant 0 : i32
    %c0_i32_0 = arith.constant 0 : i32
    return %arg0, %c0_i32 : i32, i32
  }
  func.func @transform_1(%arg0: i32) -> (i32, i32, i32) {
    %c0_i32 = arith.constant 0 : i32
    %c0_i32_0 = arith.constant 0 : i32
    %c0_i32_1 = arith.constant 0 : i32
    return %arg0, %c0_i32, %c0_i32_0 : i32, i32, i32
  }
  func.func @transform_2(%arg0: i32) -> (i32, i32) {
    %c0_i32 = arith.constant 0 : i32
    %c0_i32_0 = arith.constant 0 : i32
    %c0_i32_1 = arith.constant 0 : i32
    return %c0_i32, %c0_i32_0 : i32, i32
  }
  func.func @transform_3(%arg0: i32) -> (i32, i32, i32) {
    %c0_i32 = arith.constant 0 : i32
    %c0_i32_0 = arith.constant 0 : i32
    %c0_i32_1 = arith.constant 0 : i32
    %c0_i32_2 = arith.constant 0 : i32
    return %c0_i32, %c0_i32_0, %c0_i32_1 : i32, i32, i32
  }
  func.func @transform_4(%arg0: i32) -> (i32, i32, i32) {
    %c0_i32 = arith.constant 0 : i32
    %c0_i32_0 = arith.constant 0 : i32
    %c0_i32_1 = arith.constant 0 : i32
    %c0_i32_2 = arith.constant 0 : i32
    return %c0_i32, %c0_i32_0, %c0_i32_1 : i32, i32, i32
  }
  func.func @transform_5(%arg0: i32) -> (i32, i32, i32) {
    %c0_i32 = arith.constant 0 : i32
    %c0_i32_0 = arith.constant 0 : i32
    %c0_i32_1 = arith.constant 0 : i32
    %c0_i32_2 = arith.constant 0 : i32
    return %c0_i32, %c0_i32_0, %c0_i32_1 : i32, i32, i32
  }
  func.func @transform_6(%arg0: i32) -> (i32, i32, i32) {
    %c0_i32 = arith.constant 0 : i32
    %c0_i32_0 = arith.constant 0 : i32
    %c0_i32_1 = arith.constant 0 : i32
    %c0_i32_2 = arith.constant 0 : i32
    return %c0_i32, %c0_i32_0, %c0_i32_1 : i32, i32, i32
  }
  func.func @transform_7(%arg0: i32) -> (i32, i32, i32) {
    %c0_i32 = arith.constant 0 : i32
    %c0_i32_0 = arith.constant 0 : i32
    %c0_i32_1 = arith.constant 0 : i32
    %c0_i32_2 = arith.constant 0 : i32
    return %c0_i32, %c0_i32_0, %c0_i32_1 : i32, i32, i32
  }
  func.func @transform_8(%arg0: i32) -> (i32, i32) {
    %c0_i32 = arith.constant 0 : i32
    %c0_i32_0 = arith.constant 0 : i32
    %c0_i32_1 = arith.constant 0 : i32
    return %c0_i32, %c0_i32_0 : i32, i32
  }
  func.func @transform_9(%arg0: i32) -> (i32, i32) {
    %c0_i32 = arith.constant 0 : i32
    %c0_i32_0 = arith.constant 0 : i32
    return %arg0, %c0_i32 : i32, i32
  }
}

</mosaic_0001>

<bundles_post_ra>
// kernel: sts_bert_forward.1
= control target key start
LH: loop header
LB: loop body
LE: loop exit
PB: predicated region body
PF: predicated region fallthrough
CT: control target
= control target key end

     0   :  { %14 = vsyncpa [#allocation4], 0  ;;  %s4664_s0 = inlined_call_operand.vmem [shape: f32[16,128], index: 0, kind: input, shape index: {}]   ;;  %s4665_s1 = inlined_call_operand.vmem [shape: f32[2,1,8], index: 1, kind: input, shape index: {}]   ;;  %s4666_s2 = inlined_call_operand.vmem [shape: f32[8,128], index: 2, kind: input, shape index: {}]   ;;  %s4667_s3 = inlined_call_operand.hbm [shape: bf16[2,128,384], index: 3, kind: input, shape index: {}]   ;;  %s4668_s4 = inlined_call_operand.vmem [shape: bf16[2,128,128], index: 4, kind: input, shape index: {}]   ;;  %s4669_s5 = inlined_call_operand.hbm [shape: bf16[2,128,512], index: 5, kind: input, shape index: {}]   ;;  %s4670_s6 = inlined_call_operand.hbm [shape: bf16[2,512,128], index: 6, kind: input, shape index: {}]   ;;  %s4671_s7 = inlined_call_operand.vmem [shape: f32[2,8,512], index: 7, kind: input, shape index: {}]   ;;  %s4672_s8 = inlined_call_operand.vmem [shape: bf16[128,128], index: 8, kind: input, shape index: {}]   ;;  %s4673_s9 = inlined_call_operand.vmem [shape: f32[2,1], index: 9, kind: output, shape index: {}]  }
   0x1   :  { %15 = vsyncpa [#allocation6], 0  ;;  %s41_s11 = sshll.u32 %s4669_s5, 4  ;;  %s4150_s12 = smov [#allocation5]   ;;  %s42_s11 = int_to_ptr.hbm [resolvable:$true] %s41_s11 }
   0x2   :  { %s43_s13 = sshll.u32 %s4150_s12, 4  ;;  %s26_s16 = sshll.u32 %s4667_s3, 4  ;;  %s44_s13 = int_to_ptr.vmem [resolvable:$true] %s43_s13  ;;  %s27_s16 = int_to_ptr.hbm [resolvable:$true] %s26_s16 }
   0x3   :  { %s4151_s17 = smov 256   ;;  %s4152_s18 = smov 16  }
   0x4   :  { %49 = dma.hbm_to_vmem [thread:$0]  %s42_s11, 8192, %s44_s13, [#allocation6], %s4151_s17, %s4151_s17, %s4152_s18  }
   0x5   :  { %s4153_s19 = smov [#allocation3]   ;;  %s4154_s21 = smov 192  }
   0x6   :  { %s28_s20 = sshll.u32 %s4153_s19, 4  ;;  %s4155_s22 = smov 12   ;;  %s29_s20 = int_to_ptr.vmem [resolvable:$true] %s28_s20 }
   0x7   :  { %34 = dma.hbm_to_vmem [thread:$0]  %s27_s16, 6144, %s29_s20, [#allocation4], %s4154_s21, %s4154_s21, %s4155_s22  }
   0x8   :  { %s54_s24 = sshll.u32 %s4670_s6, 4  ;;  %s4156_s25 = smov [#allocation7]   ;;  %s55_s24 = int_to_ptr.hbm [resolvable:$true] %s54_s24 }
   0x9   :  { %s56_s26 = sshll.u32 %s4156_s25, 4  ;;  %s4157_s27 = smov 64   ;;  %s57_s26 = int_to_ptr.vmem [resolvable:$true] %s56_s26 }
   0xa   :  { %s4158_s3 = smov 4  }
   0xb   :  { %62 = dma.hbm_to_vmem [thread:$0]  %s55_s24, 8192, %s57_s26, [#allocation6], %s4157_s27, %s4157_s27, %s4158_s3  }
   0xc   :  { %4146 = dma.done.wait [#allocation4], 6144  }
   0xd   :  { %4147 = vsyncadd [#allocation4], 4294961152 }
   0xe   :  { %4148 = dma.done.wait [#allocation6], 16384  }
   0xf   :  { %4149 = vsyncadd [#allocation6], 4294950912  ;;  %v81_v0 = vld [vmem:[%s4664_s0] sm:$0xff]  ;;  %v82_v1 = vld [vmem:[%s4664_s0 + $0x8] sm:$0xff]  ;;  %v4159_v2 = vmov 128.0   ;;  %vm470_vm7 = vcmask 523264  }
  0x10   :  { %83 = vadd.xlane.f32.xlu0 %v81_v0  ;;  %3981 = vrcp.f32 %v4159_v2  ;;  %v3015_v17 = vld [vmem:[#allocation3 + $0xa8] sm:$0xf]  ;;  %v3791_v18 = vld [vmem:[#allocation3 + $0xb0] sm:$0xf0]  ;;  %v3790_v19 = vld [vmem:[#allocation3 + $0xac] sm:$0xf] }
  0x11   :  { %v3016_v20 = vor.u32 %v3791_v18, %v3015_v17  ;;  %v3017_v21 = vld [vmem:[#allocation3 + $0xb4] sm:$0xf0]  ;;  %v3023_v22 = vld [vmem:[#allocation3 + $0xb0] sm:$0xf]  ;;  %v3792_v23 = vld [vmem:[#allocation3 + $0xb8] sm:$0xf0] }
  0x12   :  { %v3020_v24 = vor.u32 %v3790_v19, %v3017_v21  ;;  %v3024_v25 = vor.u32 %v3792_v23, %v3023_v22  ;;  %v3003_v26 = vld [vmem:[#allocation3 + $0x90] sm:$0xf]  ;;  %v3788_v27 = vld [vmem:[#allocation3 + $0x98] sm:$0xf0]  ;;  %v3787_v28 = vld [vmem:[#allocation3 + $0x94] sm:$0xf] }
  0x13   :  { %418 = vmatpush.bf16.msra.mxu0 %v3016_v20  ;;  %v3004_v29 = vor.u32 %v3788_v27, %v3003_v26  ;;  %v3005_v30 = vld [vmem:[#allocation3 + $0x9c] sm:$0xf0]  ;;  %v3011_v31 = vld [vmem:[#allocation3 + $0x98] sm:$0xf]  ;;  %v3789_v32 = vld [vmem:[#allocation3 + $0xa0] sm:$0xf0] }
  0x14   :  { %432 = vmatpush.bf16.msra.mxu1 %v3020_v24  ;;  %446 = vmatpush.bf16.msra.mxu2 %v3024_v25  ;;  %v3008_v33 = vor.u32 %v3787_v28, %v3005_v30  ;;  %v3012_v34 = vor.u32 %v3789_v32, %v3011_v31  ;;  %v2991_v35 = vld [vmem:[#allocation3 + $0x78] sm:$0xf]  ;;  %v3785_v36 = vld [vmem:[#allocation3 + $0x80] sm:$0xf0]  ;;  %v3784_v37 = vld [vmem:[#allocation3 + $0x7c] sm:$0xf] }
  0x15   :  { %v2992_v38 = vor.u32 %v3785_v36, %v2991_v35  ;;  %v2993_v39 = vld [vmem:[#allocation3 + $0x84] sm:$0xf0]  ;;  %v2999_v40 = vld [vmem:[#allocation3 + $0x80] sm:$0xf]  ;;  %v3786_v41 = vld [vmem:[#allocation3 + $0x88] sm:$0xf0] }
  0x16   :  { %v3982_v3 = vpop.eup %3981  ;;  %v2996_v42 = vor.u32 %v3784_v37, %v2993_v39  ;;  %v3000_v43 = vor.u32 %v3786_v41, %v2999_v40  ;;  %v2979_v44 = vld [vmem:[#allocation3 + $0x60] sm:$0xf]  ;;  %v3782_v45 = vld [vmem:[#allocation3 + $0x68] sm:$0xf0]  ;;  %v3781_v46 = vld [vmem:[#allocation3 + $0x64] sm:$0xf] }
  0x17   :  { %v88_v4 = vmul.f32 128.0, %v3982_v3  ;;  %vm92_vm0 = vweird.f32 %v3982_v3  ;;  %419 = vmatpush.bf16.msra.mxu0 %v3004_v29  ;;  %v2980_v47 = vor.u32 %v3782_v45, %v2979_v44  ;;  %v2981_v48 = vld [vmem:[#allocation3 + $0x6c] sm:$0xf0]  ;;  %v2987_v49 = vld [vmem:[#allocation3 + $0x68] sm:$0xf]  ;;  %vm565_vm8 = vcmask 1043456  }
  0x18   :  { %85 = vadd.xlane.f32.xlu0 %v82_v1  ;;  %433 = vmatpush.bf16.msra.mxu1 %v3008_v33  ;;  %v3783_v50 = vld [vmem:[#allocation3 + $0x70] sm:$0xf0]  ;;  %v2984_v51 = vor.u32 %v3781_v46, %v2981_v48  ;;  %v2967_v53 = vld [vmem:[#allocation3 + $0x48] sm:$0xf]  ;;  %v3778_v55 = vld [vmem:[#allocation3 + $0x4c] sm:$0xf] }
  0x19   :  { %v89_v5 = vsub.f32 1.0, %v88_v4  ;;  %447 = vmatpush.bf16.msra.mxu2 %v3012_v34  ;;  %v2988_v52 = vor.u32 %v3783_v50, %v2987_v49  ;;  %v3779_v54 = vld [vmem:[#allocation3 + $0x50] sm:$0xf0]  ;;  %v2969_v57 = vld [vmem:[#allocation3 + $0x54] sm:$0xf0]  ;;  %vm509_vm9 = vcmask 64512  }
  0x1a   :  { %v2968_v56 = vor.u32 %v3779_v54, %v2967_v53  ;;  %v2975_v58 = vld [vmem:[#allocation3 + $0x50] sm:$0xf]  ;;  %v3780_v59 = vld [vmem:[#allocation3 + $0x58] sm:$0xf0]  ;;  %v2972_v60 = vor.u32 %v3778_v55, %v2969_v57  ;;  %v2957_v2 = vld [vmem:[#allocation3 + $0x3c] sm:$0xf0] }
  0x1b   :  { %v90_v6 = vmul.f32 %v3982_v3, %v89_v5  ;;  %420 = vmatpush.bf16.msra.mxu0 %v2992_v38  ;;  %v2976_v61 = vor.u32 %v3780_v59, %v2975_v58  ;;  %v2955_v62 = vld [vmem:[#allocation3 + $0x30] sm:$0xf]  ;;  %v3776_v63 = vld [vmem:[#allocation3 + $0x38] sm:$0xf0]  ;;  %v3777_v4 = vld [vmem:[#allocation3 + $0x40] sm:$0xf0] }
  0x1c   :  { %434 = vmatpush.bf16.msra.mxu1 %v2996_v42  ;;  %v2931_v19 = vld [vmem:[#allocation3] sm:$0xf]  ;;  %v3770_v20 = vld [vmem:[#allocation3 + $0x8] sm:$0xf0]  ;;  %v3769_v21 = vld [vmem:[#allocation3 + $0x4] sm:$0xf] }
  0x1d   :  { %v91_v7 = vadd.f32 %v3982_v3, %v90_v6  ;;  %448 = vmatpush.bf16.msra.mxu2 %v3000_v43  ;;  %v2932_v23 = vor.u32 %v3770_v20, %v2931_v19  ;;  %v2933_v24 = vld [vmem:[#allocation3 + $0xc] sm:$0xf0]  ;;  %v2939_v25 = vld [vmem:[#allocation3 + $0x8] sm:$0xf]  ;;  %v3771_v26 = vld [vmem:[#allocation3 + $0x10] sm:$0xf0] }
  0x1e   :  { %v2936_v28 = vor.u32 %v3769_v21, %v2933_v24  ;;  %v2940_v29 = vor.u32 %v3771_v26, %v2939_v25  ;;  %v80_v45 = vld [vmem:[%s4666_s2] sm:$0xff] }
  0x1f   :  { %v4227_v8 = vsel %vm92_vm0, %v3982_v3, %v91_v7  ;;  %421 = vmatpush.bf16.msra.mxu0 %v2980_v47  ;;  %v2963_v3 = vld [vmem:[#allocation3 + $0x38] sm:$0xf]  ;;  %v130_v48 = vperm.slane %v80_v45, 0  ;;  %v133_v53 = vperm.slane %v80_v45, 1 }
  0x20   :  { %435 = vmatpush.bf16.msra.mxu1 %v2984_v51  ;;  %v2964_v6 = vor.u32 %v3777_v4, %v2963_v3  ;;  %v2943_v7 = vld [vmem:[#allocation3 + $0x18] sm:$0xf] }
  0x21   :  { %449 = vmatpush.bf16.msra.mxu2 %v2988_v52 }
  0x23   :  { %422 = vmatpush.bf16.msra.mxu0 %v2968_v56 }
  0x24   :  { %436 = vmatpush.bf16.msra.mxu1 %v2972_v60 }
  0x25   :  { %450 = vmatpush.bf16.msra.mxu2 %v2976_v61 }
  0x29   :  { %451 = vmatpush.bf16.msra.mxu2 %v2964_v6 }
  0x83   :  { %v84_v9 = vpop.xlane.xlu0 %83 }
  0x84   :  { %v94_v10 = vmul.f32 %v4227_v8, %v84_v9  ;;  %v3773_v9 = vld [vmem:[#allocation3 + $0x20] sm:$0xf0] }
  0x86   :  { %v4230_v11 = vsub.f32 %v81_v0, %v94_v10  ;;  %v3775_v0 = vld [vmem:[#allocation3 + $0x34] sm:$0xf]  ;;  %v3772_v10 = vld [vmem:[#allocation3 + $0x1c] sm:$0xf] }
  0x87   :  { %v2960_v5 = vor.u32 %v3775_v0, %v2957_v2  ;;  %v4267_v0 = vld [vmem:[%s4671_s7 + $0x10] sm:$0xff] }
  0x88   :  { %v98_v12 = vmul.f32 %v4230_v11, %v4230_v11  ;;  %v289_v3 = vperm.slane %v4267_v0, 0 }
  0x89   :  { %437 = vmatpush.bf16.msra.mxu1 %v2960_v5 }
  0x8a   :  { %100 = vadd.xlane.f32.xlu1 %v98_v12  ;;  %v2944_v12 = vor.u32 %v3773_v9, %v2943_v7 }
  0x8b   :  { %v86_v13 = vpop.xlane.xlu0 %85 }
  0x8c   :  { %v95_v14 = vmul.f32 %v4227_v8, %v86_v13  ;;  %v2945_v13 = vld [vmem:[#allocation3 + $0x24] sm:$0xf0] }
  0x8d   :  { %v2948_v17 = vor.u32 %v3772_v10, %v2945_v13 }
  0x8e   :  { %v4235_v15 = vsub.f32 %v82_v1, %v95_v14  ;;  %v2956_v1 = vor.u32 %v3776_v63, %v2955_v62  ;;  %v2951_v14 = vld [vmem:[#allocation3 + $0x20] sm:$0xf] }
  0x8f   :  { %438 = vmatpush.bf16.msra.mxu1 %v2948_v17 }
  0x90   :  { %v99_v16 = vmul.f32 %v4235_v15, %v4235_v15  ;;  %423 = vmatpush.bf16.msra.mxu0 %v2956_v1 }
  0x92   :  { %102 = vadd.xlane.f32.xlu1 %v99_v16  ;;  %v3774_v16 = vld [vmem:[#allocation3 + $0x28] sm:$0xf0] }
  0x93   :  { %v2952_v18 = vor.u32 %v3774_v16, %v2951_v14  ;;  %439 = vmatpush.bf16.msra.mxu1 %v2936_v28 }
  0x94   :  { %424 = vmatpush.bf16.msra.mxu0 %v2944_v12 }
  0x95   :  { %452 = vmatpush.bf16.msra.mxu2 %v2952_v18 }
  0x98   :  { %425 = vmatpush.bf16.msra.mxu0 %v2932_v23 }
  0x99   :  { %453 = vmatpush.bf16.msra.mxu2 %v2940_v29 }
  0xfd   :  { %v101_v22 = vpop.xlane.xlu1 %100 }
  0xfe   :  { %v104_v27 = vmul.f32 %v101_v22, %v4227_v8 }
 0x100   :  { %v106_v30 = vadd.f32 1e-12, %v104_v27 }
 0x102   :  { %3983 = vrsqrt.f32 %v106_v30  ;;  %vm114_vm2 = vweird.f32 %v106_v30 }
 0x105   :  { %v103_v31 = vpop.xlane.xlu1 %102 }
 0x106   :  { %v105_v32 = vmul.f32 %v103_v31, %v4227_v8 }
 0x108   :  { %v3984_v33 = vpop.eup %3983  ;;  %v107_v34 = vadd.f32 1e-12, %v105_v32 }
 0x109   :  { %v109_v35 = vmul.f32 %v3984_v33, %v106_v30  ;;  %vm115_vm1 = vweird.f32 %v3984_v33 }
 0x10a   :  { %3985 = vrsqrt.f32 %v107_v34  ;;  %vm116_vm3 = vmor %vm114_vm2, %vm115_vm1  ;;  %vm124_vm5 = vweird.f32 %v107_v34 }
 0x10b   :  { %v110_v36 = vmul.f32 %v3984_v33, %v109_v35 }
 0x10d   :  { %v111_v37 = vmul.f32 0.5, %v110_v36 }
 0x10f   :  { %v112_v38 = vsub.f32 1.5, %v111_v37  ;;  %v3979_v37 = vld [vmem:[%s4665_s1] ss:$0 sm:$0xff] }
 0x110   :  { %v3986_v39 = vpop.eup %3985 }
 0x111   :  { %v113_v40 = vmul.f32 %v3984_v33, %v112_v38  ;;  %v119_v41 = vmul.f32 %v3986_v39, %v107_v34  ;;  %vm125_vm4 = vweird.f32 %v3986_v39 }
 0x112   :  { %vm126_vm6 = vmor %vm124_vm5, %vm125_vm4 }
 0x113   :  { %v120_v42 = vmul.f32 %v3986_v39, %v119_v41  ;;  %v117_v43 = vsel %vm116_vm3, %v3984_v33, %v113_v40 }
 0x114   :  { %v128_v47 = vmul.f32 %v117_v43, %v4230_v11  ;;  %v4255_v11 = vld [vmem:[%s4671_s7] sm:$0xff] }
 0x115   :  { %v121_v44 = vmul.f32 0.5, %v120_v42  ;;  %v287_v58 = vperm.slane %v4255_v11, 0  ;;  %v3980_v42 = vld [vmem:[%s4665_s1 + $0x1] ss:$0 sm:$0xff] }
 0x116   :  { %v131_v52 = vmul.f32 %v130_v48, %v128_v47 }
 0x117   :  { %v122_v46 = vsub.f32 1.5, %v121_v44 }
 0x118   :  { %v4246_v55 = vadd.f32 %v133_v53, %v131_v52 }
 0x119   :  { %v123_v49 = vmul.f32 %v3986_v39, %v122_v46 }
 0x11b   :  { %v127_v50 = vsel %vm126_vm6, %v3986_v39, %v123_v49 }
 0x11c   :  { %v129_v51 = vmul.f32 %v127_v50, %v4235_v15  ;;  %v4260_v15 = vld [vmem:[%s4671_s7 + $0x8] sm:$0xff] }
 0x11d   :  { %v288_v59 = vperm.slane %v4260_v15, 0 }
 0x11e   :  { %v132_v54 = vmul.f32 %v130_v48, %v129_v51 }
 0x120   :  { %v4248_v56 = vadd.f32 %v133_v53, %v132_v54 }
 0x122   :  { %v286_v57 = vpack.c.bf16 %v4248_v56, %v4246_v55 }
 0x124   :  { %426 = vmatmul.bf16.vlgmr.msra.gmra.mxu0 %v286_v57  ;;  %440 = vmatmul.bf16.vlgmr.msra.gmra.mxu1 %v286_v57 }
 0x125   :  { %454 = vmatmul.bf16.vlgmr.msra.gmra.mxu2 %v286_v57 }
 0x1a1   :  { %v427_v60 = vpop.f32.mrf.mxu0  ;;  %v441_v61 = vpop.f32.mrf.mxu1 }
 0x1a2   :  { %v428_v62 = vadd.f32 %v427_v60, %v287_v58  ;;  %v442_v63 = vadd.f32 %v441_v61, %v288_v59 }
 0x1a4   :  { %v460_v1 = vpack.c.bf16 %v428_v62, %v428_v62  ;;  %v462_v2 = vpack.c.bf16 %v442_v63, %v442_v63 }
 0x1a6   :  { %v475_v4 = vsel %vm470_vm7, %v462_v2, 0  ;;  %v608_v5 = vunpack.c.l.b16 %v462_v2  ;;  %v603_v6 = vunpack.c.l.b16 %v460_v1 }
 0x1a7   :  { %484 = vmatpush.bf16.xpose.msrb.mxu0 %v475_v4 }
 0x1a8   :  { %v455_v7 = vpop.f32.mrf.mxu2  ;;  %v609_v9 = vpack.c.b16 %v608_v5, %v608_v5  ;;  %v604_v10 = vpack.c.b16 %v603_v6, %v603_v6 }
 0x1a9   :  { %v456_v12 = vadd.f32 %v455_v7, %v289_v3  ;;  %v429_v13 = vpop.f32.mrf.mxu0  ;;  %v443_v14 = vpop.f32.mrf.mxu1 }
 0x1aa   :  { %v430_v16 = vadd.f32 %v429_v13, %v287_v58  ;;  %v444_v17 = vadd.f32 %v443_v14, %v288_v59  ;;  %610 = vrot.lane.b32.xlu2 %v609_v9, %s4157_s27  ;;  %605 = vrot.lane.b32.xlu0 %v604_v10, %s4157_s27 }
 0x1ab   :  { %v4273_v18 = vpack.c.bf16 %v456_v12, %v456_v12 }
 0x1ac   :  { %v461_v19 = vpack.c.bf16 %v430_v16, %v430_v16  ;;  %v463_v20 = vpack.c.bf16 %v444_v17, %v444_v17 }
 0x1ad   :  { %v567_v24 = vsel %vm565_vm8, %v4273_v18, 0  ;;  %v711_v63 = vunpack.c.l.b16 %v4273_v18 }
 0x1ae   :  { %3025 = vmatmul.msk.bf16.vlgmr.msrb.gmra.mxu0 %vm470_vm7, %v460_v1  ;;  %v494_v21 = vsel %vm470_vm7, %v463_v20, 0  ;;  %v637_v22 = vunpack.c.l.b16 %v463_v20  ;;  %v632_v23 = vunpack.c.l.b16 %v461_v19 }
 0x1af   :  { %503 = vmatpush.bf16.xpose.msra.mxu3 %v494_v21 }
 0x1b0   :  { %v457_v25 = vpop.f32.mrf.mxu2  ;;  %v638_v26 = vpack.c.b16 %v637_v22, %v637_v22  ;;  %v633_v27 = vpack.c.b16 %v632_v23, %v632_v23 }
 0x1b1   :  { %v458_v28 = vadd.f32 %v457_v25, %v289_v3  ;;  %v712_v3 = vpack.c.b16 %v711_v63, %v711_v63 }
 0x1b2   :  { %639 = vrot.lane.b32.xlu2 %v638_v26, %s4157_s27  ;;  %634 = vrot.lane.b32.xlu1 %v633_v27, %s4157_s27 }
 0x1b3   :  { %v4281_v29 = vpack.c.bf16 %v458_v28, %v458_v28 }
 0x1b5   :  { %v586_v30 = vsel %vm565_vm8, %v4281_v29, 0  ;;  %v735_v22 = vunpack.c.l.b16 %v4281_v29 }
 0x1b6   :  { %595 = vmatpush.bf16.msra.mxu0 %v586_v30  ;;  %3026 = vmatmul.msk.bf16.vlgmr.msra.gmra.mxu3 %vm470_vm7, %v461_v19 }
 0x1b7   :  { %576 = vmatpush.bf16.msrb.mxu3 %v567_v24  ;;  %v736_v26 = vpack.c.b16 %v735_v22, %v735_v22 }
 0x204   :  { %v611_v31 = vpop.permute.xlu2 %610 }
 0x205   :  { %v616_v32 = vsel %vm470_vm7, %v611_v31, 0 }
 0x206   :  { %625 = vmatpush.bf16.xpose.msrb.mxu1 %v616_v32 }
 0x20c   :  { %v640_v33 = vpop.permute.xlu2 %639 }
 0x20d   :  { %v645_v34 = vsel %vm470_vm7, %v640_v33, 0 }
 0x20e   :  { %654 = vmatpush.bf16.xpose.msrb.mxu2 %v645_v34 }
 0x21c   :  { %v606_v35 = vpop.permute.xlu0 %605 }
 0x21d   :  { %3029 = vmatmul.msk.bf16.vlgmr.msrb.gmra.mxu1 %vm470_vm7, %v606_v35 }
 0x224   :  { %v635_v36 = vpop.permute.xlu1 %634 }
 0x225   :  { %3030 = vmatmul.msk.bf16.vlgmr.msrb.gmra.mxu2 %vm470_vm7, %v635_v36 }
 0x22b   :  { %v486_v38 = vpop.f32.mrf.mxu0 }
 0x22c   :  { %v487_v39 = vadd.f32 %v3979_v37, %v486_v38 }
 0x22e   :  { %v510_v40 = vsel %vm509_vm9, %v487_v39, -inf }
 0x22f   :  { %511 = vmax.xlane.f32.xlu2 %v510_v40 }
 0x233   :  { %v488_v41 = vpop.f32.mrf.mxu0 }
 0x239   :  { %v505_v43 = vpop.f32.mrf.mxu3 }
 0x23a   :  { %v506_v44 = vadd.f32 %v3980_v42, %v505_v43 }
 0x23c   :  { %v513_v45 = vsel %vm509_vm9, %v506_v44, -inf }
 0x23d   :  { %514 = vmax.xlane.f32.xlu0 %v513_v45 }
 0x241   :  { %v507_v46 = vpop.f32.mrf.mxu3 }
 0x29a   :  { %v627_v47 = vpop.f32.mrf.mxu1 }
 0x29b   :  { %v628_v48 = vadd.f32 %v3979_v37, %v627_v47 }
 0x29d   :  { %v660_v49 = vsel %vm509_vm9, %v628_v48, -inf }
 0x29e   :  { %661 = vmax.xlane.f32.xlu1 %v660_v49 }
 0x2a2   :  { %v629_v50 = vpop.f32.mrf.mxu1  ;;  %v512_v51 = vpop.xlane.xlu2 %511 }
 0x2a3   :  { %v516_v52 = vsub.f32 %v487_v39, %v512_v51  ;;  %v3796_v50 = vld [vmem:[%s4668_s4 + $0x18] sm:$0xff]  ;;  %v3795_v51 = vld [vmem:[%s4668_s4 + $0x10] sm:$0xff] }
 0x2a4   :  { %831 = vmatpush.bf16.msra.mxu2 %v3796_v50 }
 0x2a5   :  { %v518_v53 = vmul.f32 1.442695, %v516_v52 }
 0x2a7   :  { %3987 = vpow2.f32 %v518_v53 }
 0x2a8   :  { %v656_v54 = vpop.f32.mrf.mxu2  ;;  %832 = vmatpush.bf16.msra.mxu2 %v3795_v51 }
 0x2a9   :  { %v657_v57 = vadd.f32 %v3980_v42, %v656_v54 }
 0x2ab   :  { %v663_v58 = vsel %vm509_vm9, %v657_v57, -inf }
 0x2ac   :  { %664 = vmax.xlane.f32.xlu2 %v663_v58 }
 0x2ad   :  { %v3988_v59 = vpop.eup %3987 }
 0x2ae   :  { %v522_v2 = vsel %vm509_vm9, %v3988_v59, 0.0 }
 0x2b0   :  { %v658_v60 = vpop.f32.mrf.mxu2  ;;  %v515_v61 = vpop.xlane.xlu0 %514 }
 0x2b1   :  { %v517_v62 = vsub.f32 %v506_v44, %v515_v61 }
 0x2b3   :  { %v520_v1 = vmul.f32 1.442695, %v517_v62 }
 0x2b4   :  { %523 = vadd.xlane.f32.xlu2 %v522_v2 }
 0x2b5   :  { %3989 = vpow2.f32 %v520_v1 }
 0x2b7   :  { %713 = vrot.lane.b32.xlu1 %v712_v3, %s4157_s27  ;;  %v3793_v3 = vld [vmem:[%s4668_s4] sm:$0xff] }
 0x2bb   :  { %v3990_v4 = vpop.eup %3989 }
 0x2bc   :  { %v525_v5 = vsel %vm509_vm9, %v3990_v4, 0.0 }
 0x2bd   :  { %526 = vadd.xlane.f32.xlu2 %v525_v5 }
 0x311   :  { %v662_v6 = vpop.xlane.xlu1 %661 }
 0x312   :  { %v666_v7 = vsub.f32 %v628_v48, %v662_v6 }
 0x314   :  { %v668_v9 = vmul.f32 1.442695, %v666_v7 }
 0x316   :  { %3991 = vpow2.f32 %v668_v9 }
 0x31c   :  { %v4304_v10 = vpop.eup %3991 }
 0x31d   :  { %v672_v12 = vsel %vm509_vm9, %v4304_v10, 0.0 }
 0x31e   :  { %673 = vadd.xlane.f32.xlu0 %v672_v12 }
 0x31f   :  { %v665_v13 = vpop.xlane.xlu2 %664 }
 0x320   :  { %v667_v14 = vsub.f32 %v657_v57, %v665_v13  ;;  %v3794_v57 = vld [vmem:[%s4668_s4 + $0x8] sm:$0xff] }
 0x321   :  { %833 = vmatpush.bf16.msra.mxu2 %v3794_v57  ;;  %v3831_v57 = vld [vmem:[#allocation5 + $0xec] sm:$0xf0] }
 0x322   :  { %v670_v16 = vmul.f32 1.442695, %v667_v14 }
 0x324   :  { %3993 = vpow2.f32 %v670_v16 }
 0x325   :  { %834 = vmatpush.bf16.msra.mxu2 %v3793_v3  ;;  %v3191_v3 = vld [vmem:[#allocation5 + $0xf8] sm:$0xf0] }
 0x327   :  { %v524_v17 = vpop.xlane.xlu2 %523 }
 0x328   :  { %3995 = vrcp.f32 %v524_v17  ;;  %v539_v28 = vand.u32 2147483648, %v524_v17  ;;  %v537_v31 = vand.u32 2147483647, %v524_v17  ;;  %vm533_vm11 = vweird.f32 %v524_v17 }
 0x329   :  { %v714_v18 = vpop.permute.xlu1 %713 }
 0x32a   :  { %v4308_v19 = vpop.eup %3993  ;;  %v719_v20 = vsel %vm565_vm8, %v714_v18, 0  ;;  %v540_v33 = vor.u32 1.1754944e-38, %v539_v28  ;;  %vm538_vm13 = vcmp.eq.f32.partialorder %v537_v31, 8.507059e+37  ;;  %v3800_v18 = vld [vmem:[%s4668_s4 + $0x38] sm:$0xff]  ;;  %v3799_v31 = vld [vmem:[%s4668_s4 + $0x30] sm:$0xff] }
 0x32b   :  { %728 = vmatpush.bf16.msra.mxu3 %v719_v20  ;;  %v675_v21 = vsel %vm509_vm9, %v4308_v19, 0.0  ;;  %790 = vmatpush.bf16.msra.mxu1 %v3800_v18  ;;  %v3826_v18 = vld [vmem:[#allocation5 + $0xcc] sm:$0xf] }
 0x32c   :  { %676 = vadd.xlane.f32.xlu2 %v675_v21 }
 0x32e   :  { %v3996_v23 = vpop.eup %3995 }
 0x32f   :  { %v529_v24 = vmul.f32 %v3996_v23, %v524_v17  ;;  %vm534_vm10 = vweird.f32 %v3996_v23  ;;  %791 = vmatpush.bf16.msra.mxu1 %v3799_v31  ;;  %v3822_v31 = vld [vmem:[#allocation5 + $0xac] sm:$0xf] }
 0x330   :  { %v527_v25 = vpop.xlane.xlu2 %526  ;;  %vm535_vm12 = vmor %vm533_vm11, %vm534_vm10 }
 0x331   :  { %v530_v27 = vsub.f32 1.0, %v529_v24  ;;  %3997 = vrcp.f32 %v527_v25  ;;  %v554_v39 = vand.u32 2147483648, %v527_v25  ;;  %v552_v42 = vand.u32 2147483647, %v527_v25 }
 0x332   :  { %737 = vrot.lane.b32.xlu0 %v736_v26, %s4157_s27  ;;  %vm548_vm15 = vweird.f32 %v527_v25 }
 0x333   :  { %v531_v30 = vmul.f32 %v3996_v23, %v530_v27  ;;  %v555_v44 = vor.u32 1.1754944e-38, %v554_v39  ;;  %vm553_vm1 = vcmp.eq.f32.partialorder %v552_v42, 8.507059e+37 }
 0x335   :  { %v532_v32 = vadd.f32 %v3996_v23, %v531_v30 }
 0x337   :  { %v3998_v34 = vpop.eup %3997  ;;  %v536_v35 = vsel %vm535_vm12, %v3996_v23, %v532_v32  ;;  %v3798_v32 = vld [vmem:[%s4668_s4 + $0x28] sm:$0xff] }
 0x338   :  { %v544_v29 = vmul.f32 %v3998_v34, %v527_v25  ;;  %v541_v36 = vsel %vm538_vm13, %v540_v33, %v536_v35  ;;  %vm549_vm14 = vweird.f32 %v3998_v34  ;;  %792 = vmatpush.bf16.msra.mxu1 %v3798_v32  ;;  %v3159_v32 = vld [vmem:[#allocation5 + $0xb8] sm:$0xf0] }
 0x339   :  { %v542_v37 = vmul.f32 %v3988_v59, %v541_v36  ;;  %vm550_vm0 = vmor %vm548_vm15, %vm549_vm14 }
 0x33a   :  { %v545_v38 = vsub.f32 1.0, %v544_v29 }
 0x33b   :  { %v558_v40 = vpack.c.bf16 %v542_v37, %v542_v37 }
 0x33c   :  { %v546_v41 = vmul.f32 %v3998_v34, %v545_v38  ;;  %v841_v38 = vperm.slane %v4255_v11, 1 }
 0x33d   :  { %3027 = vmatmul.msk.bf16.vlgmr.msrb.gmra.mxu3 %vm509_vm9, %v558_v40 }
 0x33e   :  { %v547_v43 = vadd.f32 %v3998_v34, %v546_v41 }
 0x340   :  { %v551_v45 = vsel %vm550_vm0, %v3998_v34, %v547_v43 }
 0x341   :  { %v556_v46 = vsel %vm553_vm1, %v555_v44, %v551_v45 }
 0x342   :  { %v557_v47 = vmul.f32 %v3990_v4, %v556_v46 }
 0x344   :  { %v559_v48 = vpack.c.bf16 %v557_v47, %v557_v47 }
 0x346   :  { %3028 = vmatmul.msk.bf16.vlgmr.msra.gmra.mxu0 %vm509_vm9, %v559_v48 }
 0x391   :  { %v674_v49 = vpop.xlane.xlu0 %673 }
 0x392   :  { %3999 = vrcp.f32 %v674_v49  ;;  %v689_v58 = vand.u32 2147483648, %v674_v49  ;;  %v687_v60 = vand.u32 2147483647, %v674_v49  ;;  %vm683_vm3 = vweird.f32 %v674_v49 }
 0x394   :  { %v690_v63 = vor.u32 1.1754944e-38, %v689_v58  ;;  %vm688_vm5 = vcmp.eq.f32.partialorder %v687_v60, 8.507059e+37  ;;  %v3829_v58 = vld [vmem:[#allocation5 + $0xe4] sm:$0xf]  ;;  %v3183_v60 = vld [vmem:[#allocation5 + $0xf0] sm:$0xf0] }
 0x398   :  { %v4000_v52 = vpop.eup %3999 }
 0x399   :  { %v679_v53 = vmul.f32 %v4000_v52, %v674_v49  ;;  %vm684_vm2 = vweird.f32 %v4000_v52 }
 0x39a   :  { %vm685_vm4 = vmor %vm683_vm3, %vm684_vm2 }
 0x39b   :  { %v680_v54 = vsub.f32 1.0, %v679_v53 }
 0x39d   :  { %v681_v59 = vmul.f32 %v4000_v52, %v680_v54 }
 0x39f   :  { %v682_v61 = vadd.f32 %v4000_v52, %v681_v59  ;;  %v677_v62 = vpop.xlane.xlu2 %676 }
 0x3a0   :  { %4001 = vrcp.f32 %v677_v62  ;;  %v704_v14 = vand.u32 2147483648, %v677_v62  ;;  %v702_v17 = vand.u32 2147483647, %v677_v62  ;;  %vm698_vm10 = vweird.f32 %v677_v62 }
 0x3a1   :  { %v686_v1 = vsel %vm685_vm4, %v4000_v52, %v682_v61  ;;  %v3189_v61 = vld [vmem:[#allocation5 + $0xe8] sm:$0xf] }
 0x3a2   :  { %v691_v2 = vsel %vm688_vm5, %v690_v63, %v686_v1  ;;  %v705_v20 = vor.u32 1.1754944e-38, %v704_v14  ;;  %vm703_vm12 = vcmp.eq.f32.partialorder %v702_v17, 8.507059e+37  ;;  %v3186_v63 = vor.u32 %v3829_v58, %v3183_v60  ;;  %v3828_v14 = vld [vmem:[#allocation5 + $0xd4] sm:$0xf0]  ;;  %v3101_v58 = vld [vmem:[#allocation5 + $0x40] sm:$0xf] }
 0x3a3   :  { %v692_v4 = vmul.f32 %v4304_v10, %v691_v2  ;;  %v3830_v2 = vld [vmem:[#allocation5 + $0xec] sm:$0xf]  ;;  %v3809_v60 = vld [vmem:[#allocation5 + $0x44] sm:$0xf] }
 0x3a4   :  { %v738_v5 = vpop.permute.xlu0 %737 }
 0x3a5   :  { %v743_v6 = vsel %vm565_vm8, %v738_v5, 0  ;;  %v708_v7 = vpack.c.bf16 %v692_v4, %v692_v4  ;;  %v3194_v4 = vor.u32 %v3830_v2, %v3191_v3  ;;  %v3165_v5 = vld [vmem:[#allocation5 + $0xc0] sm:$0xf] }
 0x3a6   :  { %v4002_v9 = vpop.eup %4001  ;;  %752 = vmatpush.bf16.msrb.mxu0 %v743_v6  ;;  %v3827_v6 = vld [vmem:[#allocation5 + $0xcc] sm:$0xf0] }
 0x3a7   :  { %v694_v12 = vmul.f32 %v4002_v9, %v677_v62  ;;  %3031 = vmatmul.msk.bf16.vlgmr.msra.gmra.mxu3 %vm509_vm9, %v708_v7  ;;  %vm699_vm6 = vweird.f32 %v4002_v9  ;;  %v3832_v62 = vld [vmem:[#allocation5 + $0xf4] sm:$0xf0]  ;;  %v3825_v7 = vld [vmem:[#allocation5 + $0xc4] sm:$0xf]  ;;  %1099 = vmatpush.bf16.msrb.mxu2 %v3194_v4  ;;  %v3810_v4 = vld [vmem:[#allocation5 + $0x4c] sm:$0xf] }
 0x3a8   :  { %vm700_vm11 = vmor %vm698_vm10, %vm699_vm6  ;;  %v3190_v1 = vor.u32 %v3832_v62, %v3189_v61  ;;  %v3103_v62 = vld [vmem:[#allocation5 + $0x50] sm:$0xf0] }
 0x3a9   :  { %v695_v13 = vsub.f32 1.0, %v694_v12  ;;  %v3167_v12 = vld [vmem:[#allocation5 + $0xd0] sm:$0xf0]  ;;  %v3106_v2 = vor.u32 %v3809_v60, %v3103_v62  ;;  %v889_v60 = vperm.slane %v4255_v11, 5 }
 0x3aa   :  { %1071 = vmatpush.bf16.msra.mxu0 %v3186_v63  ;;  %v3109_v63 = vld [vmem:[#allocation5 + $0x48] sm:$0xf] }
 0x3ab   :  { %v696_v16 = vmul.f32 %v4002_v9, %v695_v13  ;;  %v3173_v13 = vld [vmem:[#allocation5 + $0xc8] sm:$0xf] }
 0x3ac   :  { %v3174_v17 = vor.u32 %v3828_v14, %v3173_v13  ;;  %v3087_v14 = vld [vmem:[#allocation5 + $0x30] sm:$0xf0] }
 0x3ad   :  { %v697_v10 = vadd.f32 %v4002_v9, %v696_v16  ;;  %v3170_v16 = vor.u32 %v3825_v7, %v3167_v12  ;;  %v3085_v7 = vld [vmem:[#allocation5 + $0x20] sm:$0xf]  ;;  %v3805_v12 = vld [vmem:[#allocation5 + $0x24] sm:$0xf] }
 0x3af   :  { %v701_v21 = vsel %vm700_vm11, %v4002_v9, %v697_v10  ;;  %v3166_v9 = vor.u32 %v3827_v6, %v3165_v5  ;;  %v3175_v10 = vld [vmem:[#allocation5 + $0xd8] sm:$0xf0]  ;;  %1072 = vmatpush.bf16.msra.mxu0 %v3170_v16  ;;  %v3093_v16 = vld [vmem:[#allocation5 + $0x28] sm:$0xf] }
 0x3b0   :  { %v706_v22 = vsel %vm703_vm12, %v705_v20, %v701_v21  ;;  %v3178_v20 = vor.u32 %v3826_v18, %v3175_v10  ;;  %v3149_v21 = vld [vmem:[#allocation5 + $0xa0] sm:$0xf]  ;;  %v3111_v5 = vld [vmem:[#allocation5 + $0x58] sm:$0xf0]  ;;  %v3090_v10 = vor.u32 %v3805_v12, %v3087_v14  ;;  %v3863_v12 = vld [vmem:[#allocation7 + $0xf0] sm:$0xff] }
 0x3b1   :  { %v707_v23 = vmul.f32 %v4308_v19, %v706_v22  ;;  %v3797_v19 = vld [vmem:[%s4668_s4 + $0x20] sm:$0xff]  ;;  %v3114_v6 = vor.u32 %v3810_v4, %v3111_v5  ;;  %v3840_v4 = vld [vmem:[#allocation7 + $0x38] sm:$0xff]  ;;  %v3853_v14 = vld [vmem:[#allocation7 + $0xa0] sm:$0xff] }
 0x3b2   :  { %793 = vmatpush.bf16.msra.mxu1 %v3797_v19  ;;  %v3823_v22 = vld [vmem:[#allocation5 + $0xac] sm:$0xf0]  ;;  %1100 = vmatpush.bf16.msrb.mxu2 %v3178_v20  ;;  %v3162_v19 = vor.u32 %v3822_v31, %v3159_v32  ;;  %v3077_v32 = vld [vmem:[#allocation5 + $0x8] sm:$0xf]  ;;  %v3864_v5 = vld [vmem:[#allocation7 + $0xf8] sm:$0xff] }
 0x3b3   :  { %v709_v24 = vpack.c.bf16 %v707_v23, %v707_v23  ;;  %v3821_v23 = vld [vmem:[#allocation5 + $0xa4] sm:$0xf] }
 0x3b5   :  { %3032 = vmatmul.msk.bf16.vlgmr.msrb.gmra.mxu0 %vm509_vm9, %v709_v24  ;;  %v3150_v24 = vor.u32 %v3823_v22, %v3149_v21  ;;  %v3806_v21 = vld [vmem:[#allocation5 + $0x2c] sm:$0xf]  ;;  %v3095_v22 = vld [vmem:[#allocation5 + $0x38] sm:$0xf0] }
 0x3b6   :  { %1085 = vmatpush.bf16.msrb.mxu1 %v3190_v1  ;;  %1101 = vmatpush.bf16.msrb.mxu2 %v3162_v19  ;;  %v3812_v1 = vld [vmem:[#allocation5 + $0x54] sm:$0xf0] }
 0x3b7   :  { %v3110_v3 = vor.u32 %v3812_v1, %v3109_v63  ;;  %v3804_v19 = vld [vmem:[#allocation5 + $0x14] sm:$0xf0] }
 0x3ba   :  { %1086 = vmatpush.bf16.msrb.mxu1 %v3174_v17  ;;  %v3808_v17 = vld [vmem:[#allocation5 + $0x34] sm:$0xf0] }
 0x3bb   :  { %v3094_v20 = vor.u32 %v3808_v17, %v3093_v16  ;;  %v3838_v16 = vld [vmem:[#allocation7 + $0x28] sm:$0xff] }
 0x3bc   :  { %v3862_v17 = vld [vmem:[#allocation7 + $0xe8] sm:$0xff] }
 0x3c0   :  { %v578_v25 = vpop.f32.mrf.mxu3 }
 0x3c3   :  { %v597_v26 = vpop.f32.mrf.mxu0 }
 0x3c4   :  { %v601_v27 = vpack.c.bf16 %v597_v26, %v578_v25  ;;  %v3151_v25 = vld [vmem:[#allocation5 + $0xb0] sm:$0xf0]  ;;  %v3157_v26 = vld [vmem:[#allocation5 + $0xa8] sm:$0xf] }
 0x3c6   :  { %3066 = vmatmul.msk.bf16.vlgmr.msra.gmra.mxu2 %vm470_vm7, %v601_v27  ;;  %v3824_v27 = vld [vmem:[#allocation5 + $0xb4] sm:$0xf0] }
 0x3c8   :  { %v580_v28 = vpop.f32.mrf.mxu3 }
 0x3c9   :  { %v3154_v28 = vor.u32 %v3821_v23, %v3151_v25  ;;  %v3069_v23 = vld [vmem:[#allocation5] sm:$0xf]  ;;  %v3098_v25 = vor.u32 %v3806_v21, %v3095_v22  ;;  %v3843_v22 = vld [vmem:[#allocation7 + $0x50] sm:$0xff] }
 0x3ca   :  { %v3861_v21 = vld [vmem:[#allocation7 + $0xe0] sm:$0xff] }
 0x3cb   :  { %v599_v30 = vpop.f32.mrf.mxu0  ;;  %1073 = vmatpush.bf16.msra.mxu0 %v3154_v28  ;;  %v3071_v28 = vld [vmem:[#allocation5 + $0x10] sm:$0xf0] }
 0x3cc   :  { %v3158_v30 = vor.u32 %v3824_v27, %v3157_v26  ;;  %v3803_v26 = vld [vmem:[#allocation5 + $0xc] sm:$0xf0]  ;;  %v3801_v27 = vld [vmem:[#allocation5 + $0x4] sm:$0xf] }
 0x3cd   :  { %v3074_v31 = vor.u32 %v3801_v27, %v3071_v28  ;;  %v3850_v27 = vld [vmem:[#allocation7 + $0x88] sm:$0xff]  ;;  %v894_v28 = vperm.slane %v4260_v15, 2 }
 0x3ce   :  { %1087 = vmatpush.bf16.msrb.mxu1 %v3158_v30  ;;  %v3070_v30 = vor.u32 %v3803_v26, %v3069_v23  ;;  %v3851_v23 = vld [vmem:[#allocation7 + $0x90] sm:$0xff]  ;;  %v3842_v26 = vld [vmem:[#allocation7 + $0x48] sm:$0xff] }
 0x3cf   :  { %v3834_v15 = vld [vmem:[#allocation7 + $0x8] sm:$0xff] }
 0x42a   :  { %v730_v33 = vpop.f32.mrf.mxu3 }
 0x432   :  { %v732_v34 = vpop.f32.mrf.mxu3  ;;  %v754_v35 = vpop.f32.mrf.mxu0 }
 0x433   :  { %v758_v29 = vpack.c.bf16 %v754_v35, %v730_v33  ;;  %v3133_v33 = vld [vmem:[#allocation5 + $0x80] sm:$0xf]  ;;  %v3819_v34 = vld [vmem:[#allocation5 + $0x8c] sm:$0xf0]  ;;  %v3817_v35 = vld [vmem:[#allocation5 + $0x84] sm:$0xf] }
 0x435   :  { %3049 = vmatmul.msk.bf16.vlgmr.msra.gmra.mxu1 %vm470_vm7, %v758_v29  ;;  %v3134_v29 = vor.u32 %v3819_v34, %v3133_v33  ;;  %v3802_v33 = vld [vmem:[#allocation5 + $0xc] sm:$0xf] }
 0x43a   :  { %v756_v36 = vpop.f32.mrf.mxu0 }
 0x43b   :  { %v3135_v36 = vld [vmem:[#allocation5 + $0x90] sm:$0xf0] }
 0x449   :  { %v836_v37 = vpop.f32.mrf.mxu2 }
 0x451   :  { %v838_v43 = vpop.f32.mrf.mxu2 }
 0x4b2   :  { %v795_v39 = vpop.f32.mrf.mxu1 }
 0x4b3   :  { %v837_v40 = vadd.f32 %v836_v37, %v795_v39  ;;  %v3141_v37 = vld [vmem:[#allocation5 + $0x88] sm:$0xf]  ;;  %v3138_v39 = vor.u32 %v3817_v35, %v3135_v36  ;;  %v3078_v35 = vor.u32 %v3804_v19, %v3077_v32  ;;  %v3859_v32 = vld [vmem:[#allocation7 + $0xd0] sm:$0xff] }
 0x4b5   :  { %v842_v41 = vadd.f32 %v841_v38, %v837_v40  ;;  %1074 = vmatpush.bf16.msra.mxu0 %v3138_v39 }
 0x4b7   :  { %v844_v42 = vadd.f32 %v842_v41, %v4246_v55  ;;  %v3818_v41 = vld [vmem:[#allocation5 + $0x8c] sm:$0xf] }
 0x4b9   :  { %846 = vadd.xlane.f32.xlu2 %v844_v42 }
 0x4ba   :  { %v797_v44 = vpop.f32.mrf.mxu1 }
 0x4bb   :  { %v839_v45 = vadd.f32 %v838_v43, %v797_v44  ;;  %v3117_v44 = vld [vmem:[#allocation5 + $0x60] sm:$0xf] }
 0x4bd   :  { %v843_v46 = vadd.f32 %v841_v38, %v839_v45  ;;  %v3820_v38 = vld [vmem:[#allocation5 + $0x94] sm:$0xf0]  ;;  %v3815_v45 = vld [vmem:[#allocation5 + $0x6c] sm:$0xf0] }
 0x4be   :  { %v3142_v40 = vor.u32 %v3820_v38, %v3141_v37 }
 0x4bf   :  { %v845_v47 = vadd.f32 %v843_v46, %v4248_v56  ;;  %v3181_v56 = vld [vmem:[#allocation5 + $0xe0] sm:$0xf]  ;;  %v3813_v46 = vld [vmem:[#allocation5 + $0x64] sm:$0xf] }
 0x4c0   :  { %v3182_v59 = vor.u32 %v3831_v57, %v3181_v56  ;;  %1088 = vmatpush.bf16.msrb.mxu1 %v3142_v40  ;;  %v3127_v56 = vld [vmem:[#allocation5 + $0x78] sm:$0xf0] }
 0x4c1   :  { %848 = vadd.xlane.f32.xlu2 %v845_v47 }
 0x4c2   :  { %1057 = vmatpush.bf16.msrb.mxu3 %v3182_v59  ;;  %v3811_v59 = vld [vmem:[#allocation5 + $0x4c] sm:$0xf0] }
 0x4c3   :  { %v3102_v61 = vor.u32 %v3811_v59, %v3101_v58 }
 0x4c6   :  { %1058 = vmatpush.bf16.msrb.mxu3 %v3166_v9  ;;  %v3807_v9 = vld [vmem:[#allocation5 + $0x2c] sm:$0xf0] }
 0x4c7   :  { %v3086_v13 = vor.u32 %v3807_v9, %v3085_v7  ;;  %v3854_v7 = vld [vmem:[#allocation7 + $0xa8] sm:$0xff]  ;;  %v3839_v9 = vld [vmem:[#allocation7 + $0x30] sm:$0xff] }
 0x4ca   :  { %1059 = vmatpush.bf16.msrb.mxu3 %v3150_v24 }
 0x4ce   :  { %1060 = vmatpush.bf16.msrb.mxu3 %v3134_v29  ;;  %v3079_v29 = vld [vmem:[#allocation5 + $0x18] sm:$0xf0] }
 0x4cf   :  { %v3082_v36 = vor.u32 %v3802_v33, %v3079_v29  ;;  %v3841_v33 = vld [vmem:[#allocation7 + $0x40] sm:$0xff] }
 0x52c   :  { %v847_v48 = vpop.xlane.xlu2 %846 }
 0x52d   :  { %v850_v49 = vmul.f32 %v847_v48, %v4227_v8  ;;  %v3119_v48 = vld [vmem:[#allocation5 + $0x70] sm:$0xf0] }
 0x52f   :  { %v4352_v50 = vsub.f32 %v844_v42, %v850_v49  ;;  %v3143_v42 = vld [vmem:[#allocation5 + $0x98] sm:$0xf0]  ;;  %v3125_v49 = vld [vmem:[#allocation5 + $0x68] sm:$0xf] }
 0x530   :  { %v3146_v43 = vor.u32 %v3818_v41, %v3143_v42 }
 0x531   :  { %v854_v51 = vmul.f32 %v4352_v50, %v4352_v50 }
 0x532   :  { %1102 = vmatpush.bf16.msrb.mxu2 %v3146_v43 }
 0x533   :  { %856 = vadd.xlane.f32.xlu2 %v854_v51  ;;  %v3816_v51 = vld [vmem:[#allocation5 + $0x74] sm:$0xf0] }
 0x534   :  { %v849_v52 = vpop.xlane.xlu2 %848 }
 0x535   :  { %v851_v55 = vmul.f32 %v849_v52, %v4227_v8  ;;  %v3122_v52 = vor.u32 %v3813_v46, %v3119_v48 }
 0x537   :  { %v4357_v53 = vsub.f32 %v845_v47, %v851_v55  ;;  %v3118_v47 = vor.u32 %v3815_v45, %v3117_v44  ;;  %v3126_v55 = vor.u32 %v3816_v51, %v3125_v49  ;;  %1075 = vmatpush.bf16.msra.mxu0 %v3122_v52 }
 0x539   :  { %v855_v54 = vmul.f32 %v4357_v53, %v4357_v53  ;;  %1061 = vmatpush.bf16.msrb.mxu3 %v3118_v47  ;;  %1089 = vmatpush.bf16.msrb.mxu1 %v3126_v55 }
 0x53b   :  { %858 = vadd.xlane.f32.xlu0 %v855_v54  ;;  %v3814_v54 = vld [vmem:[#allocation5 + $0x6c] sm:$0xf]  ;;  %1076 = vmatpush.bf16.msra.mxu0 %v3106_v2  ;;  %v3856_v2 = vld [vmem:[#allocation7 + $0xb8] sm:$0xff] }
 0x53c   :  { %v3130_v57 = vor.u32 %v3814_v54, %v3127_v56  ;;  %v886_v54 = vperm.slane %v4255_v11, 4 }
 0x53d   :  { %1062 = vmatpush.bf16.msrb.mxu3 %v3102_v61  ;;  %1090 = vmatpush.bf16.msrb.mxu1 %v3110_v3  ;;  %v3855_v3 = vld [vmem:[#allocation7 + $0xb0] sm:$0xff] }
 0x53e   :  { %1103 = vmatpush.bf16.msrb.mxu2 %v3130_v57 }
 0x53f   :  { %1077 = vmatpush.bf16.msra.mxu0 %v3090_v10  ;;  %v3852_v10 = vld [vmem:[#allocation7 + $0x98] sm:$0xff] }
 0x541   :  { %1063 = vmatpush.bf16.msrb.mxu3 %v3086_v13  ;;  %1091 = vmatpush.bf16.msrb.mxu1 %v3094_v20  ;;  %v3845_v13 = vld [vmem:[#allocation7 + $0x60] sm:$0xff] }
 0x542   :  { %1104 = vmatpush.bf16.msrb.mxu2 %v3114_v6  ;;  %v3846_v6 = vld [vmem:[#allocation7 + $0x68] sm:$0xff]  ;;  %v3837_v20 = vld [vmem:[#allocation7 + $0x20] sm:$0xff] }
 0x543   :  { %1078 = vmatpush.bf16.msra.mxu0 %v3074_v31  ;;  %v3835_v31 = vld [vmem:[#allocation7 + $0x10] sm:$0xff] }
 0x545   :  { %1064 = vmatpush.bf16.msrb.mxu3 %v3070_v30  ;;  %1092 = vmatpush.bf16.msrb.mxu1 %v3078_v35  ;;  %v895_v30 = vperm.slane %v4267_v0, 2  ;;  %v3858_v0 = vld [vmem:[#allocation7 + $0xc8] sm:$0xff] }
 0x546   :  { %1105 = vmatpush.bf16.msrb.mxu2 %v3098_v25  ;;  %v3860_v25 = vld [vmem:[#allocation7 + $0xd8] sm:$0xff] }
 0x549   :  { %1410 = vmatpush.bf16.msra.mxu1 %v3856_v2  ;;  %1382 = vmatpush.bf16.msra.mxu3 %v3840_v4 }
 0x54a   :  { %1106 = vmatpush.bf16.msrb.mxu2 %v3082_v36  ;;  %v285_v36 = vld [vmem:[%s4671_s7 + $0x18] sm:$0xff] }
 0x54d   :  { %1411 = vmatpush.bf16.msra.mxu1 %v3855_v3  ;;  %1383 = vmatpush.bf16.msra.mxu3 %v3839_v9 }
 0x54e   :  { %1424 = vmatpush.bf16.msra.mxu2 %v3864_v5 }
 0x551   :  { %1412 = vmatpush.bf16.msra.mxu1 %v3854_v7  ;;  %1384 = vmatpush.bf16.msra.mxu3 %v3838_v16 }
 0x552   :  { %1425 = vmatpush.bf16.msra.mxu2 %v3863_v12 }
 0x555   :  { %1413 = vmatpush.bf16.msra.mxu1 %v3853_v14  ;;  %1385 = vmatpush.bf16.msra.mxu3 %v3837_v20 }
 0x556   :  { %1426 = vmatpush.bf16.msra.mxu2 %v3862_v17 }
 0x559   :  { %1414 = vmatpush.bf16.msra.mxu1 %v3852_v10 }
 0x55a   :  { %1427 = vmatpush.bf16.msra.mxu2 %v3861_v21 }
 0x55d   :  { %1415 = vmatpush.bf16.msra.mxu1 %v3851_v23 }
 0x55e   :  { %1428 = vmatpush.bf16.msra.mxu2 %v3860_v25 }
 0x561   :  { %1416 = vmatpush.bf16.msra.mxu1 %v3850_v27 }
 0x562   :  { %1429 = vmatpush.bf16.msra.mxu2 %v3859_v32 }
 0x566   :  { %1430 = vmatpush.bf16.msra.mxu2 %v3858_v0 }
 0x5a6   :  { %v857_v18 = vpop.xlane.xlu2 %856 }
 0x5a7   :  { %v860_v24 = vmul.f32 %v857_v18, %v4227_v8  ;;  %v3844_v18 = vld [vmem:[#allocation7 + $0x58] sm:$0xff] }
 0x5a9   :  { %v862_v34 = vadd.f32 1e-12, %v860_v24  ;;  %v3836_v24 = vld [vmem:[#allocation7 + $0x18] sm:$0xff] }
 0x5aa   :  { %1386 = vmatpush.bf16.msra.mxu3 %v3836_v24 }
 0x5ab   :  { %4003 = vrsqrt.f32 %v862_v34  ;;  %vm870_vm14 = vweird.f32 %v862_v34 }
 0x5ae   :  { %v859_v37 = vpop.xlane.xlu0 %858  ;;  %1387 = vmatpush.bf16.msra.mxu3 %v3835_v31 }
 0x5af   :  { %v861_v38 = vmul.f32 %v859_v37, %v4227_v8 }
 0x5b1   :  { %v4004_v39 = vpop.eup %4003  ;;  %v863_v40 = vadd.f32 1e-12, %v861_v38 }
 0x5b2   :  { %v865_v41 = vmul.f32 %v4004_v39, %v862_v34  ;;  %vm871_vm13 = vweird.f32 %v4004_v39  ;;  %v3849_v34 = vld [vmem:[#allocation7 + $0x80] sm:$0xff]  ;;  %1388 = vmatpush.bf16.msra.mxu3 %v3834_v15 }
 0x5b3   :  { %4005 = vrsqrt.f32 %v863_v40  ;;  %vm872_vm15 = vmor %vm870_vm14, %vm871_vm13  ;;  %vm880_vm1 = vweird.f32 %v863_v40  ;;  %1417 = vmatpush.bf16.msra.mxu1 %v3849_v34 }
 0x5b4   :  { %v866_v42 = vmul.f32 %v4004_v39, %v865_v41  ;;  %v896_v41 = vperm.slane %v285_v36, 2 }
 0x5b6   :  { %v867_v43 = vmul.f32 0.5, %v866_v42 }
 0x5b8   :  { %v868_v44 = vsub.f32 1.5, %v867_v43 }
 0x5b9   :  { %v4006_v45 = vpop.eup %4005 }
 0x5ba   :  { %v869_v46 = vmul.f32 %v4004_v39, %v868_v44  ;;  %v875_v47 = vmul.f32 %v4006_v45, %v863_v40  ;;  %vm881_vm0 = vweird.f32 %v4006_v45 }
 0x5bb   :  { %vm882_vm2 = vmor %vm880_vm1, %vm881_vm0 }
 0x5bc   :  { %v876_v48 = vmul.f32 %v4006_v45, %v875_v47  ;;  %v873_v49 = vsel %vm872_vm15, %v4004_v39, %v869_v46  ;;  %v893_v39 = vperm.slane %v4255_v11, 2  ;;  %v3857_v46 = vld [vmem:[#allocation7 + $0xc0] sm:$0xff] }
 0x5bd   :  { %v884_v55 = vmul.f32 %v873_v49, %v4352_v50  ;;  %v3848_v50 = vld [vmem:[#allocation7 + $0x78] sm:$0xff]  ;;  %1431 = vmatpush.bf16.msra.mxu2 %v3857_v46 }
 0x5be   :  { %v877_v51 = vmul.f32 0.5, %v876_v48  ;;  %1396 = vmatpush.bf16.msrb.mxu0 %v3848_v50 }
 0x5bf   :  { %v887_v59 = vmul.f32 %v886_v54, %v884_v55 }
 0x5c0   :  { %v878_v52 = vsub.f32 1.5, %v877_v51 }
 0x5c1   :  { %v4367_v62 = vadd.f32 %v889_v60, %v887_v59 }
 0x5c2   :  { %v879_v56 = vmul.f32 %v4006_v45, %v878_v52 }
 0x5c4   :  { %v883_v57 = vsel %vm882_vm2, %v4006_v45, %v879_v56  ;;  %v3833_v45 = vld [vmem:[#allocation7] sm:$0xff] }
 0x5c5   :  { %v885_v58 = vmul.f32 %v883_v57, %v4357_v53  ;;  %v3847_v53 = vld [vmem:[#allocation7 + $0x70] sm:$0xff]  ;;  %1389 = vmatpush.bf16.msra.mxu3 %v3833_v45 }
 0x5c6   :  { %1397 = vmatpush.bf16.msrb.mxu0 %v3847_v53 }
 0x5c7   :  { %v888_v61 = vmul.f32 %v886_v54, %v885_v58 }
 0x5c9   :  { %v4369_v63 = vadd.f32 %v889_v60, %v888_v61 }
 0x5ca   :  { %1398 = vmatpush.bf16.msrb.mxu0 %v3846_v6 }
 0x5cb   :  { %v892_v1 = vpack.c.bf16 %v4369_v63, %v4367_v62 }
 0x5cd   :  { %1065 = vmatmul.bf16.vlgmr.msrb.gmra.mxu3 %v892_v1  ;;  %1079 = vmatmul.bf16.vlgmr.msra.gmra.mxu0 %v892_v1 }
 0x5ce   :  { %1093 = vmatmul.bf16.vlgmr.msrb.gmra.mxu1 %v892_v1  ;;  %1107 = vmatmul.bf16.vlgmr.msrb.gmra.mxu2 %v892_v1 }
 0x5cf   :  { %1399 = vmatpush.bf16.msrb.mxu0 %v3845_v13 }
 0x5d3   :  { %1400 = vmatpush.bf16.msrb.mxu0 %v3844_v18 }
 0x5d7   :  { %1401 = vmatpush.bf16.msrb.mxu0 %v3843_v22 }
 0x5db   :  { %1402 = vmatpush.bf16.msrb.mxu0 %v3842_v26 }
 0x5df   :  { %1403 = vmatpush.bf16.msrb.mxu0 %v3841_v33 }
 0x64a   :  { %v1080_v19 = vpop.f32.mrf.mxu0 }
 0x64b   :  { %v4375_v35 = vadd.f32 %v1080_v19, %v894_v28  ;;  %v1094_v29 = vpop.f32.mrf.mxu1 }
 0x64c   :  { %v4380_v37 = vadd.f32 %v1094_v29, %v895_v30 }
 0x64d   :  { %v1114_v38 = vmul.f32 %v4375_v35, %v4375_v35 }
 0x64e   :  { %v1115_v40 = vmul.f32 %v4380_v37, %v4380_v37 }
 0x64f   :  { %v1122_v42 = vmul.f32 %v1114_v38, %v4375_v35 }
 0x650   :  { %v1123_v43 = vmul.f32 %v1115_v40, %v4380_v37  ;;  %v1066_v44 = vpop.f32.mrf.mxu3 }
 0x651   :  { %v1130_v47 = vmul.f32 0.044715, %v1122_v42  ;;  %v4389_v48 = vadd.f32 %v1066_v44, %v893_v39  ;;  %v1108_v49 = vpop.f32.mrf.mxu2 }
 0x652   :  { %v1131_v51 = vmul.f32 0.044715, %v1123_v43  ;;  %v4391_v52 = vadd.f32 %v1108_v49, %v896_v41  ;;  %v1082_v11 = vpop.f32.mrf.mxu0 }
 0x653   :  { %v1138_v55 = vadd.f32 %v1130_v47, %v4375_v35  ;;  %v1113_v54 = vmul.f32 %v4389_v48, %v4389_v48  ;;  %v4396_v56 = vadd.f32 %v1082_v11, %v894_v28  ;;  %v1096_v57 = vpop.f32.mrf.mxu1 }
 0x654   :  { %v1139_v58 = vadd.f32 %v1131_v51, %v4380_v37  ;;  %v1116_v59 = vmul.f32 %v4391_v52, %v4391_v52  ;;  %v4401_v60 = vadd.f32 %v1096_v57, %v895_v30 }
 0x655   :  { %v1146_v61 = vmul.f32 0.7978846, %v1138_v55  ;;  %v1121_v1 = vmul.f32 %v1113_v54, %v4389_v48  ;;  %v1118_v50 = vmul.f32 %v4396_v56, %v4396_v56 }
 0x656   :  { %v1147_v2 = vmul.f32 0.7978846, %v1139_v58  ;;  %v1124_v53 = vmul.f32 %v1116_v59, %v4391_v52  ;;  %v1119_v3 = vmul.f32 %v4401_v60, %v4401_v60 }
 0x657   :  { %v1129_v4 = vmul.f32 0.044715, %v1121_v1  ;;  %v1126_v5 = vmul.f32 %v1118_v50, %v4396_v56  ;;  %4007 = vtanh.f32 %v1146_v61 }
 0x658   :  { %v1132_v6 = vmul.f32 0.044715, %v1124_v53  ;;  %v1127_v7 = vmul.f32 %v1119_v3, %v4401_v60  ;;  %v1068_v9 = vpop.f32.mrf.mxu3  ;;  %4009 = vtanh.f32 %v1147_v2 }
 0x659   :  { %v1137_v12 = vadd.f32 %v1129_v4, %v4389_v48  ;;  %v1134_v13 = vmul.f32 0.044715, %v1126_v5  ;;  %v1069_v14 = vadd.f32 %v1068_v9, %v893_v39  ;;  %v1110_v16 = vpop.f32.mrf.mxu2 }
 0x65a   :  { %v1140_v17 = vadd.f32 %v1132_v6, %v4391_v52  ;;  %v1135_v18 = vmul.f32 0.044715, %v1127_v7  ;;  %v1111_v10 = vadd.f32 %v1110_v16, %v896_v41 }
 0x65b   :  { %v1145_v20 = vmul.f32 0.7978846, %v1137_v12  ;;  %v1142_v21 = vadd.f32 %v1134_v13, %v4396_v56  ;;  %v1117_v22 = vmul.f32 %v1069_v14, %v1069_v14 }
 0x65c   :  { %v1148_v23 = vmul.f32 0.7978846, %v1140_v17  ;;  %v1143_v24 = vadd.f32 %v1135_v18, %v4401_v60  ;;  %v1120_v25 = vmul.f32 %v1111_v10, %v1111_v10 }
 0x65d   :  { %4011 = vtanh.f32 %v1145_v20  ;;  %v1150_v26 = vmul.f32 0.7978846, %v1142_v21  ;;  %v1125_v27 = vmul.f32 %v1117_v22, %v1069_v14  ;;  %v4008_v31 = vpop.eup %4007 }
 0x65e   :  { %4013 = vtanh.f32 %v1148_v23  ;;  %v1151_v28 = vmul.f32 0.7978846, %v1143_v24  ;;  %v1128_v30 = vmul.f32 %v1120_v25, %v1111_v10  ;;  %v4010_v19 = vpop.eup %4009  ;;  %v1162_v29 = vadd.f32 1.0, %v4008_v31 }
 0x65f   :  { %4015 = vtanh.f32 %v1150_v26  ;;  %v1133_v32 = vmul.f32 0.044715, %v1125_v27  ;;  %v1163_v0 = vadd.f32 1.0, %v4010_v19 }
 0x660   :  { %4017 = vtanh.f32 %v1151_v28  ;;  %v1136_v33 = vmul.f32 0.044715, %v1128_v30  ;;  %v1170_v43 = vmul.f32 0.5, %v1162_v29 }
 0x661   :  { %v1141_v34 = vadd.f32 %v1133_v32, %v1069_v14  ;;  %v1171_v45 = vmul.f32 0.5, %v1163_v0  ;;  %v3887_v0 = vld [vmem:[#allocation3 + $0x170] sm:$0xf0] }
 0x662   :  { %v1144_v36 = vadd.f32 %v1136_v33, %v1111_v10  ;;  %v1178_v55 = vmul.f32 %v1170_v43, %v4375_v35 }
 0x663   :  { %v4012_v15 = vpop.eup %4011  ;;  %v1149_v38 = vmul.f32 0.7978846, %v1141_v34  ;;  %v1179_v58 = vmul.f32 %v1171_v45, %v4380_v37  ;;  %v3417_v45 = vld [vmem:[#allocation3 + $0x150] sm:$0xf] }
 0x664   :  { %v4014_v39 = vpop.eup %4013  ;;  %v1152_v40 = vmul.f32 0.7978846, %v1144_v36  ;;  %v1161_v47 = vadd.f32 1.0, %v4012_v15 }
 0x665   :  { %v4016_v41 = vpop.eup %4015  ;;  %4019 = vtanh.f32 %v1149_v38  ;;  %v1164_v51 = vadd.f32 1.0, %v4014_v39  ;;  %v3886_v38 = vld [vmem:[#allocation3 + $0x16c] sm:$0xf] }
 0x666   :  { %v4018_v42 = vpop.eup %4017  ;;  %v1166_v44 = vadd.f32 1.0, %v4016_v41  ;;  %4021 = vtanh.f32 %v1152_v40  ;;  %v1169_v1 = vmul.f32 0.5, %v1161_v47  ;;  %v3431_v40 = vld [vmem:[#allocation3 + $0x174] sm:$0xf0]  ;;  %v3437_v41 = vld [vmem:[#allocation3 + $0x170] sm:$0xf] }
 0x667   :  { %v1167_v46 = vadd.f32 1.0, %v4018_v42  ;;  %v1172_v53 = vmul.f32 0.5, %v1164_v51  ;;  %v3888_v42 = vld [vmem:[#allocation3 + $0x178] sm:$0xf0]  ;;  %v3434_v43 = vor.u32 %v3886_v38, %v3431_v40  ;;  %v3883_v47 = vld [vmem:[#allocation3 + $0x154] sm:$0xf] }
 0x668   :  { %v1174_v49 = vmul.f32 0.5, %v1166_v44  ;;  %v1177_v35 = vmul.f32 %v1169_v1, %v4389_v48  ;;  %v3438_v44 = vor.u32 %v3888_v42, %v3437_v41  ;;  %v3419_v51 = vld [vmem:[#allocation3 + $0x15c] sm:$0xf0]  ;;  %v3866_v41 = vld [vmem:[#allocation3 + $0xc8] sm:$0xf0] }
 0x669   :  { %v1175_v11 = vmul.f32 0.5, %v1167_v46  ;;  %1785 = vmatpush.bf16.msra.mxu0 %v3434_v43  ;;  %v3884_v46 = vld [vmem:[#allocation3 + $0x158] sm:$0xf0]  ;;  %v3345_v40 = vld [vmem:[#allocation3 + $0xc0] sm:$0xf] }
 0x66a   :  { %v1182_v54 = vmul.f32 %v1174_v49, %v4396_v56  ;;  %v1180_v56 = vmul.f32 %v1172_v53, %v4391_v52  ;;  %1799 = vmatpush.bf16.msrb.mxu1 %v3438_v44  ;;  %v3418_v49 = vor.u32 %v3884_v46, %v3417_v45  ;;  %v3882_v53 = vld [vmem:[#allocation3 + $0x148] sm:$0xf0]  ;;  %v3865_v42 = vld [vmem:[#allocation3 + $0xc4] sm:$0xf]  ;;  %v3346_v44 = vor.u32 %v3866_v41, %v3345_v40  ;;  %v3347_v45 = vld [vmem:[#allocation3 + $0xcc] sm:$0xf0] }
 0x66b   :  { %v4020_v57 = vpop.eup %4019  ;;  %v1183_v59 = vmul.f32 %v1175_v11, %v4401_v60  ;;  %v4424_v60 = vld [vmem:[%s4671_s7] sm:$0xff]  ;;  %v3425_v11 = vld [vmem:[#allocation3 + $0x158] sm:$0xf]  ;;  %v3353_v46 = vld [vmem:[#allocation3 + $0xc8] sm:$0xf] }
 0x66c   :  { %v4022_v61 = vpop.eup %4021  ;;  %v1165_v50 = vadd.f32 1.0, %v4020_v57  ;;  %v1186_v2 = vpack.c.bf16 %v1182_v54, %v1178_v55  ;;  %v1189_v13 = vperm.slane %v4424_v60, 3  ;;  %v3885_v55 = vld [vmem:[#allocation3 + $0x160] sm:$0xf0]  ;;  %v3422_v54 = vor.u32 %v3883_v47, %v3419_v51  ;;  %v3867_v47 = vld [vmem:[#allocation3 + $0xd0] sm:$0xf0] }
 0x66d   :  { %v1168_v3 = vadd.f32 1.0, %v4022_v61  ;;  %v1187_v4 = vpack.c.bf16 %v1183_v59, %v1179_v58  ;;  %v3426_v57 = vor.u32 %v3885_v55, %v3425_v11  ;;  %v3405_v58 = vld [vmem:[#allocation3 + $0x138] sm:$0xf]  ;;  %v3881_v59 = vld [vmem:[#allocation3 + $0x140] sm:$0xf0]  ;;  %v3354_v51 = vor.u32 %v3867_v47, %v3353_v46 }
 0x66e   :  { %v1173_v5 = vmul.f32 0.5, %v1165_v50  ;;  %1404 = vmatmul.bf16.vlgmr.msrb.gmra.mxu0 %v1186_v2  ;;  %v3880_v61 = vld [vmem:[#allocation3 + $0x13c] sm:$0xf]  ;;  %v3406_v1 = vor.u32 %v3881_v59, %v3405_v58  ;;  %v3407_v50 = vld [vmem:[#allocation3 + $0x144] sm:$0xf0] }
 0x66f   :  { %v1176_v6 = vmul.f32 0.5, %v1168_v3  ;;  %1418 = vmatmul.bf16.vlgmr.msra.gmra.mxu1 %v1187_v4  ;;  %1786 = vmatpush.bf16.msra.mxu0 %v3422_v54  ;;  %v3413_v2 = vld [vmem:[#allocation3 + $0x140] sm:$0xf]  ;;  %v3410_v3 = vor.u32 %v3880_v61, %v3407_v50 }
 0x670   :  { %v1181_v7 = vmul.f32 %v1173_v5, %v1069_v14  ;;  %1800 = vmatpush.bf16.msrb.mxu1 %v3426_v57  ;;  %v3414_v4 = vor.u32 %v3882_v53, %v3413_v2  ;;  %v3393_v5 = vld [vmem:[#allocation3 + $0x120] sm:$0xf] }
 0x671   :  { %v1184_v9 = vmul.f32 %v1176_v6, %v1111_v10  ;;  %v3878_v6 = vld [vmem:[#allocation3 + $0x128] sm:$0xf0] }
 0x672   :  { %v1185_v37 = vpack.c.bf16 %v1181_v7, %v1177_v35  ;;  %v3877_v35 = vld [vmem:[#allocation3 + $0x124] sm:$0xf]  ;;  %v3394_v7 = vor.u32 %v3878_v6, %v3393_v5 }
 0x673   :  { %v1188_v12 = vpack.c.bf16 %v1184_v9, %v1180_v56  ;;  %1787 = vmatpush.bf16.msra.mxu0 %v3410_v3  ;;  %v3395_v56 = vld [vmem:[#allocation3 + $0x12c] sm:$0xf0]  ;;  %v3401_v9 = vld [vmem:[#allocation3 + $0x128] sm:$0xf] }
 0x674   :  { %1390 = vmatmul.bf16.vlgmr.msra.gmra.mxu3 %v1185_v37  ;;  %1801 = vmatpush.bf16.msrb.mxu1 %v3414_v4  ;;  %v3879_v37 = vld [vmem:[#allocation3 + $0x130] sm:$0xf0] }
 0x675   :  { %1432 = vmatmul.bf16.vlgmr.msra.gmra.mxu2 %v1188_v12  ;;  %v3398_v12 = vor.u32 %v3877_v35, %v3395_v56  ;;  %v1480_v56 = vperm.slane %v4424_v60, 6 }
 0x677   :  { %1788 = vmatpush.bf16.msra.mxu0 %v3398_v12 }
 0x6eb   :  { %v1405_v16 = vpop.f32.mrf.mxu0 }
 0x6ec   :  { %v1419_v20 = vpop.f32.mrf.mxu1 }
 0x6f3   :  { %v1407_v24 = vpop.f32.mrf.mxu0 }
 0x6f4   :  { %v1421_v26 = vpop.f32.mrf.mxu1 }
 0x6f7   :  { %v1391_v17 = vpop.f32.mrf.mxu3 }
 0x6f8   :  { %v1392_v18 = vadd.f32 %v1391_v17, %v1189_v13  ;;  %v1433_v14 = vpop.f32.mrf.mxu2  ;;  %v3875_v17 = vld [vmem:[#allocation3 + $0x110] sm:$0xf0] }
 0x6fa   :  { %v1406_v48 = vadd.f32 %v1405_v16, %v1392_v18  ;;  %v3381_v16 = vld [vmem:[#allocation3 + $0x108] sm:$0xf]  ;;  %v3874_v18 = vld [vmem:[#allocation3 + $0x10c] sm:$0xf] }
 0x6fc   :  { %v1420_v21 = vadd.f32 %v1419_v20, %v1406_v48  ;;  %v3382_v20 = vor.u32 %v3875_v17, %v3381_v16  ;;  %v3383_v48 = vld [vmem:[#allocation3 + $0x114] sm:$0xf0]  ;;  %v1483_v16 = vperm.slane %v4424_v60, 7  ;;  %v4459_v60 = vld [vmem:[%s4671_s7 + $0x30] sm:$0xff] }
 0x6fe   :  { %v1434_v52 = vadd.f32 %v1433_v14, %v1420_v21  ;;  %v3389_v14 = vld [vmem:[#allocation3 + $0x110] sm:$0xf]  ;;  %v3876_v21 = vld [vmem:[#allocation3 + $0x118] sm:$0xf0] }
 0x6ff   :  { %v1393_v10 = vpop.f32.mrf.mxu3 }
 0x700   :  { %v1394_v22 = vadd.f32 %v1393_v10, %v1189_v13  ;;  %v1438_v23 = vadd.f32 %v1434_v52, %v4367_v62  ;;  %v1435_v28 = vpop.f32.mrf.mxu2  ;;  %v3402_v13 = vor.u32 %v3879_v37, %v3401_v9  ;;  %v3386_v52 = vor.u32 %v3874_v18, %v3383_v48 }
 0x701   :  { %v3390_v10 = vor.u32 %v3876_v21, %v3389_v14  ;;  %v1642_v14 = vperm.slane %v4459_v60, 0 }
 0x702   :  { %v1408_v25 = vadd.f32 %v1407_v24, %v1394_v22  ;;  %1440 = vadd.xlane.f32.xlu1 %v1438_v23  ;;  %1802 = vmatpush.bf16.msrb.mxu1 %v3402_v13  ;;  %v3369_v22 = vld [vmem:[#allocation3 + $0xf0] sm:$0xf]  ;;  %v3871_v24 = vld [vmem:[#allocation3 + $0xf4] sm:$0xf] }
 0x703   :  { %1789 = vmatpush.bf16.msra.mxu0 %v3386_v52  ;;  %v4466_v52 = vld [vmem:[%s4671_s7 + $0x20] sm:$0xff] }
 0x704   :  { %v1422_v27 = vadd.f32 %v1421_v26, %v1408_v25  ;;  %v3371_v26 = vld [vmem:[#allocation3 + $0xfc] sm:$0xf0] }
 0x706   :  { %v1436_v30 = vadd.f32 %v1435_v28, %v1422_v27  ;;  %1803 = vmatpush.bf16.msrb.mxu1 %v3390_v10  ;;  %v3377_v27 = vld [vmem:[#allocation3 + $0xf8] sm:$0xf]  ;;  %v3873_v28 = vld [vmem:[#allocation3 + $0x100] sm:$0xf0] }
 0x708   :  { %v1439_v31 = vadd.f32 %v1436_v30, %v4369_v63  ;;  %v3429_v63 = vld [vmem:[#allocation3 + $0x168] sm:$0xf]  ;;  %v3374_v30 = vor.u32 %v3871_v24, %v3371_v26 }
 0x709   :  { %v3430_v39 = vor.u32 %v3887_v0, %v3429_v63  ;;  %v3870_v63 = vld [vmem:[#allocation3 + $0xe8] sm:$0xf0] }
 0x70a   :  { %1442 = vadd.xlane.f32.xlu2 %v1439_v31  ;;  %1790 = vmatpush.bf16.msra.mxu0 %v3374_v30 }
 0x70b   :  { %1771 = vmatpush.bf16.msrb.mxu3 %v3430_v39 }
 0x70f   :  { %1772 = vmatpush.bf16.msrb.mxu3 %v3418_v49  ;;  %v3350_v49 = vor.u32 %v3865_v42, %v3347_v45 }
 0x713   :  { %1773 = vmatpush.bf16.msrb.mxu3 %v3406_v1 }
 0x717   :  { %1774 = vmatpush.bf16.msrb.mxu3 %v3394_v7 }
 0x71b   :  { %1775 = vmatpush.bf16.msrb.mxu3 %v3382_v20 }
 0x775   :  { %v1441_v32 = vpop.xlane.xlu1 %1440 }
 0x776   :  { %v1444_v19 = vmul.f32 %v1441_v32, %v4227_v8  ;;  %v3357_v32 = vld [vmem:[#allocation3 + $0xd8] sm:$0xf] }
 0x778   :  { %v4430_v33 = vsub.f32 %v1438_v23, %v1444_v19  ;;  %v3872_v23 = vld [vmem:[#allocation3 + $0xf8] sm:$0xf0]  ;;  %v3869_v19 = vld [vmem:[#allocation3 + $0xe0] sm:$0xf0] }
 0x779   :  { %v3370_v25 = vor.u32 %v3872_v23, %v3369_v22 }
 0x77a   :  { %v1448_v34 = vmul.f32 %v4430_v33, %v4430_v33 }
 0x77b   :  { %1776 = vmatpush.bf16.msrb.mxu3 %v3370_v25  ;;  %v1640_v25 = vperm.slane %v4466_v52, 0 }
 0x77c   :  { %1450 = vadd.xlane.f32.xlu2 %v1448_v34  ;;  %v3868_v34 = vld [vmem:[#allocation3 + $0xdc] sm:$0xf] }
 0x77d   :  { %v1443_v62 = vpop.xlane.xlu2 %1442 }
 0x77e   :  { %v1445_v29 = vmul.f32 %v1443_v62, %v4227_v8  ;;  %v3358_v62 = vor.u32 %v3869_v19, %v3357_v32 }
 0x780   :  { %v4435_v36 = vsub.f32 %v1439_v31, %v1445_v29  ;;  %v3378_v31 = vor.u32 %v3873_v28, %v3377_v27  ;;  %v3359_v29 = vld [vmem:[#allocation3 + $0xe4] sm:$0xf0]  ;;  %1777 = vmatpush.bf16.msrb.mxu3 %v3358_v62 }
 0x781   :  { %v3362_v38 = vor.u32 %v3868_v34, %v3359_v29 }
 0x782   :  { %v1449_v15 = vmul.f32 %v4435_v36, %v4435_v36  ;;  %1804 = vmatpush.bf16.msrb.mxu1 %v3378_v31 }
 0x783   :  { %1791 = vmatpush.bf16.msra.mxu0 %v3362_v38 }
 0x784   :  { %1452 = vadd.xlane.f32.xlu2 %v1449_v15  ;;  %v3365_v15 = vld [vmem:[#allocation3 + $0xe0] sm:$0xf]  ;;  %1778 = vmatpush.bf16.msrb.mxu3 %v3346_v44 }
 0x785   :  { %v3366_v39 = vor.u32 %v3870_v63, %v3365_v15 }
 0x787   :  { %1805 = vmatpush.bf16.msrb.mxu1 %v3366_v39  ;;  %1792 = vmatpush.bf16.msra.mxu0 %v3350_v49 }
 0x78b   :  { %1806 = vmatpush.bf16.msrb.mxu1 %v3354_v51 }
 0x7ef   :  { %v1451_v0 = vpop.xlane.xlu2 %1450 }
 0x7f0   :  { %v1454_v43 = vmul.f32 %v1451_v0, %v4227_v8 }
 0x7f2   :  { %v1456_v11 = vadd.f32 1e-12, %v1454_v43 }
 0x7f4   :  { %4023 = vrsqrt.f32 %v1456_v11  ;;  %vm1464_vm4 = vweird.f32 %v1456_v11 }
 0x7f7   :  { %v1453_v55 = vpop.xlane.xlu2 %1452 }
 0x7f8   :  { %v1455_v54 = vmul.f32 %v1453_v55, %v4227_v8 }
 0x7fa   :  { %v4024_v57 = vpop.eup %4023  ;;  %v1457_v58 = vadd.f32 1e-12, %v1455_v54 }
 0x7fb   :  { %v1459_v59 = vmul.f32 %v4024_v57, %v1456_v11  ;;  %vm1465_vm3 = vweird.f32 %v4024_v57 }
 0x7fc   :  { %4025 = vrsqrt.f32 %v1457_v58  ;;  %vm1466_vm5 = vmor %vm1464_vm4, %vm1465_vm3  ;;  %vm1474_vm10 = vweird.f32 %v1457_v58 }
 0x7fd   :  { %v1460_v61 = vmul.f32 %v4024_v57, %v1459_v59 }
 0x7ff   :  { %v1461_v1 = vmul.f32 0.5, %v1460_v61 }
 0x801   :  { %v1462_v50 = vsub.f32 1.5, %v1461_v1  ;;  %v4070_v1 = vld [vmem:[%s4665_s1] ss:$0 sm:$0xff] }
 0x802   :  { %v4026_v2 = vpop.eup %4025 }
 0x803   :  { %v1463_v53 = vmul.f32 %v4024_v57, %v1462_v50  ;;  %v1469_v3 = vmul.f32 %v4026_v2, %v1457_v58  ;;  %vm1475_vm6 = vweird.f32 %v4026_v2 }
 0x804   :  { %vm1476_vm11 = vmor %vm1474_vm10, %vm1475_vm6 }
 0x805   :  { %v1470_v4 = vmul.f32 %v4026_v2, %v1469_v3  ;;  %v1467_v5 = vsel %vm1466_vm5, %v4024_v57, %v1463_v53 }
 0x806   :  { %v1478_v7 = vmul.f32 %v1467_v5, %v4430_v33  ;;  %v4454_v33 = vld [vmem:[%s4671_s7 + $0x28] sm:$0xff] }
 0x807   :  { %v1471_v6 = vmul.f32 0.5, %v1470_v4  ;;  %v4071_v4 = vld [vmem:[%s4665_s1 + $0x1] ss:$0 sm:$0xff] }
 0x808   :  { %v1481_v13 = vmul.f32 %v1480_v56, %v1478_v7 }
 0x809   :  { %v1472_v35 = vsub.f32 1.5, %v1471_v6 }
 0x80a   :  { %v4445_v18 = vadd.f32 %v1483_v16, %v1481_v13 }
 0x80b   :  { %v1473_v9 = vmul.f32 %v4026_v2, %v1472_v35 }
 0x80d   :  { %v1477_v37 = vsel %vm1476_vm11, %v4026_v2, %v1473_v9 }
 0x80e   :  { %v1479_v12 = vmul.f32 %v1477_v37, %v4435_v36  ;;  %v1641_v36 = vperm.slane %v4454_v33, 0 }
 0x810   :  { %v1482_v17 = vmul.f32 %v1480_v56, %v1479_v12 }
 0x812   :  { %v4447_v20 = vadd.f32 %v1483_v16, %v1482_v17 }
 0x814   :  { %v1639_v48 = vpack.c.bf16 %v4447_v20, %v4445_v18 }
 0x816   :  { %1779 = vmatmul.bf16.vlgmr.msrb.gmra.mxu3 %v1639_v48  ;;  %1793 = vmatmul.bf16.vlgmr.msra.gmra.mxu0 %v1639_v48 }
 0x817   :  { %1807 = vmatmul.bf16.vlgmr.msrb.gmra.mxu1 %v1639_v48 }
 0x893   :  { %v1794_v21 = vpop.f32.mrf.mxu0 }
 0x894   :  { %v1795_v10 = vadd.f32 %v1794_v21, %v1641_v36  ;;  %v1808_v22 = vpop.f32.mrf.mxu1 }
 0x895   :  { %v1809_v23 = vadd.f32 %v1808_v22, %v1642_v14 }
 0x896   :  { %v1815_v24 = vpack.c.bf16 %v1795_v10, %v1795_v10 }
 0x897   :  { %v4469_v26 = vpack.c.bf16 %v1809_v23, %v1809_v23 }
 0x898   :  { %v1821_v27 = vsel %vm470_vm7, %v1815_v24, 0  ;;  %v1952_v28 = vunpack.c.l.b16 %v1815_v24 }
 0x899   :  { %v1911_v30 = vsel %vm565_vm8, %v4469_v26, 0  ;;  %v1780_v31 = vpop.f32.mrf.mxu3  ;;  %1830 = vmatpush.bf16.xpose.msrb.mxu2 %v1821_v27 }
 0x89a   :  { %v1781_v32 = vadd.f32 %v1780_v31, %v1640_v25  ;;  %1920 = vmatpush.bf16.msra.mxu3 %v1911_v30  ;;  %v1953_v19 = vpack.c.b16 %v1952_v28, %v1952_v28  ;;  %v2055_v28 = vunpack.c.l.b16 %v4469_v26 }
 0x89b   :  { %v1796_v34 = vpop.f32.mrf.mxu0 }
 0x89c   :  { %v1813_v62 = vpack.c.bf16 %v1781_v32, %v1781_v32  ;;  %v1797_v29 = vadd.f32 %v1796_v34, %v1641_v36  ;;  %v1810_v15 = vpop.f32.mrf.mxu1  ;;  %1954 = vrot.lane.b32.xlu2 %v1953_v19, %s4157_s27  ;;  %v2056_v30 = vpack.c.b16 %v2055_v28, %v2055_v28 }
 0x89d   :  { %v1811_v63 = vadd.f32 %v1810_v15, %v1642_v14 }
 0x89e   :  { %v1816_v0 = vpack.c.bf16 %v1797_v29, %v1797_v29  ;;  %v1947_v38 = vunpack.c.l.b16 %v1813_v62 }
 0x89f   :  { %v4475_v39 = vpack.c.bf16 %v1811_v63, %v1811_v63 }
 0x8a0   :  { %v1840_v40 = vsel %vm470_vm7, %v1816_v0, 0  ;;  %3439 = vmatmul.msk.bf16.vlgmr.msrb.gmra.mxu2 %vm470_vm7, %v1813_v62  ;;  %v1948_v41 = vpack.c.b16 %v1947_v38, %v1947_v38  ;;  %v1981_v42 = vunpack.c.l.b16 %v1816_v0 }
 0x8a1   :  { %v1930_v43 = vsel %vm565_vm8, %v4475_v39, 0  ;;  %v1782_v44 = vpop.f32.mrf.mxu3  ;;  %1849 = vmatpush.bf16.xpose.msra.mxu2 %v1840_v40 }
 0x8a2   :  { %v1783_v45 = vadd.f32 %v1782_v44, %v1640_v25  ;;  %1939 = vmatpush.bf16.msrb.mxu0 %v1930_v43  ;;  %1949 = vrot.lane.b32.xlu1 %v1948_v41, %s4157_s27  ;;  %v1982_v46 = vpack.c.b16 %v1981_v42, %v1981_v42  ;;  %v2079_v42 = vunpack.c.l.b16 %v4475_v39 }
 0x8a4   :  { %v1814_v47 = vpack.c.bf16 %v1783_v45, %v1783_v45  ;;  %1983 = vrot.lane.b32.xlu0 %v1982_v46, %s4157_s27 }
 0x8a6   :  { %v1976_v49 = vunpack.c.l.b16 %v1814_v47 }
 0x8a8   :  { %v1977_v51 = vpack.c.b16 %v1976_v49, %v1976_v49  ;;  %v2080_v49 = vpack.c.b16 %v2079_v42, %v2079_v42 }
 0x8aa   :  { %1978 = vrot.lane.b32.xlu2 %v1977_v51, %s4157_s27 }
 0x8b0   :  { %3440 = vmatmul.msk.bf16.vlgmr.msra.gmra.mxu2 %vm470_vm7, %v1814_v47 }
 0x8f6   :  { %v1955_v11 = vpop.permute.xlu2 %1954 }
 0x8f7   :  { %v1960_v55 = vsel %vm470_vm7, %v1955_v11, 0 }
 0x8f8   :  { %1969 = vmatpush.bf16.xpose.msra.mxu1 %v1960_v55 }
 0x904   :  { %v1979_v59 = vpop.permute.xlu2 %1978 }
 0x914   :  { %v1950_v54 = vpop.permute.xlu1 %1949 }
 0x915   :  { %3443 = vmatmul.msk.bf16.vlgmr.msra.gmra.mxu1 %vm470_vm7, %v1950_v54 }
 0x916   :  { %v1984_v57 = vpop.permute.xlu0 %1983 }
 0x917   :  { %v1989_v58 = vsel %vm470_vm7, %v1984_v57, 0 }
 0x918   :  { %1998 = vmatpush.bf16.xpose.msrb.mxu2 %v1989_v58 }
 0x91f   :  { %3444 = vmatmul.msk.bf16.vlgmr.msrb.gmra.mxu2 %vm470_vm7, %v1979_v59 }
 0x923   :  { %v1832_v61 = vpop.f32.mrf.mxu2 }
 0x924   :  { %v1833_v50 = vadd.f32 %v4070_v1, %v1832_v61 }
 0x926   :  { %v1855_v2 = vsel %vm509_vm9, %v1833_v50, -inf }
 0x927   :  { %1856 = vmax.xlane.f32.xlu0 %v1855_v2 }
 0x92b   :  { %v1834_v53 = vpop.f32.mrf.mxu2 }
 0x933   :  { %v1851_v3 = vpop.f32.mrf.mxu2 }
 0x934   :  { %v1852_v5 = vadd.f32 %v4071_v4, %v1851_v3 }
 0x936   :  { %v1858_v6 = vsel %vm509_vm9, %v1852_v5, -inf }
 0x937   :  { %1859 = vmax.xlane.f32.xlu2 %v1858_v6 }
 0x93b   :  { %v1853_v35 = vpop.f32.mrf.mxu2 }
 0x992   :  { %v1971_v7 = vpop.f32.mrf.mxu1 }
 0x993   :  { %v1972_v56 = vadd.f32 %v4070_v1, %v1971_v7 }
 0x995   :  { %v2004_v9 = vsel %vm509_vm9, %v1972_v56, -inf }
 0x996   :  { %2005 = vmax.xlane.f32.xlu1 %v2004_v9 }
 0x99a   :  { %v1973_v37 = vpop.f32.mrf.mxu1  ;;  %v1857_v12 = vpop.xlane.xlu0 %1856 }
 0x99b   :  { %v1861_v13 = vsub.f32 %v1833_v50, %v1857_v12  ;;  %v3892_v37 = vld [vmem:[%s4668_s4 + $0x58] sm:$0xff] }
 0x99c   :  { %2175 = vmatpush.bf16.msra.mxu2 %v3892_v37 }
 0x99d   :  { %v1863_v16 = vmul.f32 1.442695, %v1861_v13 }
 0x99f   :  { %4027 = vpow2.f32 %v1863_v16 }
 0x9a2   :  { %v2000_v17 = vpop.f32.mrf.mxu2 }
 0x9a3   :  { %v2001_v48 = vadd.f32 %v4071_v4, %v2000_v17  ;;  %v3891_v17 = vld [vmem:[%s4668_s4 + $0x50] sm:$0xff] }
 0x9a4   :  { %2176 = vmatpush.bf16.msra.mxu2 %v3891_v17 }
 0x9a5   :  { %v4028_v36 = vpop.eup %4027  ;;  %v2007_v14 = vsel %vm509_vm9, %v2001_v48, -inf }
 0x9a6   :  { %2008 = vmax.xlane.f32.xlu0 %v2007_v14  ;;  %v1867_v21 = vsel %vm509_vm9, %v4028_v36, 0.0 }
 0x9a7   :  { %1868 = vadd.xlane.f32.xlu2 %v1867_v21  ;;  %v3890_v21 = vld [vmem:[%s4668_s4 + $0x48] sm:$0xff] }
 0x9a8   :  { %2177 = vmatpush.bf16.msra.mxu2 %v3890_v21  ;;  %v3597_v21 = vld [vmem:[#allocation5 + $0x1f0] sm:$0xf0] }
 0x9aa   :  { %v2002_v10 = vpop.f32.mrf.mxu2  ;;  %v1860_v22 = vpop.xlane.xlu2 %1859 }
 0x9ab   :  { %v1862_v23 = vsub.f32 %v1852_v5, %v1860_v22 }
 0x9ad   :  { %v1865_v24 = vmul.f32 1.442695, %v1862_v23 }
 0x9af   :  { %4029 = vpow2.f32 %v1865_v24 }
 0x9b5   :  { %v4030_v25 = vpop.eup %4029 }
 0x9b6   :  { %v1870_v27 = vsel %vm509_vm9, %v4030_v25, 0.0 }
 0x9b7   :  { %1871 = vadd.xlane.f32.xlu1 %v1870_v27 }
 0x9d0   :  { %2057 = vrot.lane.b32.xlu1 %v2056_v30, %s4157_s27  ;;  %v3889_v30 = vld [vmem:[%s4668_s4 + $0x40] sm:$0xff] }
 0x9d1   :  { %2178 = vmatpush.bf16.msra.mxu2 %v3889_v30  ;;  %v3579_v30 = vld [vmem:[#allocation5 + $0x1c0] sm:$0xf] }
 0xa09   :  { %v2006_v31 = vpop.xlane.xlu1 %2005 }
 0xa0a   :  { %v2010_v32 = vsub.f32 %v1972_v56, %v2006_v31 }
 0xa0c   :  { %v2012_v19 = vmul.f32 1.442695, %v2010_v32 }
 0xa0e   :  { %4031 = vpow2.f32 %v2012_v19 }
 0xa14   :  { %v4503_v34 = vpop.eup %4031 }
 0xa15   :  { %v2016_v62 = vsel %vm509_vm9, %v4503_v34, 0.0 }
 0xa16   :  { %2017 = vadd.xlane.f32.xlu0 %v2016_v62 }
 0xa19   :  { %v2009_v29 = vpop.xlane.xlu0 %2008 }
 0xa1a   :  { %v2011_v15 = vsub.f32 %v2001_v48, %v2009_v29  ;;  %v1869_v63 = vpop.xlane.xlu2 %1868 }
 0xa1b   :  { %4033 = vrcp.f32 %v1869_v63  ;;  %v1884_v43 = vand.u32 2147483648, %v1869_v63  ;;  %v1882_v46 = vand.u32 2147483647, %v1869_v63  ;;  %vm1878_vm13 = vweird.f32 %v1869_v63 }
 0xa1c   :  { %v2014_v0 = vmul.f32 1.442695, %v2011_v15 }
 0xa1d   :  { %v1885_v51 = vor.u32 1.1754944e-38, %v1884_v43  ;;  %vm1883_vm15 = vcmp.eq.f32.partialorder %v1882_v46, 8.507059e+37 }
 0xa1e   :  { %4035 = vpow2.f32 %v2014_v0 }
 0xa21   :  { %v4034_v26 = vpop.eup %4033 }
 0xa22   :  { %v1874_v38 = vmul.f32 %v4034_v26, %v1869_v63  ;;  %vm1879_vm12 = vweird.f32 %v4034_v26 }
 0xa23   :  { %vm1880_vm14 = vmor %vm1878_vm13, %vm1879_vm12 }
 0xa24   :  { %v4507_v40 = vpop.eup %4035  ;;  %v1875_v41 = vsub.f32 1.0, %v1874_v38 }
 0xa25   :  { %v2019_v44 = vsel %vm509_vm9, %v4507_v40, 0.0 }
 0xa26   :  { %v1876_v45 = vmul.f32 %v4034_v26, %v1875_v41  ;;  %2020 = vadd.xlane.f32.xlu2 %v2019_v44 }
 0xa28   :  { %v1877_v47 = vadd.f32 %v4034_v26, %v1876_v45 }
 0xa2a   :  { %v1881_v11 = vsel %vm1880_vm14, %v4034_v26, %v1877_v47  ;;  %v1872_v55 = vpop.xlane.xlu1 %1871  ;;  %2081 = vrot.lane.b32.xlu0 %v2080_v49, %s4157_s27 }
 0xa2b   :  { %v1886_v54 = vsel %vm1883_vm15, %v1885_v51, %v1881_v11  ;;  %4037 = vrcp.f32 %v1872_v55  ;;  %v1899_v1 = vand.u32 2147483648, %v1872_v55  ;;  %v1897_v2 = vand.u32 2147483647, %v1872_v55  ;;  %v3895_v11 = vld [vmem:[%s4668_s4 + $0x70] sm:$0xff] }
 0xa2c   :  { %v1887_v39 = vmul.f32 %v4028_v36, %v1886_v54  ;;  %vm1893_vm1 = vweird.f32 %v1872_v55 }
 0xa2d   :  { %v1900_v3 = vor.u32 1.1754944e-38, %v1899_v1  ;;  %vm1898_vm3 = vcmp.eq.f32.partialorder %v1897_v2, 8.507059e+37  ;;  %v2185_v1 = vperm.slane %v4466_v52, 1 }
 0xa2e   :  { %v1903_v57 = vpack.c.bf16 %v1887_v39, %v1887_v39 }
 0xa30   :  { %3441 = vmatmul.msk.bf16.vlgmr.msra.gmra.mxu3 %vm509_vm9, %v1903_v57 }
 0xa31   :  { %v4038_v58 = vpop.eup %4037 }
 0xa32   :  { %v1889_v59 = vmul.f32 %v4038_v58, %v1872_v55  ;;  %vm1894_vm0 = vweird.f32 %v4038_v58  ;;  %v3894_v55 = vld [vmem:[%s4668_s4 + $0x68] sm:$0xff] }
 0xa33   :  { %vm1895_vm2 = vmor %vm1893_vm1, %vm1894_vm0 }
 0xa34   :  { %v1890_v61 = vsub.f32 1.0, %v1889_v59 }
 0xa36   :  { %v1891_v50 = vmul.f32 %v4038_v58, %v1890_v61 }
 0xa38   :  { %v1892_v53 = vadd.f32 %v4038_v58, %v1891_v50 }
 0xa3a   :  { %v1896_v4 = vsel %vm1895_vm2, %v4038_v58, %v1892_v53 }
 0xa3b   :  { %v1901_v5 = vsel %vm1898_vm3, %v1900_v3, %v1896_v4 }
 0xa3c   :  { %v1902_v6 = vmul.f32 %v4030_v25, %v1901_v5 }
 0xa3e   :  { %v1904_v35 = vpack.c.bf16 %v1902_v6, %v1902_v6 }
 0xa40   :  { %3442 = vmatmul.msk.bf16.vlgmr.msrb.gmra.mxu0 %vm509_vm9, %v1904_v35 }
 0xa42   :  { %v2058_v7 = vpop.permute.xlu1 %2057 }
 0xa43   :  { %v2063_v56 = vsel %vm565_vm8, %v2058_v7, 0 }
 0xa44   :  { %2072 = vmatpush.bf16.msrb.mxu3 %v2063_v56 }
 0xa89   :  { %v2018_v9 = vpop.xlane.xlu0 %2017 }
 0xa8a   :  { %4039 = vrcp.f32 %v2018_v9  ;;  %v2033_v48 = vand.u32 2147483648, %v2018_v9  ;;  %v2031_v14 = vand.u32 2147483647, %v2018_v9  ;;  %vm2027_vm5 = vweird.f32 %v2018_v9 }
 0xa8c   :  { %v2034_v22 = vor.u32 1.1754944e-38, %v2033_v48  ;;  %vm2032_vm10 = vcmp.eq.f32.partialorder %v2031_v14, 8.507059e+37  ;;  %v3927_v48 = vld [vmem:[#allocation5 + $0x1ec] sm:$0xf0] }
 0xa90   :  { %v4040_v12 = vpop.eup %4039 }
 0xa91   :  { %v2023_v13 = vmul.f32 %v4040_v12, %v2018_v9  ;;  %vm2028_vm4 = vweird.f32 %v4040_v12 }
 0xa92   :  { %vm2029_vm6 = vmor %vm2027_vm5, %vm2028_vm4 }
 0xa93   :  { %v2024_v16 = vsub.f32 1.0, %v2023_v13 }
 0xa95   :  { %v2025_v36 = vmul.f32 %v4040_v12, %v2024_v16 }
 0xa97   :  { %v2026_v10 = vadd.f32 %v4040_v12, %v2025_v36  ;;  %v3925_v36 = vld [vmem:[#allocation5 + $0x1e4] sm:$0xf] }
 0xa99   :  { %v2030_v23 = vsel %vm2029_vm6, %v4040_v12, %v2026_v10  ;;  %v2021_v24 = vpop.xlane.xlu2 %2020  ;;  %v3603_v10 = vld [vmem:[#allocation5 + $0x1e8] sm:$0xf] }
 0xa9a   :  { %v2035_v25 = vsel %vm2032_vm10, %v2034_v22, %v2030_v23  ;;  %4041 = vrcp.f32 %v2021_v24  ;;  %v2048_v15 = vand.u32 2147483648, %v2021_v24  ;;  %v2046_v0 = vand.u32 2147483647, %v2021_v24  ;;  %v3928_v22 = vld [vmem:[#allocation5 + $0x1f4] sm:$0xf0] }
 0xa9b   :  { %v2036_v27 = vmul.f32 %v4503_v34, %v2035_v25  ;;  %v3896_v34 = vld [vmem:[%s4668_s4 + $0x78] sm:$0xff]  ;;  %vm2042_vm12 = vweird.f32 %v2021_v24  ;;  %v3600_v23 = vor.u32 %v3925_v36, %v3597_v21  ;;  %v3515_v36 = vld [vmem:[#allocation5 + $0x140] sm:$0xf]  ;;  %v3905_v21 = vld [vmem:[#allocation5 + $0x144] sm:$0xf] }
 0xa9c   :  { %v2082_v28 = vpop.permute.xlu0 %2081  ;;  %2134 = vmatpush.bf16.msrb.mxu1 %v3896_v34  ;;  %v2049_v38 = vor.u32 1.1754944e-38, %v2048_v15  ;;  %vm2047_vm13 = vcmp.eq.f32.partialorder %v2046_v0, 8.507059e+37  ;;  %v3926_v25 = vld [vmem:[#allocation5 + $0x1ec] sm:$0xf]  ;;  %v3924_v15 = vld [vmem:[#allocation5 + $0x1d4] sm:$0xf0] }
 0xa9d   :  { %v2087_v31 = vsel %vm565_vm8, %v2082_v28, 0  ;;  %v2052_v32 = vpack.c.bf16 %v2036_v27, %v2036_v27  ;;  %v3605_v27 = vld [vmem:[#allocation5 + $0x1f8] sm:$0xf0]  ;;  %v3922_v34 = vld [vmem:[#allocation5 + $0x1cc] sm:$0xf] }
 0xa9e   :  { %2096 = vmatpush.bf16.msra.mxu0 %v2087_v31  ;;  %v3608_v28 = vor.u32 %v3926_v25, %v3605_v27  ;;  %v3923_v31 = vld [vmem:[#allocation5 + $0x1cc] sm:$0xf0] }
 0xa9f   :  { %3445 = vmatmul.msk.bf16.vlgmr.msrb.gmra.mxu3 %vm509_vm9, %v2052_v32  ;;  %v3921_v32 = vld [vmem:[#allocation5 + $0x1c4] sm:$0xf] }
 0xaa0   :  { %v4042_v19 = vpop.eup %4041  ;;  %2135 = vmatpush.bf16.msrb.mxu1 %v3895_v11  ;;  %2443 = vmatpush.bf16.msrb.mxu2 %v3608_v28  ;;  %v3918_v11 = vld [vmem:[#allocation5 + $0x1ac] sm:$0xf] }
 0xaa1   :  { %v2038_v62 = vmul.f32 %v4042_v19, %v2021_v24  ;;  %vm2043_vm11 = vweird.f32 %v4042_v19  ;;  %v3604_v24 = vor.u32 %v3928_v22, %v3603_v10  ;;  %v3517_v22 = vld [vmem:[#allocation5 + $0x150] sm:$0xf0]  ;;  %v3906_v28 = vld [vmem:[#allocation5 + $0x14c] sm:$0xf] }
 0xaa2   :  { %vm2044_vm8 = vmor %vm2042_vm12, %vm2043_vm11  ;;  %2415 = vmatpush.bf16.msrb.mxu0 %v3600_v23  ;;  %v3523_v23 = vld [vmem:[#allocation5 + $0x148] sm:$0xf]  ;;  %v3520_v25 = vor.u32 %v3905_v21, %v3517_v22  ;;  %v2233_v21 = vperm.slane %v4466_v52, 5  ;;  %vm2915_vm11 = vcmask 1041408   ;;  %vm2921_vm12 = vcmask 1024  }
 0xaa3   :  { %v2039_v29 = vsub.f32 1.0, %v2038_v62  ;;  %v3581_v62 = vld [vmem:[#allocation5 + $0x1d0] sm:$0xf0] }
 0xaa4   :  { %2136 = vmatpush.bf16.msrb.mxu1 %v3894_v55  ;;  %v3573_v55 = vld [vmem:[#allocation5 + $0x1b8] sm:$0xf0] }
 0xaa5   :  { %v2040_v63 = vmul.f32 %v4042_v19, %v2039_v29  ;;  %v3587_v29 = vld [vmem:[#allocation5 + $0x1c8] sm:$0xf] }
 0xaa6   :  { %v3588_v0 = vor.u32 %v3924_v15, %v3587_v29  ;;  %v3501_v15 = vld [vmem:[#allocation5 + $0x130] sm:$0xf0] }
 0xaa7   :  { %v2041_v26 = vadd.f32 %v4042_v19, %v2040_v63  ;;  %v3584_v63 = vor.u32 %v3921_v32, %v3581_v62  ;;  %v3499_v32 = vld [vmem:[#allocation5 + $0x120] sm:$0xf]  ;;  %v3901_v62 = vld [vmem:[#allocation5 + $0x124] sm:$0xf] }
 0xaa9   :  { %v2045_v41 = vsel %vm2044_vm8, %v4042_v19, %v2041_v26  ;;  %v3580_v19 = vor.u32 %v3923_v31, %v3579_v30  ;;  %v3589_v26 = vld [vmem:[#allocation5 + $0x1d8] sm:$0xf0]  ;;  %2416 = vmatpush.bf16.msrb.mxu0 %v3584_v63  ;;  %v3507_v63 = vld [vmem:[#allocation5 + $0x128] sm:$0xf] }
 0xaaa   :  { %v2050_v42 = vsel %vm2047_vm13, %v2049_v38, %v2045_v41  ;;  %v3592_v38 = vor.u32 %v3922_v34, %v3589_v26  ;;  %v3563_v41 = vld [vmem:[#allocation5 + $0x1a0] sm:$0xf]  ;;  %v3525_v30 = vld [vmem:[#allocation5 + $0x158] sm:$0xf0]  ;;  %v3504_v26 = vor.u32 %v3901_v62, %v3501_v15  ;;  %v3959_v62 = vld [vmem:[#allocation7 + $0x1f0] sm:$0xff] }
 0xaab   :  { %v2051_v43 = vmul.f32 %v4507_v40, %v2050_v42  ;;  %v3893_v40 = vld [vmem:[%s4668_s4 + $0x60] sm:$0xff]  ;;  %v3528_v31 = vor.u32 %v3906_v28, %v3525_v30  ;;  %v3936_v28 = vld [vmem:[#allocation7 + $0x138] sm:$0xff]  ;;  %v3949_v15 = vld [vmem:[#allocation7 + $0x1a0] sm:$0xff] }
 0xaac   :  { %2137 = vmatpush.bf16.msrb.mxu1 %v3893_v40  ;;  %v3919_v42 = vld [vmem:[#allocation5 + $0x1ac] sm:$0xf0]  ;;  %2444 = vmatpush.bf16.msrb.mxu2 %v3592_v38  ;;  %v3576_v40 = vor.u32 %v3918_v11, %v3573_v55  ;;  %v3491_v55 = vld [vmem:[#allocation5 + $0x108] sm:$0xf]  ;;  %v3960_v30 = vld [vmem:[#allocation7 + $0x1f8] sm:$0xff] }
 0xaad   :  { %v2053_v44 = vpack.c.bf16 %v2051_v43, %v2051_v43  ;;  %v3917_v43 = vld [vmem:[#allocation5 + $0x1a4] sm:$0xf] }
 0xaaf   :  { %3446 = vmatmul.msk.bf16.vlgmr.msra.gmra.mxu0 %vm509_vm9, %v2053_v44  ;;  %v3564_v44 = vor.u32 %v3919_v42, %v3563_v41  ;;  %v3902_v41 = vld [vmem:[#allocation5 + $0x12c] sm:$0xf]  ;;  %v3509_v42 = vld [vmem:[#allocation5 + $0x138] sm:$0xf0] }
 0xab0   :  { %2429 = vmatpush.bf16.msra.mxu1 %v3604_v24  ;;  %2445 = vmatpush.bf16.msrb.mxu2 %v3576_v40  ;;  %v3908_v24 = vld [vmem:[#allocation5 + $0x154] sm:$0xf0] }
 0xab1   :  { %v3524_v27 = vor.u32 %v3908_v24, %v3523_v23  ;;  %v3900_v40 = vld [vmem:[#allocation5 + $0x114] sm:$0xf0] }
 0xab3   :  { %v1922_v45 = vpop.f32.mrf.mxu3 }
 0xab4   :  { %2430 = vmatpush.bf16.msra.mxu1 %v3588_v0  ;;  %v3904_v0 = vld [vmem:[#allocation5 + $0x134] sm:$0xf0] }
 0xab5   :  { %v3508_v38 = vor.u32 %v3904_v0, %v3507_v63  ;;  %v3934_v63 = vld [vmem:[#allocation7 + $0x128] sm:$0xff] }
 0xab6   :  { %v3958_v0 = vld [vmem:[#allocation7 + $0x1e8] sm:$0xff] }
 0xabb   :  { %v1924_v46 = vpop.f32.mrf.mxu3 }
 0xabc   :  { %v3571_v46 = vld [vmem:[#allocation5 + $0x1a8] sm:$0xf] }
 0xabd   :  { %v1941_v47 = vpop.f32.mrf.mxu0 }
 0xabe   :  { %v1945_v49 = vpack.c.bf16 %v1941_v47, %v1922_v45  ;;  %v3565_v45 = vld [vmem:[#allocation5 + $0x1b0] sm:$0xf0]  ;;  %v3920_v47 = vld [vmem:[#allocation5 + $0x1b4] sm:$0xf0] }
 0xac0   :  { %3480 = vmatmul.msk.bf16.vlgmr.msra.gmra.mxu2 %vm470_vm7, %v1945_v49  ;;  %v3568_v49 = vor.u32 %v3917_v43, %v3565_v45  ;;  %v3483_v43 = vld [vmem:[#allocation5 + $0x100] sm:$0xf]  ;;  %v3512_v45 = vor.u32 %v3902_v41, %v3509_v42  ;;  %v3939_v42 = vld [vmem:[#allocation7 + $0x150] sm:$0xff] }
 0xac1   :  { %v3957_v41 = vld [vmem:[#allocation7 + $0x1e0] sm:$0xff] }
 0xac2   :  { %2417 = vmatpush.bf16.msrb.mxu0 %v3568_v49  ;;  %v3485_v49 = vld [vmem:[#allocation5 + $0x110] sm:$0xf0] }
 0xac5   :  { %v1943_v51 = vpop.f32.mrf.mxu0 }
 0xac6   :  { %v3572_v51 = vor.u32 %v3920_v47, %v3571_v46  ;;  %v3899_v46 = vld [vmem:[#allocation5 + $0x10c] sm:$0xf0]  ;;  %v3897_v47 = vld [vmem:[#allocation5 + $0x104] sm:$0xf] }
 0xac7   :  { %v3488_v11 = vor.u32 %v3897_v47, %v3485_v49  ;;  %v3946_v47 = vld [vmem:[#allocation7 + $0x188] sm:$0xff]  ;;  %v2238_v49 = vperm.slane %v4454_v33, 2 }
 0xac8   :  { %2431 = vmatpush.bf16.msra.mxu1 %v3572_v51  ;;  %v3484_v51 = vor.u32 %v3899_v46, %v3483_v43  ;;  %v3947_v43 = vld [vmem:[#allocation7 + $0x190] sm:$0xff]  ;;  %v3938_v46 = vld [vmem:[#allocation7 + $0x148] sm:$0xff] }
 0xac9   :  { %v3930_v33 = vld [vmem:[#allocation7 + $0x108] sm:$0xff] }
 0xb22   :  { %v2074_v54 = vpop.f32.mrf.mxu3 }
 0xb2a   :  { %v2076_v39 = vpop.f32.mrf.mxu3 }
 0xb2b   :  { %v3915_v39 = vld [vmem:[#allocation5 + $0x18c] sm:$0xf0] }
 0xb2c   :  { %v2098_v57 = vpop.f32.mrf.mxu0 }
 0xb2d   :  { %v2102_v58 = vpack.c.bf16 %v2098_v57, %v2074_v54  ;;  %v3547_v54 = vld [vmem:[#allocation5 + $0x180] sm:$0xf]  ;;  %v3913_v57 = vld [vmem:[#allocation5 + $0x184] sm:$0xf] }
 0xb2f   :  { %3463 = vmatmul.msk.bf16.vlgmr.msrb.gmra.mxu1 %vm470_vm7, %v2102_v58  ;;  %v3548_v58 = vor.u32 %v3915_v39, %v3547_v54  ;;  %v3898_v54 = vld [vmem:[#allocation5 + $0x10c] sm:$0xf] }
 0xb34   :  { %v2100_v59 = vpop.f32.mrf.mxu0 }
 0xb35   :  { %v3549_v59 = vld [vmem:[#allocation5 + $0x190] sm:$0xf0] }
 0xb43   :  { %v2180_v61 = vpop.f32.mrf.mxu2 }
 0xb4b   :  { %v2182_v4 = vpop.f32.mrf.mxu2 }
 0xbac   :  { %v2139_v50 = vpop.f32.mrf.mxu1 }
 0xbad   :  { %v2181_v2 = vadd.f32 %v2180_v61, %v2139_v50  ;;  %v3555_v61 = vld [vmem:[#allocation5 + $0x188] sm:$0xf]  ;;  %v3552_v50 = vor.u32 %v3913_v57, %v3549_v59  ;;  %v3492_v57 = vor.u32 %v3900_v40, %v3491_v55  ;;  %v3955_v55 = vld [vmem:[#allocation7 + $0x1d0] sm:$0xff] }
 0xbaf   :  { %v2186_v53 = vadd.f32 %v2185_v1, %v2181_v2  ;;  %2418 = vmatpush.bf16.msrb.mxu0 %v3552_v50 }
 0xbb1   :  { %v2188_v3 = vadd.f32 %v2186_v53, %v4445_v18  ;;  %v3914_v53 = vld [vmem:[#allocation5 + $0x18c] sm:$0xf] }
 0xbb3   :  { %2190 = vadd.xlane.f32.xlu2 %v2188_v3 }
 0xbb4   :  { %v2141_v5 = vpop.f32.mrf.mxu1 }
 0xbb5   :  { %v2183_v6 = vadd.f32 %v2182_v4, %v2141_v5  ;;  %v3531_v5 = vld [vmem:[#allocation5 + $0x160] sm:$0xf] }
 0xbb7   :  { %v2187_v35 = vadd.f32 %v2185_v1, %v2183_v6  ;;  %v3916_v1 = vld [vmem:[#allocation5 + $0x194] sm:$0xf0]  ;;  %v3911_v6 = vld [vmem:[#allocation5 + $0x16c] sm:$0xf0] }
 0xbb8   :  { %v3556_v2 = vor.u32 %v3916_v1, %v3555_v61 }
 0xbb9   :  { %v2189_v7 = vadd.f32 %v2187_v35, %v4447_v20  ;;  %v3595_v20 = vld [vmem:[#allocation5 + $0x1e0] sm:$0xf]  ;;  %v3909_v35 = vld [vmem:[#allocation5 + $0x164] sm:$0xf] }
 0xbba   :  { %v3596_v14 = vor.u32 %v3927_v48, %v3595_v20  ;;  %2432 = vmatpush.bf16.msra.mxu1 %v3556_v2  ;;  %v3541_v20 = vld [vmem:[#allocation5 + $0x178] sm:$0xf0] }
 0xbbb   :  { %2192 = vadd.xlane.f32.xlu2 %v2189_v7 }
 0xbbc   :  { %2401 = vmatpush.bf16.msra.mxu3 %v3596_v14  ;;  %v3907_v14 = vld [vmem:[#allocation5 + $0x14c] sm:$0xf0] }
 0xbbd   :  { %v3516_v10 = vor.u32 %v3907_v14, %v3515_v36 }
 0xbc0   :  { %2402 = vmatpush.bf16.msra.mxu3 %v3580_v19  ;;  %v3903_v19 = vld [vmem:[#allocation5 + $0x12c] sm:$0xf0] }
 0xbc1   :  { %v3500_v29 = vor.u32 %v3903_v19, %v3499_v32  ;;  %v3950_v32 = vld [vmem:[#allocation7 + $0x1a8] sm:$0xff]  ;;  %v3935_v19 = vld [vmem:[#allocation7 + $0x130] sm:$0xff] }
 0xbc4   :  { %2403 = vmatpush.bf16.msra.mxu3 %v3564_v44 }
 0xbc8   :  { %2404 = vmatpush.bf16.msra.mxu3 %v3548_v58  ;;  %v3493_v58 = vld [vmem:[#allocation5 + $0x118] sm:$0xf0] }
 0xbc9   :  { %v3496_v59 = vor.u32 %v3898_v54, %v3493_v58  ;;  %v3937_v54 = vld [vmem:[#allocation7 + $0x140] sm:$0xff] }
 0xc26   :  { %v2191_v56 = vpop.xlane.xlu2 %2190 }
 0xc27   :  { %v2194_v9 = vmul.f32 %v2191_v56, %v4227_v8  ;;  %v3533_v56 = vld [vmem:[#allocation5 + $0x170] sm:$0xf0] }
 0xc29   :  { %v4551_v37 = vsub.f32 %v2188_v3, %v2194_v9  ;;  %v3557_v3 = vld [vmem:[#allocation5 + $0x198] sm:$0xf0]  ;;  %v3539_v9 = vld [vmem:[#allocation5 + $0x168] sm:$0xf] }
 0xc2a   :  { %v3560_v4 = vor.u32 %v3914_v53, %v3557_v3 }
 0xc2b   :  { %v2198_v12 = vmul.f32 %v4551_v37, %v4551_v37 }
 0xc2c   :  { %2446 = vmatpush.bf16.msrb.mxu2 %v3560_v4 }
 0xc2d   :  { %2200 = vadd.xlane.f32.xlu2 %v2198_v12  ;;  %v3912_v12 = vld [vmem:[#allocation5 + $0x174] sm:$0xf0] }
 0xc2e   :  { %v2193_v13 = vpop.xlane.xlu2 %2192 }
 0xc2f   :  { %v2195_v18 = vmul.f32 %v2193_v13, %v4227_v8  ;;  %v3536_v13 = vor.u32 %v3909_v35, %v3533_v56 }
 0xc31   :  { %v4556_v16 = vsub.f32 %v2189_v7, %v2195_v18  ;;  %v3532_v7 = vor.u32 %v3911_v6, %v3531_v5  ;;  %v3540_v18 = vor.u32 %v3912_v12, %v3539_v9  ;;  %2419 = vmatpush.bf16.msrb.mxu0 %v3536_v13 }
 0xc33   :  { %v2199_v17 = vmul.f32 %v4556_v16, %v4556_v16  ;;  %2405 = vmatpush.bf16.msra.mxu3 %v3532_v7  ;;  %2433 = vmatpush.bf16.msra.mxu1 %v3540_v18 }
 0xc35   :  { %2202 = vadd.xlane.f32.xlu0 %v2199_v17  ;;  %v3910_v17 = vld [vmem:[#allocation5 + $0x16c] sm:$0xf]  ;;  %2420 = vmatpush.bf16.msrb.mxu0 %v3520_v25  ;;  %v3952_v25 = vld [vmem:[#allocation7 + $0x1b8] sm:$0xff] }
 0xc36   :  { %v3544_v48 = vor.u32 %v3910_v17, %v3541_v20  ;;  %v2230_v17 = vperm.slane %v4466_v52, 4 }
 0xc37   :  { %2406 = vmatpush.bf16.msra.mxu3 %v3516_v10  ;;  %2434 = vmatpush.bf16.msra.mxu1 %v3524_v27  ;;  %v3951_v27 = vld [vmem:[#allocation7 + $0x1b0] sm:$0xff] }
 0xc38   :  { %2447 = vmatpush.bf16.msrb.mxu2 %v3544_v48 }
 0xc39   :  { %2421 = vmatpush.bf16.msrb.mxu0 %v3504_v26  ;;  %v3948_v26 = vld [vmem:[#allocation7 + $0x198] sm:$0xff] }
 0xc3b   :  { %2407 = vmatpush.bf16.msra.mxu3 %v3500_v29  ;;  %2435 = vmatpush.bf16.msra.mxu1 %v3508_v38  ;;  %v3941_v29 = vld [vmem:[#allocation7 + $0x160] sm:$0xff] }
 0xc3c   :  { %2448 = vmatpush.bf16.msrb.mxu2 %v3528_v31  ;;  %v3942_v31 = vld [vmem:[#allocation7 + $0x168] sm:$0xff]  ;;  %v3933_v38 = vld [vmem:[#allocation7 + $0x120] sm:$0xff] }
 0xc3d   :  { %2422 = vmatpush.bf16.msrb.mxu0 %v3488_v11  ;;  %v3931_v11 = vld [vmem:[#allocation7 + $0x110] sm:$0xff] }
 0xc3f   :  { %2408 = vmatpush.bf16.msra.mxu3 %v3484_v51  ;;  %2436 = vmatpush.bf16.msra.mxu1 %v3492_v57  ;;  %v2239_v51 = vperm.slane %v4459_v60, 2  ;;  %v3954_v60 = vld [vmem:[#allocation7 + $0x1c8] sm:$0xff] }
 0xc40   :  { %2449 = vmatpush.bf16.msrb.mxu2 %v3512_v45  ;;  %v3956_v45 = vld [vmem:[#allocation7 + $0x1d8] sm:$0xff] }
 0xc43   :  { %2754 = vmatpush.bf16.msrb.mxu1 %v3952_v25  ;;  %2726 = vmatpush.bf16.msrb.mxu3 %v3936_v28 }
 0xc44   :  { %2450 = vmatpush.bf16.msrb.mxu2 %v3496_v59  ;;  %v3342_v59 = vld [vmem:[%s4671_s7 + $0x38] sm:$0xff] }
 0xc47   :  { %2755 = vmatpush.bf16.msrb.mxu1 %v3951_v27  ;;  %2727 = vmatpush.bf16.msrb.mxu3 %v3935_v19 }
 0xc48   :  { %2768 = vmatpush.bf16.msra.mxu2 %v3960_v30 }
 0xc4b   :  { %2756 = vmatpush.bf16.msrb.mxu1 %v3950_v32  ;;  %2728 = vmatpush.bf16.msrb.mxu3 %v3934_v63 }
 0xc4c   :  { %2769 = vmatpush.bf16.msra.mxu2 %v3959_v62 }
 0xc4f   :  { %2757 = vmatpush.bf16.msrb.mxu1 %v3949_v15  ;;  %2729 = vmatpush.bf16.msrb.mxu3 %v3933_v38 }
 0xc50   :  { %2770 = vmatpush.bf16.msra.mxu2 %v3958_v0 }
 0xc53   :  { %2758 = vmatpush.bf16.msrb.mxu1 %v3948_v26 }
 0xc54   :  { %2771 = vmatpush.bf16.msra.mxu2 %v3957_v41 }
 0xc57   :  { %2759 = vmatpush.bf16.msrb.mxu1 %v3947_v43 }
 0xc58   :  { %2772 = vmatpush.bf16.msra.mxu2 %v3956_v45 }
 0xc5b   :  { %2760 = vmatpush.bf16.msrb.mxu1 %v3946_v47 }
 0xc5c   :  { %2773 = vmatpush.bf16.msra.mxu2 %v3955_v55 }
 0xc60   :  { %2774 = vmatpush.bf16.msra.mxu2 %v3954_v60 }
 0xca0   :  { %v2201_v34 = vpop.xlane.xlu2 %2200 }
 0xca1   :  { %v2204_v44 = vmul.f32 %v2201_v34, %v4227_v8  ;;  %v3940_v34 = vld [vmem:[#allocation7 + $0x158] sm:$0xff] }
 0xca3   :  { %v2206_v39 = vadd.f32 1e-12, %v2204_v44  ;;  %v3932_v44 = vld [vmem:[#allocation7 + $0x118] sm:$0xff] }
 0xca4   :  { %2730 = vmatpush.bf16.msrb.mxu3 %v3932_v44 }
 0xca5   :  { %4043 = vrsqrt.f32 %v2206_v39  ;;  %vm2214_vm9 = vweird.f32 %v2206_v39 }
 0xca8   :  { %v2203_v61 = vpop.xlane.xlu0 %2202  ;;  %2731 = vmatpush.bf16.msrb.mxu3 %v3931_v11 }
 0xca9   :  { %v2205_v1 = vmul.f32 %v2203_v61, %v4227_v8 }
 0xcab   :  { %v4044_v50 = vpop.eup %4043  ;;  %v2207_v2 = vadd.f32 1e-12, %v2205_v1 }
 0xcac   :  { %v2209_v53 = vmul.f32 %v4044_v50, %v2206_v39  ;;  %vm2215_vm7 = vweird.f32 %v4044_v50  ;;  %v3945_v39 = vld [vmem:[#allocation7 + $0x180] sm:$0xff]  ;;  %2732 = vmatpush.bf16.msrb.mxu3 %v3930_v33 }
 0xcad   :  { %4045 = vrsqrt.f32 %v2207_v2  ;;  %vm2216_vm14 = vmor %vm2214_vm9, %vm2215_vm7  ;;  %vm2224_vm0 = vweird.f32 %v2207_v2  ;;  %2761 = vmatpush.bf16.msrb.mxu1 %v3945_v39 }
 0xcae   :  { %v2210_v3 = vmul.f32 %v4044_v50, %v2209_v53  ;;  %v2240_v53 = vperm.slane %v3342_v59, 2 }
 0xcb0   :  { %v2211_v4 = vmul.f32 0.5, %v2210_v3 }
 0xcb2   :  { %v2212_v5 = vsub.f32 1.5, %v2211_v4 }
 0xcb3   :  { %v4046_v6 = vpop.eup %4045 }
 0xcb4   :  { %v2213_v35 = vmul.f32 %v4044_v50, %v2212_v5  ;;  %v2219_v7 = vmul.f32 %v4046_v6, %v2207_v2  ;;  %vm2225_vm15 = vweird.f32 %v4046_v6 }
 0xcb5   :  { %vm2226_vm1 = vmor %vm2224_vm0, %vm2225_vm15 }
 0xcb6   :  { %v2220_v56 = vmul.f32 %v4046_v6, %v2219_v7  ;;  %v2217_v9 = vsel %vm2216_vm14, %v4044_v50, %v2213_v35  ;;  %v2237_v50 = vperm.slane %v4466_v52, 2  ;;  %v3953_v35 = vld [vmem:[#allocation7 + $0x1c0] sm:$0xff] }
 0xcb7   :  { %v2228_v18 = vmul.f32 %v2217_v9, %v4551_v37  ;;  %v3944_v37 = vld [vmem:[#allocation7 + $0x178] sm:$0xff]  ;;  %2775 = vmatpush.bf16.msra.mxu2 %v3953_v35 }
 0xcb8   :  { %v2221_v12 = vmul.f32 0.5, %v2220_v56  ;;  %2740 = vmatpush.bf16.msra.mxu0 %v3944_v37 }
 0xcb9   :  { %v2231_v14 = vmul.f32 %v2230_v17, %v2228_v18 }
 0xcba   :  { %v2222_v13 = vsub.f32 1.5, %v2221_v12 }
 0xcbb   :  { %v4566_v22 = vadd.f32 %v2233_v21, %v2231_v14 }
 0xcbc   :  { %v2223_v20 = vmul.f32 %v4046_v6, %v2222_v13 }
 0xcbe   :  { %v2227_v48 = vsel %vm2226_vm1, %v4046_v6, %v2223_v20  ;;  %v3929_v6 = vld [vmem:[#allocation7 + $0x100] sm:$0xff] }
 0xcbf   :  { %v2229_v36 = vmul.f32 %v2227_v48, %v4556_v16  ;;  %v3943_v16 = vld [vmem:[#allocation7 + $0x170] sm:$0xff]  ;;  %2733 = vmatpush.bf16.msrb.mxu3 %v3929_v6 }
 0xcc0   :  { %2741 = vmatpush.bf16.msra.mxu0 %v3943_v16 }
 0xcc1   :  { %v2232_v10 = vmul.f32 %v2230_v17, %v2229_v36 }
 0xcc3   :  { %v4568_v23 = vadd.f32 %v2233_v21, %v2232_v10 }
 0xcc4   :  { %2742 = vmatpush.bf16.msra.mxu0 %v3942_v31 }
 0xcc5   :  { %v2236_v24 = vpack.c.bf16 %v4568_v23, %v4566_v22 }
 0xcc7   :  { %2409 = vmatmul.bf16.vlgmr.msra.gmra.mxu3 %v2236_v24  ;;  %2423 = vmatmul.bf16.vlgmr.msrb.gmra.mxu0 %v2236_v24 }
 0xcc8   :  { %2437 = vmatmul.bf16.vlgmr.msra.gmra.mxu1 %v2236_v24  ;;  %2451 = vmatmul.bf16.vlgmr.msrb.gmra.mxu2 %v2236_v24 }
 0xcc9   :  { %2743 = vmatpush.bf16.msra.mxu0 %v3941_v29 }
 0xccd   :  { %2744 = vmatpush.bf16.msra.mxu0 %v3940_v34 }
 0xcd1   :  { %2745 = vmatpush.bf16.msra.mxu0 %v3939_v42 }
 0xcd5   :  { %2746 = vmatpush.bf16.msra.mxu0 %v3938_v46 }
 0xcd9   :  { %2747 = vmatpush.bf16.msra.mxu0 %v3937_v54 }
 0xd44   :  { %v2424_v40 = vpop.f32.mrf.mxu0 }
 0xd45   :  { %v4574_v57 = vadd.f32 %v2424_v40, %v2238_v49  ;;  %v2438_v58 = vpop.f32.mrf.mxu1 }
 0xd46   :  { %v4579_v61 = vadd.f32 %v2438_v58, %v2239_v51 }
 0xd47   :  { %v2458_v1 = vmul.f32 %v4574_v57, %v4574_v57 }
 0xd48   :  { %v2459_v2 = vmul.f32 %v4579_v61, %v4579_v61 }
 0xd49   :  { %v2466_v3 = vmul.f32 %v2458_v1, %v4574_v57 }
 0xd4a   :  { %v2467_v4 = vmul.f32 %v2459_v2, %v4579_v61  ;;  %v2410_v5 = vpop.f32.mrf.mxu3 }
 0xd4b   :  { %v2474_v7 = vmul.f32 0.044715, %v2466_v3  ;;  %v4588_v56 = vadd.f32 %v2410_v5, %v2237_v50  ;;  %v2452_v9 = vpop.f32.mrf.mxu2 }
 0xd4c   :  { %v2475_v12 = vmul.f32 0.044715, %v2467_v4  ;;  %v4590_v13 = vadd.f32 %v2452_v9, %v2240_v53  ;;  %v2426_v52 = vpop.f32.mrf.mxu0 }
 0xd4d   :  { %v2482_v18 = vadd.f32 %v2474_v7, %v4574_v57  ;;  %v2457_v17 = vmul.f32 %v4588_v56, %v4588_v56  ;;  %v4595_v20 = vadd.f32 %v2426_v52, %v2238_v49  ;;  %v2440_v48 = vpop.f32.mrf.mxu1 }
 0xd4e   :  { %v2483_v36 = vadd.f32 %v2475_v12, %v4579_v61  ;;  %v2460_v14 = vmul.f32 %v4590_v13, %v4590_v13  ;;  %v4600_v21 = vadd.f32 %v2440_v48, %v2239_v51 }
 0xd4f   :  { %v2490_v10 = vmul.f32 0.7978846, %v2482_v18  ;;  %v2465_v24 = vmul.f32 %v2457_v17, %v4588_v56  ;;  %v2462_v37 = vmul.f32 %v4595_v20, %v4595_v20 }
 0xd50   :  { %v2491_v25 = vmul.f32 0.7978846, %v2483_v36  ;;  %v2468_v16 = vmul.f32 %v2460_v14, %v4590_v13  ;;  %v2463_v27 = vmul.f32 %v4600_v21, %v4600_v21 }
 0xd51   :  { %v2473_v28 = vmul.f32 0.044715, %v2465_v24  ;;  %v2470_v30 = vmul.f32 %v2462_v37, %v4595_v20  ;;  %4047 = vtanh.f32 %v2490_v10 }
 0xd52   :  { %v2476_v31 = vmul.f32 0.044715, %v2468_v16  ;;  %v2471_v32 = vmul.f32 %v2463_v27, %v4600_v21  ;;  %v2412_v19 = vpop.f32.mrf.mxu3  ;;  %4049 = vtanh.f32 %v2491_v25 }
 0xd53   :  { %v2481_v62 = vadd.f32 %v2473_v28, %v4588_v56  ;;  %v2478_v29 = vmul.f32 0.044715, %v2470_v30  ;;  %v2413_v15 = vadd.f32 %v2412_v19, %v2237_v50  ;;  %v2454_v63 = vpop.f32.mrf.mxu2 }
 0xd54   :  { %v2484_v0 = vadd.f32 %v2476_v31, %v4590_v13  ;;  %v2479_v34 = vmul.f32 0.044715, %v2471_v32  ;;  %v2455_v26 = vadd.f32 %v2454_v63, %v2240_v53 }
 0xd55   :  { %v2489_v38 = vmul.f32 0.7978846, %v2481_v62  ;;  %v2486_v41 = vadd.f32 %v2478_v29, %v4595_v20  ;;  %v2461_v42 = vmul.f32 %v2413_v15, %v2413_v15 }
 0xd56   :  { %v2492_v43 = vmul.f32 0.7978846, %v2484_v0  ;;  %v2487_v44 = vadd.f32 %v2479_v34, %v4600_v21  ;;  %v2464_v45 = vmul.f32 %v2455_v26, %v2455_v26 }
 0xd57   :  { %4051 = vtanh.f32 %v2489_v38  ;;  %v2494_v46 = vmul.f32 0.7978846, %v2486_v41  ;;  %v2469_v47 = vmul.f32 %v2461_v42, %v2413_v15  ;;  %v4048_v11 = vpop.eup %4047 }
 0xd58   :  { %4053 = vtanh.f32 %v2492_v43  ;;  %v2495_v49 = vmul.f32 0.7978846, %v2487_v44  ;;  %v2472_v51 = vmul.f32 %v2464_v45, %v2455_v26  ;;  %v4050_v40 = vpop.eup %4049  ;;  %v2506_v58 = vadd.f32 1.0, %v4048_v11 }
 0xd59   :  { %4055 = vtanh.f32 %v2494_v46  ;;  %v2477_v55 = vmul.f32 0.044715, %v2469_v47  ;;  %v2507_v60 = vadd.f32 1.0, %v4050_v40 }
 0xd5a   :  { %4057 = vtanh.f32 %v2495_v49  ;;  %v2480_v54 = vmul.f32 0.044715, %v2472_v51  ;;  %v2514_v4 = vmul.f32 0.5, %v2506_v58 }
 0xd5b   :  { %v2485_v39 = vadd.f32 %v2477_v55, %v2413_v15  ;;  %v2515_v6 = vmul.f32 0.5, %v2507_v60  ;;  %v3968_v60 = vld [vmem:[%s4672_s8 + $0x38] sm:$0xff] }
 0xd5c   :  { %v2488_v59 = vadd.f32 %v2480_v54, %v2455_v26  ;;  %v2522_v18 = vmul.f32 %v2514_v4, %v4574_v57  ;;  %2899 = vmatpush.bf16.msra.mxu3 %v3968_v60 }
 0xd5d   :  { %v4052_v33 = vpop.eup %4051  ;;  %v2493_v1 = vmul.f32 0.7978846, %v2485_v39  ;;  %v2523_v36 = vmul.f32 %v2515_v6, %v4579_v61  ;;  %v3962_v6 = vld [vmem:[%s4672_s8 + $0x8] sm:$0xff] }
 0xd5e   :  { %v4054_v50 = vpop.eup %4053  ;;  %v2496_v2 = vmul.f32 0.7978846, %v2488_v59  ;;  %v2505_v7 = vadd.f32 1.0, %v4052_v33 }
 0xd5f   :  { %v4056_v53 = vpop.eup %4055  ;;  %4059 = vtanh.f32 %v2493_v1  ;;  %v2508_v12 = vadd.f32 1.0, %v4054_v50  ;;  %v3966_v1 = vld [vmem:[%s4672_s8 + $0x28] sm:$0xff]  ;;  %v3965_v50 = vld [vmem:[%s4672_s8 + $0x20] sm:$0xff] }
 0xd60   :  { %v4058_v3 = vpop.eup %4057  ;;  %v2510_v5 = vadd.f32 1.0, %v4056_v53  ;;  %4061 = vtanh.f32 %v2496_v2  ;;  %v2513_v24 = vmul.f32 0.5, %v2505_v7  ;;  %v3964_v2 = vld [vmem:[%s4672_s8 + $0x18] sm:$0xff] }
 0xd61   :  { %v2511_v35 = vadd.f32 1.0, %v4058_v3  ;;  %v2516_v16 = vmul.f32 0.5, %v2508_v12 }
 0xd62   :  { %v2518_v9 = vmul.f32 0.5, %v2510_v5  ;;  %v2521_v57 = vmul.f32 %v2513_v24, %v4588_v56  ;;  %v3963_v5 = vld [vmem:[%s4672_s8 + $0x10] sm:$0xff] }
 0xd63   :  { %v2519_v52 = vmul.f32 0.5, %v2511_v35 }
 0xd64   :  { %v2526_v17 = vmul.f32 %v2518_v9, %v4595_v20  ;;  %v2524_v20 = vmul.f32 %v2516_v16, %v4590_v13  ;;  %v3961_v9 = vld [vmem:[%s4672_s8] sm:$0xff] }
 0xd65   :  { %v4060_v48 = vpop.eup %4059  ;;  %v2527_v14 = vmul.f32 %v2519_v52, %v4600_v21  ;;  %v4623_v21 = vld [vmem:[%s4671_s7 + $0x20] sm:$0xff] }
 0xd66   :  { %v4062_v10 = vpop.eup %4061  ;;  %v2509_v37 = vadd.f32 1.0, %v4060_v48  ;;  %v2530_v25 = vpack.c.bf16 %v2526_v17, %v2522_v18  ;;  %v2533_v29 = vperm.slane %v4623_v21, 3  ;;  %v2827_v16 = vperm.slane %v4623_v21, 7 }
 0xd67   :  { %v2512_v27 = vadd.f32 1.0, %v4062_v10  ;;  %v2531_v28 = vpack.c.bf16 %v2527_v14, %v2523_v36 }
 0xd68   :  { %v2517_v30 = vmul.f32 0.5, %v2509_v37  ;;  %2748 = vmatmul.bf16.vlgmr.msra.gmra.mxu0 %v2530_v25 }
 0xd69   :  { %v2520_v31 = vmul.f32 0.5, %v2512_v27  ;;  %2762 = vmatmul.bf16.vlgmr.msrb.gmra.mxu1 %v2531_v28 }
 0xd6a   :  { %v2525_v32 = vmul.f32 %v2517_v30, %v2413_v15 }
 0xd6b   :  { %v2528_v19 = vmul.f32 %v2520_v31, %v2455_v26 }
 0xd6c   :  { %v2529_v61 = vpack.c.bf16 %v2525_v32, %v2521_v57 }
 0xd6d   :  { %v2532_v62 = vpack.c.bf16 %v2528_v19, %v2524_v20 }
 0xd6e   :  { %2734 = vmatmul.bf16.vlgmr.msrb.gmra.mxu3 %v2529_v61 }
 0xd6f   :  { %2776 = vmatmul.bf16.vlgmr.msra.gmra.mxu2 %v2532_v62 }
 0xde5   :  { %v2749_v63 = vpop.f32.mrf.mxu0 }
 0xde6   :  { %v2763_v38 = vpop.f32.mrf.mxu1 }
 0xded   :  { %v2751_v44 = vpop.f32.mrf.mxu0 }
 0xdee   :  { %v2765_v46 = vpop.f32.mrf.mxu1 }
 0xdf1   :  { %v2735_v0 = vpop.f32.mrf.mxu3 }
 0xdf2   :  { %v2736_v34 = vadd.f32 %v2735_v0, %v2533_v29  ;;  %v2777_v15 = vpop.f32.mrf.mxu2 }
 0xdf4   :  { %v2750_v56 = vadd.f32 %v2749_v63, %v2736_v34 }
 0xdf6   :  { %v2764_v41 = vadd.f32 %v2763_v38, %v2750_v56 }
 0xdf8   :  { %v2778_v13 = vadd.f32 %v2777_v15, %v2764_v41 }
 0xdf9   :  { %v2737_v26 = vpop.f32.mrf.mxu3 }
 0xdfa   :  { %v2738_v42 = vadd.f32 %v2737_v26, %v2533_v29  ;;  %v2782_v43 = vadd.f32 %v2778_v13, %v4566_v22  ;;  %v2779_v49 = vpop.f32.mrf.mxu2 }
 0xdfc   :  { %v2752_v45 = vadd.f32 %v2751_v44, %v2738_v42  ;;  %2784 = vadd.xlane.f32.xlu1 %v2782_v43 }
 0xdfe   :  { %v2766_v47 = vadd.f32 %v2765_v46, %v2752_v45 }
 0xe00   :  { %v2780_v51 = vadd.f32 %v2779_v49, %v2766_v47 }
 0xe02   :  { %v2783_v11 = vadd.f32 %v2780_v51, %v4568_v23  ;;  %v3967_v23 = vld [vmem:[%s4672_s8 + $0x30] sm:$0xff] }
 0xe03   :  { %2900 = vmatpush.bf16.msra.mxu3 %v3967_v23 }
 0xe04   :  { %2786 = vadd.xlane.f32.xlu2 %v2783_v11 }
 0xe07   :  { %2901 = vmatpush.bf16.msra.mxu3 %v3966_v1 }
 0xe0b   :  { %2902 = vmatpush.bf16.msra.mxu3 %v3965_v50 }
 0xe0f   :  { %2903 = vmatpush.bf16.msra.mxu3 %v3964_v2 }
 0xe13   :  { %2904 = vmatpush.bf16.msra.mxu3 %v3963_v5 }
 0xe17   :  { %2905 = vmatpush.bf16.msra.mxu3 %v3962_v6 }
 0xe1b   :  { %2906 = vmatpush.bf16.msra.mxu3 %v3961_v9 }
 0xe6f   :  { %v2785_v55 = vpop.xlane.xlu1 %2784 }
 0xe70   :  { %v2788_v40 = vmul.f32 %v2785_v55, %v4227_v8 }
 0xe72   :  { %v2790_v54 = vsub.f32 %v2782_v43, %v2788_v40 }
 0xe74   :  { %v2792_v39 = vmul.f32 %v2790_v54, %v2790_v54 }
 0xe76   :  { %2794 = vadd.xlane.f32.xlu2 %v2792_v39 }
 0xe77   :  { %v2787_v58 = vpop.xlane.xlu2 %2786 }
 0xe78   :  { %v2789_v59 = vmul.f32 %v2787_v58, %v4227_v8 }
 0xe7a   :  { %v2791_v22 = vsub.f32 %v2783_v11, %v2789_v59 }
 0xe7c   :  { %v2793_v33 = vmul.f32 %v2791_v22, %v2791_v22 }
 0xe7e   :  { %2796 = vadd.xlane.f32.xlu2 %v2793_v33 }
 0xee9   :  { %v2795_v53 = vpop.xlane.xlu2 %2794 }
 0xeea   :  { %v2798_v3 = vmul.f32 %v2795_v53, %v4227_v8 }
 0xeec   :  { %v2800_v4 = vadd.f32 1e-12, %v2798_v3 }
 0xeee   :  { %4063 = vrsqrt.f32 %v2800_v4  ;;  %vm2808_vm3 = vweird.f32 %v2800_v4 }
 0xef1   :  { %v2797_v35 = vpop.xlane.xlu2 %2796 }
 0xef2   :  { %v2799_v7 = vmul.f32 %v2797_v35, %v4227_v8  ;;  %v2824_v8 = vperm.slane %v4623_v21, 6  ;;  %v4073_v21 = vld [vmem:[%s4666_s2] sm:$0xff] }
 0xef3   :  { %v2850_v0 = vperm.slane %v4073_v21, 2  ;;  %v2913_v56 = vperm.slane %v4073_v21, 3  ;;  %v2919_v42 = vperm.slane %v4073_v21, 4 }
 0xef4   :  { %v4064_v12 = vpop.eup %4063  ;;  %v2801_v52 = vadd.f32 1e-12, %v2799_v7 }
 0xef5   :  { %v2803_v18 = vmul.f32 %v4064_v12, %v2800_v4  ;;  %vm2809_vm2 = vweird.f32 %v4064_v12 }
 0xef6   :  { %4065 = vrsqrt.f32 %v2801_v52  ;;  %vm2810_vm4 = vmor %vm2808_vm3, %vm2809_vm2  ;;  %vm2818_vm6 = vweird.f32 %v2801_v52 }
 0xef7   :  { %v2804_v17 = vmul.f32 %v4064_v12, %v2803_v18 }
 0xef9   :  { %v2805_v48 = vmul.f32 0.5, %v2804_v17 }
 0xefb   :  { %v2806_v36 = vsub.f32 1.5, %v2805_v48 }
 0xefc   :  { %v4066_v14 = vpop.eup %4065 }
 0xefd   :  { %v2807_v10 = vmul.f32 %v4064_v12, %v2806_v36  ;;  %v2813_v24 = vmul.f32 %v4066_v14, %v2801_v52  ;;  %vm2819_vm5 = vweird.f32 %v4066_v14 }
 0xefe   :  { %vm2820_vm10 = vmor %vm2818_vm6, %vm2819_vm5 }
 0xeff   :  { %v2811_v37 = vsel %vm2810_vm4, %v4064_v12, %v2807_v10  ;;  %v2814_v25 = vmul.f32 %v4066_v14, %v2813_v24 }
 0xf00   :  { %v2822_v27 = vmul.f32 %v2811_v37, %v2790_v54 }
 0xf01   :  { %v2815_v28 = vmul.f32 0.5, %v2814_v25 }
 0xf02   :  { %v2825_v30 = vmul.f32 %v2824_v8, %v2822_v27 }
 0xf03   :  { %v2816_v31 = vsub.f32 1.5, %v2815_v28 }
 0xf04   :  { %v2828_v57 = vadd.f32 %v2827_v16, %v2825_v30 }
 0xf05   :  { %v2817_v32 = vmul.f32 %v4066_v14, %v2816_v31 }
 0xf06   :  { %2830 = vst [vmem:[#allocation2] sm:$0xff] %v2828_v57 }
 0xf07   :  { %v2821_v20 = vsel %vm2820_vm10, %v4066_v14, %v2817_v32 }
 0xf08   :  { %v2823_v19 = vmul.f32 %v2821_v20, %v2791_v22 }
 0xf0a   :  { %v2826_v61 = vmul.f32 %v2824_v8, %v2823_v19 }
 0xf0c   :  { %v2829_v62 = vadd.f32 %v2827_v16, %v2826_v61 }
 0xf0e   :  { %2831 = vst [vmem:[#allocation2 + $0x8] sm:$0xff] %v2829_v62 }
 0xf15   :  { %v2832_v29 = vld [vmem:[#allocation2] ss:$8 sm:$0x3] }
 0xf16   :  { %v2833_v63 = vpack.c.bf16 %v2832_v29, %v2832_v29 }
 0xf18   :  { %2907 = vmatmul.bf16.vlgmr.msra.gmra.mxu3 %v2833_v63 }
 0xf9b   :  { %v2908_v34 = vpop.f32.mrf.mxu3 }
 0xf9c   :  { %v2909_v38 = vadd.f32 %v2908_v34, %v2850_v0 }
 0xf9e   :  { %4067 = vtanh.f32 %v2909_v38 }
 0xfa3   :  { %v2910_v15 = vpop.f32.mrf.mxu3 }
 0xfa4   :  { %v4068_v41 = vpop.eup %4067 }
 0xfa5   :  { %v2914_v13 = vmul.f32 %v4068_v41, %v2913_v56 }
 0xfa7   :  { %v2916_v26 = vsel %vm2915_vm11, %v2914_v13, 0.0 }
 0xfa8   :  { %2917 = vadd.xlane.f32.xlu2 %v2916_v26 }
0x101b   :  { %v2918_v43 = vpop.xlane.xlu2 %2917 }
0x101c   :  { %v2920_v44 = vadd.f32 %v2919_v42, %v2918_v43 }
0x101e   :  { %2922 = vst.msk [vmem:[%s4673_s9] sm:$0x3] %vm2921_vm12, %v2920_v44 }
0x101f   :  { %2927 = vsyncpa [#allocation4], 1 }
0x1020   :  { %2928 = vsyncpa [#allocation6], 1 }

</bundles_post_ra>
